<compile_context>
chip_gen: v7x
topology: tpu7x:2x2x1
jax: 0.10.0
libtpu: 0.0.40
codegen_flags: <defaults>
</compile_context>

<pallas_src>
import functools

import numpy as np
import jax
import jax.numpy as jnp
from jax.experimental import pallas as pl
from jax.experimental.pallas import tpu as pltpu

# ---- INR hyper-parameters (defaults: real_gabor=False -> ComplexGaborLayer) ----
FIRST_OMEGA_0 = 30.0      # first_omega_0
HIDDEN_OMEGA_0 = 30.0     # hidden_omega_0
SIGMA0 = 10.0             # scale
N_CHANNELS = 2            # feat_per_channel = [2, 2]
IN_FEAT = 2
COORD_HIDDEN_LAYERS = 2   # self.coord_hidden_layers
NET_HIDDEN_LAYERS = 2     # hidden_layers (gabor layers in self.net before final linear)


# --------------------------------------------------------------------------- #
# Kernel
# --------------------------------------------------------------------------- #
def inr_kernel(coords_ref,            # (C*IN_FEAT, TM)   f32, lane-dense points
               w1_ref, b1_ref,        # (C, Hp, IN_FEAT), (C, Hp, 1)   first (real) Linear^T
               wc_ref, bc_ref,        # (L, 2Hp, 2Hp), (L, 2Hp, 1)     fused complex layers
               wf_ref, bf_ref,        # (O, 2Hp), (O, 1)               fused final Linear (real part)
               out_ref,               # (O, TM)           f32, lane-dense
               zc_ref,                # VMEM scratch (2Hp, C*TM): channel-stacked coord activations
               zn_ref):               # VMEM scratch (2Hp, TM):   net-stage activations
    Hp = w1_ref.shape[1]
    TM = out_ref.shape[1]
    s2 = SIGMA0 * SIGMA0

    # ---- first (real) Gabor layer, per channel --------------------------
    # K = IN_FEAT = 2 contraction done as broadcast FMAs on the VPU instead of
    # a degenerate MXU matmul; results written straight into the lane-stacked
    # scratch (real rows [0:Hp], imag rows [Hp:2Hp]) -> no concatenate copy.
    x = coords_ref[...]                                               # (C*IN_FEAT, TM)
    for c in range(N_CHANNELS):
        w = w1_ref[c]                                                 # (Hp, IN_FEAT)
        lin = b1_ref[c]                                               # (Hp, 1) -> broadcasts
        for f in range(IN_FEAT):
            row = c * IN_FEAT + f
            lin = lin + w[:, f:f + 1] * x[row:row + 1, :]             # (Hp, TM)
        env = jnp.exp(-s2 * lin * lin)
        ang = FIRST_OMEGA_0 * lin
        zc_ref[0:Hp, c * TM:(c + 1) * TM] = env * jnp.cos(ang)
        zc_ref[Hp:2 * Hp, c * TM:(c + 1) * TM] = env * jnp.sin(ang)

    def hidden_gabor(z_ref, l, omega0):
        # Complex Linear fused into ONE real matmul over the stacked [zr; zi]:
        #   [lr; li] = [[wr^T,-wi^T],[wi^T,wr^T]] @ [zr; zi] + [br; bi]
        lin = jnp.dot(wc_ref[l], z_ref[...],
                      preferred_element_type=jnp.float32) + bc_ref[l]   # (2Hp, W)
        lr, li = lin[:Hp], lin[Hp:]                                     # sublane-aligned slices
        # exp(1j*w0*lin - s0^2*|lin|^2): real exponent bounded above by
        # w0^2/(4*s0^2) = 2.25, so no overflow is possible in f32.
        env = jnp.exp(-omega0 * li - s2 * (lr * lr + li * li))
        ang = omega0 * lr
        # Write real/imag halves of the next layer's input directly (no concat).
        z_ref[0:Hp, :] = env * jnp.cos(ang)
        z_ref[Hp:2 * Hp, :] = env * jnp.sin(ang)

    # ---- shared coord_net: both channels ride one lane-stacked (2Hp, 2*TM)
    # slab, so each layer is a single matmul + single activation pass ------
    for l in range(COORD_HIDDEN_LAYERS):
        hidden_gabor(zc_ref, l, FIRST_OMEGA_0)

    # ---- fusion_operator == 'prod': complex elementwise channel product --
    ar = zc_ref[0:Hp, 0:TM]
    ai = zc_ref[Hp:2 * Hp, 0:TM]
    br = zc_ref[0:Hp, TM:2 * TM]
    bi = zc_ref[Hp:2 * Hp, TM:2 * TM]
    zn_ref[0:Hp, :] = ar * br - ai * bi
    zn_ref[Hp:2 * Hp, :] = ar * bi + ai * br

    # ---- self.net hidden complex Gabor layers ----------------------------
    for l in range(NET_HIDDEN_LAYERS):
        hidden_gabor(zn_ref, COORD_HIDDEN_LAYERS + l, HIDDEN_OMEGA_0)

    # ---- outermost complex Linear; INR.forward returns only the real part:
    #   Re(out)^T = [wfr^T | -wfi^T] @ [hr; hi] + bfr^T
    out_ref[...] = (jnp.dot(wf_ref[...], zn_ref[...],
                            preferred_element_type=jnp.float32) + bf_ref[...])


# --------------------------------------------------------------------------- #
# Host-side weight packing (done ONCE, outside the per-call path)
# --------------------------------------------------------------------------- #
def pack_params(p):
    """Transpose / fuse / zero-pad the natural-layout params for the kernel."""
    H = p['wfr'].shape[0]
    Hp = ((H + 7) // 8) * 8          # pad hidden width to a sublane multiple
    ph = Hp - H

    # First (real) layer, transposed: (C, Hp, IN_FEAT) and (C, Hp, 1).
    w1 = jnp.pad(jnp.transpose(p['w0'], (0, 2, 1)), ((0, 0), (0, ph), (0, 0)))
    b1 = jnp.pad(jnp.transpose(p['b0'], (0, 2, 1)), ((0, 0), (0, ph), (0, 0)))

    # Complex hidden layers (coord_net then net): one (2Hp, 2Hp) slab each.
    # Padded rows/cols are zero, so the pad activations (which evaluate the
    # Gabor nonlinearity at 0 -> value 1) never contaminate real outputs.
    def fuse(wr, wi, br, bi):
        wrT = jnp.pad(wr.T, ((0, ph), (0, ph)))
        wiT = jnp.pad(wi.T, ((0, ph), (0, ph)))
        A = jnp.block([[wrT, -wiT], [wiT, wrT]])                       # (2Hp, 2Hp)
        b = jnp.concatenate([jnp.pad(br.T, ((0, ph), (0, 0))),
                             jnp.pad(bi.T, ((0, ph), (0, 0)))], axis=0)  # (2Hp, 1)
        return A, b

    As, bs = [], []
    for l in range(COORD_HIDDEN_LAYERS):
        A, b = fuse(p['wcr'][l], p['wci'][l], p['bcr'][l], p['bci'][l])
        As.append(A); bs.append(b)
    for l in range(NET_HIDDEN_LAYERS):
        A, b = fuse(p['wnr'][l], p['wni'][l], p['bnr'][l], p['bni'][l])
        As.append(A); bs.append(b)
    wc = jnp.stack(As)               # (L, 2Hp, 2Hp)
    bc = jnp.stack(bs)               # (L, 2Hp, 1)

    # Final complex Linear: only the real part of the output survives.
    wf = jnp.concatenate([jnp.pad(p['wfr'].T, ((0, 0), (0, ph))),
                          -jnp.pad(p['wfi'].T, ((0, 0), (0, ph)))], axis=1)  # (O, 2Hp)
    bf = p['bfr'].T                  # (O, 1)
    return dict(w1=w1, b1=b1, wc=wc, bc=bc, wf=wf, bf=bf), Hp


# --------------------------------------------------------------------------- #
# Tiling / VMEM helpers
# --------------------------------------------------------------------------- #
def _round_up(x, m):
    return ((x + m - 1) // m) * m


def _pick_tile_m(n, tile_m):
    """Clamp tile_m so the grid always has >= 2 steps (keeps both v7x
    TensorCores busy under the "parallel" axis) and is a multiple of 128."""
    half = _round_up(max(pl.cdiv(n, 2), 128), 128)
    return max(128, min(_round_up(tile_m, 128), half))


def _vmem_limit_bytes(tile_m, Hp, out_features):
    """Explicit scoped-VMEM budget: double-buffered I/O tiles + the two
    activation scratches + generous headroom for per-layer temporaries.
    Floor at 16 MiB (v5e scoped default), cap at 30 MiB (safe on v7x's
    64 MiB/TC physical VMEM)."""
    f32 = 4
    io = 2 * f32 * tile_m * (N_CHANNELS * IN_FEAT + out_features)   # 2x double-buffered
    scratch = f32 * 2 * Hp * tile_m * (N_CHANNELS + 1)              # zc + zn
    temps = 8 * f32 * 2 * Hp * N_CHANNELS * tile_m                  # layer temporaries headroom
    weights = 1 << 20
    budget = io + scratch + temps + weights
    return int(min(max(budget, 16 << 20), 30 << 20))


# --------------------------------------------------------------------------- #
# Wrapper (jitted; weight packing is hoisted out and passed in pre-packed)
# --------------------------------------------------------------------------- #
@functools.partial(jax.jit, static_argnames=("tile_m",))
def inr_forward(coords, packed, *, tile_m=2048):
    """coords: (C, N, IN_FEAT) f32.  packed: output of pack_params().
    Returns (N, out_features) f32 (real part of the complex output)."""
    C, N, F = coords.shape
    assert C == N_CHANNELS and F == IN_FEAT
    w1, b1, wc, bc, wf, bf = (packed[k] for k in ("w1", "b1", "wc", "bc", "wf", "bf"))
    Hp = w1.shape[1]
    O = wf.shape[0]

    tm = _pick_tile_m(N, tile_m)
    n_tiles = pl.cdiv(N, tm)
    n_pad = n_tiles * tm

    # Lane-dense, flattened input layout: (C*IN_FEAT, N) = (4, N); pad N so the
    # chosen tile size always divides it (padded columns are sliced off below).
    coords_t = jnp.transpose(coords, (0, 2, 1)).reshape(C * F, N)
    if n_pad != N:
        coords_t = jnp.pad(coords_t, ((0, 0), (0, n_pad - N)))

    def resident(a):                      # tiny weight slab, fully VMEM-resident
        zeros = (0,) * a.ndim
        return pl.BlockSpec(a.shape, lambda i, _z=zeros: _z)

    out_t = pl.pallas_call(
        inr_kernel,
        out_shape=jax.ShapeDtypeStruct((O, n_pad), jnp.float32),
        grid=(n_tiles,),
        in_specs=[pl.BlockSpec((C * F, tm), lambda i: (0, i))]
                + [resident(a) for a in (w1, b1, wc, bc, wf, bf)],
        out_specs=pl.BlockSpec((O, tm), lambda i: (0, i)),
        scratch_shapes=[
            pltpu.VMEM((2 * Hp, N_CHANNELS * tm), jnp.float32),   # channel-stacked coord acts
            pltpu.VMEM((2 * Hp, tm), jnp.float32),                # net-stage acts
        ],
        compiler_params=pltpu.CompilerParams(
            dimension_semantics=("parallel",),                    # v7x: shard grid over both TCs
            vmem_limit_bytes=_vmem_limit_bytes(tm, Hp, O)),
    )(coords_t, w1, b1, wc, bc, wf, bf)

    return out_t[:, :N].T                 # back to (N, O); pure layout plumbing


# --------------------------------------------------------------------------- #
# Parameter init (natural PyTorch-like layout) and pure-JAX reference
# --------------------------------------------------------------------------- #
def init_params(key, hidden_features, out_features):
    # INR with real_gabor=False shrinks the hidden width by sqrt(2).
    H = int(hidden_features / np.sqrt(2))
    ks = jax.random.split(key, 14)

    def u(k, shape, scale):
        return jax.random.uniform(k, shape, jnp.float32, -scale, scale)

    p = {
        # coord_input_layer: per-channel real Linear(2 -> H)   (stored as (in, out))
        'w0': u(ks[0], (N_CHANNELS, IN_FEAT, H), 0.3),
        'b0': u(ks[1], (N_CHANNELS, 1, H), 0.1),
        # coord_net: complex Linear(H -> H), shared across channels
        'wcr': u(ks[2], (COORD_HIDDEN_LAYERS, H, H), 0.05),
        'wci': u(ks[3], (COORD_HIDDEN_LAYERS, H, H), 0.05),
        'bcr': u(ks[4], (COORD_HIDDEN_LAYERS, 1, H), 0.02),
        'bci': u(ks[5], (COORD_HIDDEN_LAYERS, 1, H), 0.02),
        # net: complex Gabor layers Linear(H -> H)
        'wnr': u(ks[6], (NET_HIDDEN_LAYERS, H, H), 0.05),
        'wni': u(ks[7], (NET_HIDDEN_LAYERS, H, H), 0.05),
        'bnr': u(ks[8], (NET_HIDDEN_LAYERS, 1, H), 0.02),
        'bni': u(ks[9], (NET_HIDDEN_LAYERS, 1, H), 0.02),
        # final complex Linear(H -> out_features)
        'wfr': u(ks[10], (H, out_features), 0.2),
        'wfi': u(ks[11], (H, out_features), 0.2),
        'bfr': u(ks[12], (1, out_features), 0.1),
        'bfi': u(ks[13], (1, out_features), 0.1),  # does not affect the .real output
    }
    return p, H


def inr_reference(coords, p):
    """Pure-JAX complex64 reference mirroring the PyTorch forward."""
    def gabor(lin, omega0, sigma0):
        return jnp.exp(1j * omega0 * lin - (sigma0 ** 2) * jnp.abs(lin) ** 2)

    hs = []
    for c in range(N_CHANNELS):
        lin = coords[c] @ p['w0'][c] + p['b0'][c]
        z = gabor(lin.astype(jnp.complex64), FIRST_OMEGA_0, SIGMA0)
        for l in range(COORD_HIDDEN_LAYERS):
            w = p['wcr'][l] + 1j * p['wci'][l]
            b = p['bcr'][l] + 1j * p['bci'][l]
            z = gabor(z @ w + b, FIRST_OMEGA_0, SIGMA0)
        hs.append(z)
    h = hs[0] * hs[1]
    for l in range(NET_HIDDEN_LAYERS):
        w = p['wnr'][l] + 1j * p['wni'][l]
        b = p['bnr'][l] + 1j * p['bni'][l]
        h = gabor(h @ w + b, HIDDEN_OMEGA_0, SIGMA0)
    wf = p['wfr'] + 1j * p['wfi']
    bf = p['bfr'] + 1j * p['bfi']
    out = h @ wf + bf
    return out.reshape(-1, out.shape[-1]).real


if __name__ == "__main__":
    key = jax.random.PRNGKey(0)
    kp, kc = jax.random.split(key)

    hidden_features = 32   # -> internal H = int(32/sqrt(2)) = 22 (padded to Hp=24 in the kernel)
    out_features = 4
    N = 256                # number of coordinate samples per channel

    params, H = init_params(kp, hidden_features, out_features)
    coords = jax.random.uniform(kc, (N_CHANNELS, N, IN_FEAT), jnp.float32, -1.0, 1.0)

    # Pack/fuse/pad the weights ONCE (hoisted out of the per-call path); the
    # jitted forward then only runs the coords transpose/pad + the kernel.
    packed, _ = pack_params(params)

    # tile_m=2048 is the large-N default; _pick_tile_m clamps it to 128 here so
    # the grid is (2,) and both v7x TensorCores get a step even at N=256.
    out = inr_forward(coords, packed, tile_m=2048)
    out = jax.block_until_ready(out)

    ref = inr_reference(coords, params)
    assert out.shape == (N, out_features), out.shape
    err = float(jnp.max(jnp.abs(out - ref)))
    assert np.allclose(np.asarray(out), np.asarray(ref), atol=2e-3, rtol=1e-2), f"max err {err}"

    print("KERNEL_OK")
</pallas_src>

<mosaic_0001>
module attributes {stable_mosaic.version = 11 : i64} {
  func.func @inr_kernel(%arg0: i32, %arg1: memref<4x128xf32, #tpu.memory_space<vmem>>, %arg2: memref<2x24x2xf32, #tpu.memory_space<vmem>>, %arg3: memref<2x24x1xf32, #tpu.memory_space<vmem>>, %arg4: memref<4x48x48xf32, #tpu.memory_space<vmem>>, %arg5: memref<4x48x1xf32, #tpu.memory_space<vmem>>, %arg6: memref<4x48xf32, #tpu.memory_space<vmem>>, %arg7: memref<4x1xf32, #tpu.memory_space<vmem>>, %arg8: memref<4x128xf32, #tpu.memory_space<vmem>>, %arg9: memref<48x256xf32, #tpu.memory_space<vmem>>, %arg10: memref<48x128xf32, #tpu.memory_space<vmem>>) attributes {dimension_semantics = [#tpu.dimension_semantics<parallel>], iteration_bounds = array<i64: 2>, scalar_prefetch = 0 : i64, scratch_operands = 2 : i64, tpu.core_type = #tpu.core_type<tc>, window_params = [{transform_indices = @transform_0, window_bounds = array<i64: 4, 128>}, {pipeline_mode = #tpu.pipeline_mode<synchronous>, transform_indices = @transform_1, window_bounds = array<i64: 2, 24, 2>}, {pipeline_mode = #tpu.pipeline_mode<synchronous>, transform_indices = @transform_2, window_bounds = array<i64: 2, 24, 1>}, {pipeline_mode = #tpu.pipeline_mode<synchronous>, transform_indices = @transform_3, window_bounds = array<i64: 4, 48, 48>}, {pipeline_mode = #tpu.pipeline_mode<synchronous>, transform_indices = @transform_4, window_bounds = array<i64: 4, 48, 1>}, {pipeline_mode = #tpu.pipeline_mode<synchronous>, transform_indices = @transform_5, window_bounds = array<i64: 4, 48>}, {pipeline_mode = #tpu.pipeline_mode<synchronous>, transform_indices = @transform_6, window_bounds = array<i64: 4, 1>}, {transform_indices = @transform_7, window_bounds = array<i64: 4, 128>}]} {
    %c0 = arith.constant 0 : index
    %c0_0 = arith.constant 0 : index
    %0 = vector.load %arg1[%c0, %c0_0] : memref<4x128xf32, #tpu.memory_space<vmem>>, vector<4x128xf32>
    %c0_1 = arith.constant 0 : index
    %c0_2 = arith.constant 0 : index
    %c0_3 = arith.constant 0 : index
    %1 = vector.load %arg2[%c0_1, %c0_2, %c0_3] : memref<2x24x2xf32, #tpu.memory_space<vmem>>, vector<1x24x2xf32>
    %2 = vector.shape_cast %1 : vector<1x24x2xf32> to vector<24x2xf32>
    %c0_4 = arith.constant 0 : index
    %c0_5 = arith.constant 0 : index
    %c0_6 = arith.constant 0 : index
    %3 = vector.load %arg3[%c0_4, %c0_5, %c0_6] : memref<2x24x1xf32, #tpu.memory_space<vmem>>, vector<1x24x1xf32>
    %4 = vector.shape_cast %3 : vector<1x24x1xf32> to vector<24x1xf32>
    %5 = vector.extract_strided_slice %2 {offsets = [0, 0], sizes = [24, 1], strides = [1, 1]} : vector<24x2xf32> to vector<24x1xf32>
    %6 = vector.extract_strided_slice %0 {offsets = [0, 0], sizes = [1, 128], strides = [1, 1]} : vector<4x128xf32> to vector<1x128xf32>
    %7 = vector.broadcast %5 : vector<24x1xf32> to vector<24x128xf32>
    %8 = vector.broadcast %6 : vector<1x128xf32> to vector<24x128xf32>
    %9 = arith.mulf %7, %8 : vector<24x128xf32>
    %10 = vector.broadcast %4 : vector<24x1xf32> to vector<24x128xf32>
    %11 = arith.addf %10, %9 : vector<24x128xf32>
    %12 = vector.extract_strided_slice %2 {offsets = [0, 1], sizes = [24, 1], strides = [1, 1]} : vector<24x2xf32> to vector<24x1xf32>
    %13 = vector.extract_strided_slice %0 {offsets = [1, 0], sizes = [1, 128], strides = [1, 1]} : vector<4x128xf32> to vector<1x128xf32>
    %14 = vector.broadcast %12 : vector<24x1xf32> to vector<24x128xf32>
    %15 = vector.broadcast %13 : vector<1x128xf32> to vector<24x128xf32>
    %16 = arith.mulf %14, %15 : vector<24x128xf32>
    %17 = arith.addf %11, %16 : vector<24x128xf32>
    %cst = arith.constant -1.000000e+02 : f32
    %18 = vector.broadcast %cst : f32 to vector<24x128xf32>
    %19 = arith.mulf %18, %17 : vector<24x128xf32>
    %20 = arith.mulf %19, %17 : vector<24x128xf32>
    %21 = math.exp %20 : vector<24x128xf32>
    %cst_7 = arith.constant 3.000000e+01 : f32
    %22 = vector.broadcast %cst_7 : f32 to vector<24x128xf32>
    %23 = arith.mulf %22, %17 : vector<24x128xf32>
    %24 = math.cos %23 : vector<24x128xf32>
    %25 = arith.mulf %21, %24 : vector<24x128xf32>
    %c0_8 = arith.constant 0 : index
    %c0_9 = arith.constant 0 : index
    %26 = vector.load %arg9[%c0_8, %c0_9] : memref<48x256xf32, #tpu.memory_space<vmem>>, vector<24x128xf32>
    tpu.vector_store %arg9[%c0_8, %c0_9], %25 {strides = array<i32>} : memref<48x256xf32, #tpu.memory_space<vmem>>, vector<24x128xf32>,
    %27 = math.sin %23 : vector<24x128xf32>
    %28 = arith.mulf %21, %27 : vector<24x128xf32>
    %c24 = arith.constant 24 : index
    %c0_10 = arith.constant 0 : index
    %29 = vector.load %arg9[%c24, %c0_10] : memref<48x256xf32, #tpu.memory_space<vmem>>, vector<24x128xf32>
    tpu.vector_store %arg9[%c24, %c0_10], %28 {strides = array<i32>} : memref<48x256xf32, #tpu.memory_space<vmem>>, vector<24x128xf32>,
    %c1 = arith.constant 1 : index
    %c0_11 = arith.constant 0 : index
    %c0_12 = arith.constant 0 : index
    %30 = vector.load %arg2[%c1, %c0_11, %c0_12] : memref<2x24x2xf32, #tpu.memory_space<vmem>>, vector<1x24x2xf32>
    %31 = vector.shape_cast %30 : vector<1x24x2xf32> to vector<24x2xf32>
    %c1_13 = arith.constant 1 : index
    %c0_14 = arith.constant 0 : index
    %c0_15 = arith.constant 0 : index
    %32 = vector.load %arg3[%c1_13, %c0_14, %c0_15] : memref<2x24x1xf32, #tpu.memory_space<vmem>>, vector<1x24x1xf32>
    %33 = vector.shape_cast %32 : vector<1x24x1xf32> to vector<24x1xf32>
    %34 = vector.extract_strided_slice %31 {offsets = [0, 0], sizes = [24, 1], strides = [1, 1]} : vector<24x2xf32> to vector<24x1xf32>
    %35 = vector.extract_strided_slice %0 {offsets = [2, 0], sizes = [1, 128], strides = [1, 1]} : vector<4x128xf32> to vector<1x128xf32>
    %36 = vector.broadcast %34 : vector<24x1xf32> to vector<24x128xf32>
    %37 = vector.broadcast %35 : vector<1x128xf32> to vector<24x128xf32>
    %38 = arith.mulf %36, %37 : vector<24x128xf32>
    %39 = vector.broadcast %33 : vector<24x1xf32> to vector<24x128xf32>
    %40 = arith.addf %39, %38 : vector<24x128xf32>
    %41 = vector.extract_strided_slice %31 {offsets = [0, 1], sizes = [24, 1], strides = [1, 1]} : vector<24x2xf32> to vector<24x1xf32>
    %42 = vector.extract_strided_slice %0 {offsets = [3, 0], sizes = [1, 128], strides = [1, 1]} : vector<4x128xf32> to vector<1x128xf32>
    %43 = vector.broadcast %41 : vector<24x1xf32> to vector<24x128xf32>
    %44 = vector.broadcast %42 : vector<1x128xf32> to vector<24x128xf32>
    %45 = arith.mulf %43, %44 : vector<24x128xf32>
    %46 = arith.addf %40, %45 : vector<24x128xf32>
    %cst_16 = arith.constant -1.000000e+02 : f32
    %47 = vector.broadcast %cst_16 : f32 to vector<24x128xf32>
    %48 = arith.mulf %47, %46 : vector<24x128xf32>
    %49 = arith.mulf %48, %46 : vector<24x128xf32>
    %50 = math.exp %49 : vector<24x128xf32>
    %cst_17 = arith.constant 3.000000e+01 : f32
    %51 = vector.broadcast %cst_17 : f32 to vector<24x128xf32>
    %52 = arith.mulf %51, %46 : vector<24x128xf32>
    %53 = math.cos %52 : vector<24x128xf32>
    %54 = arith.mulf %50, %53 : vector<24x128xf32>
    %c0_18 = arith.constant 0 : index
    %c128 = arith.constant 128 : index
    %55 = vector.load %arg9[%c0_18, %c128] : memref<48x256xf32, #tpu.memory_space<vmem>>, vector<24x128xf32>
    tpu.vector_store %arg9[%c0_18, %c128], %54 {strides = array<i32>} : memref<48x256xf32, #tpu.memory_space<vmem>>, vector<24x128xf32>,
    %56 = math.sin %52 : vector<24x128xf32>
    %57 = arith.mulf %50, %56 : vector<24x128xf32>
    %c24_19 = arith.constant 24 : index
    %c128_20 = arith.constant 128 : index
    %58 = vector.load %arg9[%c24_19, %c128_20] : memref<48x256xf32, #tpu.memory_space<vmem>>, vector<24x128xf32>
    tpu.vector_store %arg9[%c24_19, %c128_20], %57 {strides = array<i32>} : memref<48x256xf32, #tpu.memory_space<vmem>>, vector<24x128xf32>,
    %c0_21 = arith.constant 0 : index
    %c0_22 = arith.constant 0 : index
    %c0_23 = arith.constant 0 : index
    %59 = vector.load %arg4[%c0_21, %c0_22, %c0_23] : memref<4x48x48xf32, #tpu.memory_space<vmem>>, vector<1x48x48xf32>
    %60 = vector.shape_cast %59 : vector<1x48x48xf32> to vector<48x48xf32>
    %c0_24 = arith.constant 0 : index
    %c0_25 = arith.constant 0 : index
    %61 = vector.load %arg9[%c0_24, %c0_25] : memref<48x256xf32, #tpu.memory_space<vmem>>, vector<48x256xf32>
    %cst_26 = arith.constant dense<0.000000e+00> : vector<48x256xf32>
    %62 = tpu.matmul %60, %61, %cst_26 {dimension_numbers = #tpu.dot_dimension_numbers<[1], [0], [0], [1], [0, 0, 1, 1], [], []>} : vector<48x48xf32>, vector<48x256xf32>, vector<48x256xf32> -> vector<48x256xf32>
    %c0_27 = arith.constant 0 : index
    %c0_28 = arith.constant 0 : index
    %c0_29 = arith.constant 0 : index
    %63 = vector.load %arg5[%c0_27, %c0_28, %c0_29] : memref<4x48x1xf32, #tpu.memory_space<vmem>>, vector<1x48x1xf32>
    %64 = vector.shape_cast %63 : vector<1x48x1xf32> to vector<48x1xf32>
    %65 = vector.broadcast %64 : vector<48x1xf32> to vector<48x256xf32>
    %66 = arith.addf %62, %65 : vector<48x256xf32>
    %67 = vector.extract_strided_slice %66 {offsets = [0, 0], sizes = [24, 256], strides = [1, 1]} : vector<48x256xf32> to vector<24x256xf32>
    %68 = vector.extract_strided_slice %66 {offsets = [24, 0], sizes = [24, 256], strides = [1, 1]} : vector<48x256xf32> to vector<24x256xf32>
    %cst_30 = arith.constant -3.000000e+01 : f32
    %69 = vector.broadcast %cst_30 : f32 to vector<24x256xf32>
    %70 = arith.mulf %69, %68 : vector<24x256xf32>
    %71 = arith.mulf %67, %67 : vector<24x256xf32>
    %72 = arith.mulf %68, %68 : vector<24x256xf32>
    %73 = arith.addf %71, %72 : vector<24x256xf32>
    %cst_31 = arith.constant 1.000000e+02 : f32
    %74 = vector.broadcast %cst_31 : f32 to vector<24x256xf32>
    %75 = arith.mulf %74, %73 : vector<24x256xf32>
    %76 = arith.subf %70, %75 : vector<24x256xf32>
    %77 = math.exp %76 : vector<24x256xf32>
    %cst_32 = arith.constant 3.000000e+01 : f32
    %78 = vector.broadcast %cst_32 : f32 to vector<24x256xf32>
    %79 = arith.mulf %78, %67 : vector<24x256xf32>
    %80 = math.cos %79 : vector<24x256xf32>
    %81 = arith.mulf %77, %80 : vector<24x256xf32>
    %c0_33 = arith.constant 0 : index
    %c0_34 = arith.constant 0 : index
    %82 = vector.load %arg9[%c0_33, %c0_34] : memref<48x256xf32, #tpu.memory_space<vmem>>, vector<24x256xf32>
    tpu.vector_store %arg9[%c0_33, %c0_34], %81 {strides = array<i32>} : memref<48x256xf32, #tpu.memory_space<vmem>>, vector<24x256xf32>,
    %83 = math.sin %79 : vector<24x256xf32>
    %84 = arith.mulf %77, %83 : vector<24x256xf32>
    %c24_35 = arith.constant 24 : index
    %c0_36 = arith.constant 0 : index
    %85 = vector.load %arg9[%c24_35, %c0_36] : memref<48x256xf32, #tpu.memory_space<vmem>>, vector<24x256xf32>
    tpu.vector_store %arg9[%c24_35, %c0_36], %84 {strides = array<i32>} : memref<48x256xf32, #tpu.memory_space<vmem>>, vector<24x256xf32>,
    %c1_37 = arith.constant 1 : index
    %c0_38 = arith.constant 0 : index
    %c0_39 = arith.constant 0 : index
    %86 = vector.load %arg4[%c1_37, %c0_38, %c0_39] : memref<4x48x48xf32, #tpu.memory_space<vmem>>, vector<1x48x48xf32>
    %87 = vector.shape_cast %86 : vector<1x48x48xf32> to vector<48x48xf32>
    %c0_40 = arith.constant 0 : index
    %c0_41 = arith.constant 0 : index
    %88 = vector.load %arg9[%c0_40, %c0_41] : memref<48x256xf32, #tpu.memory_space<vmem>>, vector<48x256xf32>
    %cst_42 = arith.constant dense<0.000000e+00> : vector<48x256xf32>
    %89 = tpu.matmul %87, %88, %cst_42 {dimension_numbers = #tpu.dot_dimension_numbers<[1], [0], [0], [1], [0, 0, 1, 1], [], []>} : vector<48x48xf32>, vector<48x256xf32>, vector<48x256xf32> -> vector<48x256xf32>
    %c1_43 = arith.constant 1 : index
    %c0_44 = arith.constant 0 : index
    %c0_45 = arith.constant 0 : index
    %90 = vector.load %arg5[%c1_43, %c0_44, %c0_45] : memref<4x48x1xf32, #tpu.memory_space<vmem>>, vector<1x48x1xf32>
    %91 = vector.shape_cast %90 : vector<1x48x1xf32> to vector<48x1xf32>
    %92 = vector.broadcast %91 : vector<48x1xf32> to vector<48x256xf32>
    %93 = arith.addf %89, %92 : vector<48x256xf32>
    %94 = vector.extract_strided_slice %93 {offsets = [0, 0], sizes = [24, 256], strides = [1, 1]} : vector<48x256xf32> to vector<24x256xf32>
    %95 = vector.extract_strided_slice %93 {offsets = [24, 0], sizes = [24, 256], strides = [1, 1]} : vector<48x256xf32> to vector<24x256xf32>
    %cst_46 = arith.constant -3.000000e+01 : f32
    %96 = vector.broadcast %cst_46 : f32 to vector<24x256xf32>
    %97 = arith.mulf %96, %95 : vector<24x256xf32>
    %98 = arith.mulf %94, %94 : vector<24x256xf32>
    %99 = arith.mulf %95, %95 : vector<24x256xf32>
    %100 = arith.addf %98, %99 : vector<24x256xf32>
    %cst_47 = arith.constant 1.000000e+02 : f32
    %101 = vector.broadcast %cst_47 : f32 to vector<24x256xf32>
    %102 = arith.mulf %101, %100 : vector<24x256xf32>
    %103 = arith.subf %97, %102 : vector<24x256xf32>
    %104 = math.exp %103 : vector<24x256xf32>
    %cst_48 = arith.constant 3.000000e+01 : f32
    %105 = vector.broadcast %cst_48 : f32 to vector<24x256xf32>
    %106 = arith.mulf %105, %94 : vector<24x256xf32>
    %107 = math.cos %106 : vector<24x256xf32>
    %108 = arith.mulf %104, %107 : vector<24x256xf32>
    %c0_49 = arith.constant 0 : index
    %c0_50 = arith.constant 0 : index
    %109 = vector.load %arg9[%c0_49, %c0_50] : memref<48x256xf32, #tpu.memory_space<vmem>>, vector<24x256xf32>
    tpu.vector_store %arg9[%c0_49, %c0_50], %108 {strides = array<i32>} : memref<48x256xf32, #tpu.memory_space<vmem>>, vector<24x256xf32>,
    %110 = math.sin %106 : vector<24x256xf32>
    %111 = arith.mulf %104, %110 : vector<24x256xf32>
    %c24_51 = arith.constant 24 : index
    %c0_52 = arith.constant 0 : index
    %112 = vector.load %arg9[%c24_51, %c0_52] : memref<48x256xf32, #tpu.memory_space<vmem>>, vector<24x256xf32>
    tpu.vector_store %arg9[%c24_51, %c0_52], %111 {strides = array<i32>} : memref<48x256xf32, #tpu.memory_space<vmem>>, vector<24x256xf32>,
    %c0_53 = arith.constant 0 : index
    %c0_54 = arith.constant 0 : index
    %113 = vector.load %arg9[%c0_53, %c0_54] : memref<48x256xf32, #tpu.memory_space<vmem>>, vector<24x128xf32>
    %c24_55 = arith.constant 24 : index
    %c0_56 = arith.constant 0 : index
    %114 = vector.load %arg9[%c24_55, %c0_56] : memref<48x256xf32, #tpu.memory_space<vmem>>, vector<24x128xf32>
    %c0_57 = arith.constant 0 : index
    %c128_58 = arith.constant 128 : index
    %115 = vector.load %arg9[%c0_57, %c128_58] : memref<48x256xf32, #tpu.memory_space<vmem>>, vector<24x128xf32>
    %c24_59 = arith.constant 24 : index
    %c128_60 = arith.constant 128 : index
    %116 = vector.load %arg9[%c24_59, %c128_60] : memref<48x256xf32, #tpu.memory_space<vmem>>, vector<24x128xf32>
    %117 = arith.mulf %113, %115 : vector<24x128xf32>
    %118 = arith.mulf %114, %116 : vector<24x128xf32>
    %119 = arith.subf %117, %118 : vector<24x128xf32>
    %c0_61 = arith.constant 0 : index
    %c0_62 = arith.constant 0 : index
    %120 = vector.load %arg10[%c0_61, %c0_62] : memref<48x128xf32, #tpu.memory_space<vmem>>, vector<24x128xf32>
    tpu.vector_store %arg10[%c0_61, %c0_62], %119 {strides = array<i32>} : memref<48x128xf32, #tpu.memory_space<vmem>>, vector<24x128xf32>,
    %121 = arith.mulf %113, %116 : vector<24x128xf32>
    %122 = arith.mulf %114, %115 : vector<24x128xf32>
    %123 = arith.addf %121, %122 : vector<24x128xf32>
    %c24_63 = arith.constant 24 : index
    %c0_64 = arith.constant 0 : index
    %124 = vector.load %arg10[%c24_63, %c0_64] : memref<48x128xf32, #tpu.memory_space<vmem>>, vector<24x128xf32>
    tpu.vector_store %arg10[%c24_63, %c0_64], %123 {strides = array<i32>} : memref<48x128xf32, #tpu.memory_space<vmem>>, vector<24x128xf32>,
    %c2 = arith.constant 2 : index
    %c0_65 = arith.constant 0 : index
    %c0_66 = arith.constant 0 : index
    %125 = vector.load %arg4[%c2, %c0_65, %c0_66] : memref<4x48x48xf32, #tpu.memory_space<vmem>>, vector<1x48x48xf32>
    %126 = vector.shape_cast %125 : vector<1x48x48xf32> to vector<48x48xf32>
    %c0_67 = arith.constant 0 : index
    %c0_68 = arith.constant 0 : index
    %127 = vector.load %arg10[%c0_67, %c0_68] : memref<48x128xf32, #tpu.memory_space<vmem>>, vector<48x128xf32>
    %cst_69 = arith.constant dense<0.000000e+00> : vector<48x128xf32>
    %128 = tpu.matmul %126, %127, %cst_69 {dimension_numbers = #tpu.dot_dimension_numbers<[1], [0], [0], [1], [0, 0, 1, 1], [], []>} : vector<48x48xf32>, vector<48x128xf32>, vector<48x128xf32> -> vector<48x128xf32>
    %c2_70 = arith.constant 2 : index
    %c0_71 = arith.constant 0 : index
    %c0_72 = arith.constant 0 : index
    %129 = vector.load %arg5[%c2_70, %c0_71, %c0_72] : memref<4x48x1xf32, #tpu.memory_space<vmem>>, vector<1x48x1xf32>
    %130 = vector.shape_cast %129 : vector<1x48x1xf32> to vector<48x1xf32>
    %131 = vector.broadcast %130 : vector<48x1xf32> to vector<48x128xf32>
    %132 = arith.addf %128, %131 : vector<48x128xf32>
    %133 = vector.extract_strided_slice %132 {offsets = [0, 0], sizes = [24, 128], strides = [1, 1]} : vector<48x128xf32> to vector<24x128xf32>
    %134 = vector.extract_strided_slice %132 {offsets = [24, 0], sizes = [24, 128], strides = [1, 1]} : vector<48x128xf32> to vector<24x128xf32>
    %cst_73 = arith.constant -3.000000e+01 : f32
    %135 = vector.broadcast %cst_73 : f32 to vector<24x128xf32>
    %136 = arith.mulf %135, %134 : vector<24x128xf32>
    %137 = arith.mulf %133, %133 : vector<24x128xf32>
    %138 = arith.mulf %134, %134 : vector<24x128xf32>
    %139 = arith.addf %137, %138 : vector<24x128xf32>
    %cst_74 = arith.constant 1.000000e+02 : f32
    %140 = vector.broadcast %cst_74 : f32 to vector<24x128xf32>
    %141 = arith.mulf %140, %139 : vector<24x128xf32>
    %142 = arith.subf %136, %141 : vector<24x128xf32>
    %143 = math.exp %142 : vector<24x128xf32>
    %cst_75 = arith.constant 3.000000e+01 : f32
    %144 = vector.broadcast %cst_75 : f32 to vector<24x128xf32>
    %145 = arith.mulf %144, %133 : vector<24x128xf32>
    %146 = math.cos %145 : vector<24x128xf32>
    %147 = arith.mulf %143, %146 : vector<24x128xf32>
    %c0_76 = arith.constant 0 : index
    %c0_77 = arith.constant 0 : index
    %148 = vector.load %arg10[%c0_76, %c0_77] : memref<48x128xf32, #tpu.memory_space<vmem>>, vector<24x128xf32>
    tpu.vector_store %arg10[%c0_76, %c0_77], %147 {strides = array<i32>} : memref<48x128xf32, #tpu.memory_space<vmem>>, vector<24x128xf32>,
    %149 = math.sin %145 : vector<24x128xf32>
    %150 = arith.mulf %143, %149 : vector<24x128xf32>
    %c24_78 = arith.constant 24 : index
    %c0_79 = arith.constant 0 : index
    %151 = vector.load %arg10[%c24_78, %c0_79] : memref<48x128xf32, #tpu.memory_space<vmem>>, vector<24x128xf32>
    tpu.vector_store %arg10[%c24_78, %c0_79], %150 {strides = array<i32>} : memref<48x128xf32, #tpu.memory_space<vmem>>, vector<24x128xf32>,
    %c3 = arith.constant 3 : index
    %c0_80 = arith.constant 0 : index
    %c0_81 = arith.constant 0 : index
    %152 = vector.load %arg4[%c3, %c0_80, %c0_81] : memref<4x48x48xf32, #tpu.memory_space<vmem>>, vector<1x48x48xf32>
    %153 = vector.shape_cast %152 : vector<1x48x48xf32> to vector<48x48xf32>
    %c0_82 = arith.constant 0 : index
    %c0_83 = arith.constant 0 : index
    %154 = vector.load %arg10[%c0_82, %c0_83] : memref<48x128xf32, #tpu.memory_space<vmem>>, vector<48x128xf32>
    %cst_84 = arith.constant dense<0.000000e+00> : vector<48x128xf32>
    %155 = tpu.matmul %153, %154, %cst_84 {dimension_numbers = #tpu.dot_dimension_numbers<[1], [0], [0], [1], [0, 0, 1, 1], [], []>} : vector<48x48xf32>, vector<48x128xf32>, vector<48x128xf32> -> vector<48x128xf32>
    %c3_85 = arith.constant 3 : index
    %c0_86 = arith.constant 0 : index
    %c0_87 = arith.constant 0 : index
    %156 = vector.load %arg5[%c3_85, %c0_86, %c0_87] : memref<4x48x1xf32, #tpu.memory_space<vmem>>, vector<1x48x1xf32>
    %157 = vector.shape_cast %156 : vector<1x48x1xf32> to vector<48x1xf32>
    %158 = vector.broadcast %157 : vector<48x1xf32> to vector<48x128xf32>
    %159 = arith.addf %155, %158 : vector<48x128xf32>
    %160 = vector.extract_strided_slice %159 {offsets = [0, 0], sizes = [24, 128], strides = [1, 1]} : vector<48x128xf32> to vector<24x128xf32>
    %161 = vector.extract_strided_slice %159 {offsets = [24, 0], sizes = [24, 128], strides = [1, 1]} : vector<48x128xf32> to vector<24x128xf32>
    %cst_88 = arith.constant -3.000000e+01 : f32
    %162 = vector.broadcast %cst_88 : f32 to vector<24x128xf32>
    %163 = arith.mulf %162, %161 : vector<24x128xf32>
    %164 = arith.mulf %160, %160 : vector<24x128xf32>
    %165 = arith.mulf %161, %161 : vector<24x128xf32>
    %166 = arith.addf %164, %165 : vector<24x128xf32>
    %cst_89 = arith.constant 1.000000e+02 : f32
    %167 = vector.broadcast %cst_89 : f32 to vector<24x128xf32>
    %168 = arith.mulf %167, %166 : vector<24x128xf32>
    %169 = arith.subf %163, %168 : vector<24x128xf32>
    %170 = math.exp %169 : vector<24x128xf32>
    %cst_90 = arith.constant 3.000000e+01 : f32
    %171 = vector.broadcast %cst_90 : f32 to vector<24x128xf32>
    %172 = arith.mulf %171, %160 : vector<24x128xf32>
    %173 = math.cos %172 : vector<24x128xf32>
    %174 = arith.mulf %170, %173 : vector<24x128xf32>
    %c0_91 = arith.constant 0 : index
    %c0_92 = arith.constant 0 : index
    %175 = vector.load %arg10[%c0_91, %c0_92] : memref<48x128xf32, #tpu.memory_space<vmem>>, vector<24x128xf32>
    tpu.vector_store %arg10[%c0_91, %c0_92], %174 {strides = array<i32>} : memref<48x128xf32, #tpu.memory_space<vmem>>, vector<24x128xf32>,
    %176 = math.sin %172 : vector<24x128xf32>
    %177 = arith.mulf %170, %176 : vector<24x128xf32>
    %c24_93 = arith.constant 24 : index
    %c0_94 = arith.constant 0 : index
    %178 = vector.load %arg10[%c24_93, %c0_94] : memref<48x128xf32, #tpu.memory_space<vmem>>, vector<24x128xf32>
    tpu.vector_store %arg10[%c24_93, %c0_94], %177 {strides = array<i32>} : memref<48x128xf32, #tpu.memory_space<vmem>>, vector<24x128xf32>,
    %c0_95 = arith.constant 0 : index
    %c0_96 = arith.constant 0 : index
    %179 = vector.load %arg6[%c0_95, %c0_96] : memref<4x48xf32, #tpu.memory_space<vmem>>, vector<4x48xf32>
    %c0_97 = arith.constant 0 : index
    %c0_98 = arith.constant 0 : index
    %180 = vector.load %arg10[%c0_97, %c0_98] : memref<48x128xf32, #tpu.memory_space<vmem>>, vector<48x128xf32>
    %cst_99 = arith.constant dense<0.000000e+00> : vector<4x128xf32>
    %181 = tpu.matmul %179, %180, %cst_99 {dimension_numbers = #tpu.dot_dimension_numbers<[1], [0], [0], [1], [0, 0, 1, 1], [], []>} : vector<4x48xf32>, vector<48x128xf32>, vector<4x128xf32> -> vector<4x128xf32>
    %c0_100 = arith.constant 0 : index
    %c0_101 = arith.constant 0 : index
    %182 = vector.load %arg7[%c0_100, %c0_101] : memref<4x1xf32, #tpu.memory_space<vmem>>, vector<4x1xf32>
    %183 = vector.broadcast %182 : vector<4x1xf32> to vector<4x128xf32>
    %184 = arith.addf %181, %183 : vector<4x128xf32>
    %c0_102 = arith.constant 0 : index
    %c0_103 = arith.constant 0 : index
    %185 = vector.load %arg8[%c0_102, %c0_103] : memref<4x128xf32, #tpu.memory_space<vmem>>, vector<4x128xf32>
    tpu.vector_store %arg8[%c0_102, %c0_103], %184 {strides = array<i32>} : memref<4x128xf32, #tpu.memory_space<vmem>>, vector<4x128xf32>,
    return
  }
  func.func @transform_0(%arg0: i32) -> (i32, i32) {
    %c0_i32 = arith.constant 0 : i32
    %c0_i32_0 = arith.constant 0 : i32
    return %c0_i32, %arg0 : i32, i32
  }
  func.func @transform_1(%arg0: i32) -> (i32, i32, i32) {
    %c0_i32 = arith.constant 0 : i32
    %c0_i32_0 = arith.constant 0 : i32
    %c0_i32_1 = arith.constant 0 : i32
    %c0_i32_2 = arith.constant 0 : i32
    return %c0_i32, %c0_i32_0, %c0_i32_1 : i32, i32, i32
  }
  func.func @transform_2(%arg0: i32) -> (i32, i32, i32) {
    %c0_i32 = arith.constant 0 : i32
    %c0_i32_0 = arith.constant 0 : i32
    %c0_i32_1 = arith.constant 0 : i32
    %c0_i32_2 = arith.constant 0 : i32
    return %c0_i32, %c0_i32_0, %c0_i32_1 : i32, i32, i32
  }
  func.func @transform_3(%arg0: i32) -> (i32, i32, i32) {
    %c0_i32 = arith.constant 0 : i32
    %c0_i32_0 = arith.constant 0 : i32
    %c0_i32_1 = arith.constant 0 : i32
    %c0_i32_2 = arith.constant 0 : i32
    return %c0_i32, %c0_i32_0, %c0_i32_1 : i32, i32, i32
  }
  func.func @transform_4(%arg0: i32) -> (i32, i32, i32) {
    %c0_i32 = arith.constant 0 : i32
    %c0_i32_0 = arith.constant 0 : i32
    %c0_i32_1 = arith.constant 0 : i32
    %c0_i32_2 = arith.constant 0 : i32
    return %c0_i32, %c0_i32_0, %c0_i32_1 : i32, i32, i32
  }
  func.func @transform_5(%arg0: i32) -> (i32, i32) {
    %c0_i32 = arith.constant 0 : i32
    %c0_i32_0 = arith.constant 0 : i32
    %c0_i32_1 = arith.constant 0 : i32
    return %c0_i32, %c0_i32_0 : i32, i32
  }
  func.func @transform_6(%arg0: i32) -> (i32, i32) {
    %c0_i32 = arith.constant 0 : i32
    %c0_i32_0 = arith.constant 0 : i32
    %c0_i32_1 = arith.constant 0 : i32
    return %c0_i32, %c0_i32_0 : i32, i32
  }
  func.func @transform_7(%arg0: i32) -> (i32, i32) {
    %c0_i32 = arith.constant 0 : i32
    %c0_i32_0 = arith.constant 0 : i32
    return %c0_i32, %arg0 : i32, i32
  }
}

</mosaic_0001>

<bundles_post_ra>
// kernel: inr_forward.1
= control target key start
LH: loop header
LB: loop body
LE: loop exit
PB: predicated region body
PF: predicated region fallthrough
CT: control target
= control target key end

     0   :  { %12 = vsyncpa [#allocation5], 0  ;;  %s10365_s0 = inlined_call_operand.vmem [shape: f32[4,256], index: 0, kind: input, shape index: {}]   ;;  %s10366_s1 = inlined_call_operand.vmem [shape: f32[2,24,2], index: 1, kind: input, shape index: {}]   ;;  %s10367_s2 = inlined_call_operand.vmem [shape: f32[2,24,1], index: 2, kind: input, shape index: {}]   ;;  %s10368_s3 = inlined_call_operand.vmem [shape: f32[4,48,48], index: 3, kind: input, shape index: {}]   ;;  %s10369_s4 = inlined_call_operand.vmem [shape: f32[4,48,1], index: 4, kind: input, shape index: {}]   ;;  %s10370_s5 = inlined_call_operand.vmem [shape: f32[4,48], index: 5, kind: input, shape index: {}]   ;;  %s10371_s6 = inlined_call_operand.vmem [shape: f32[4,1], index: 6, kind: input, shape index: {}]   ;;  %s10372_s7 = inlined_call_operand.hbm [shape: f32[4,256], index: 7, kind: output, shape index: {}]  }
   0x1   :  { %14 = vsyncpa [#allocation5 + $0x1], 0  ;;  %s7369_s24 = smov 0   ;;  %s7371_s25 = smov 0  }
   0x2   :  { %s7373_s26 = smov 0   ;;  %s7375_s27 = smov 0  }
   0x3 LB: > { %s7390_s28 = sadd.s32 4294967295, %s7315_s27   ;;  %s6540_s29 = sadd.s32 4294967294, %s7315_s27   ;;  %s7315_s27 = sphi %s7375_s27, %s10505_s27   ;;  %s7311_s26 = sphi %s7373_s26, %s10504_s26   ;;  %s7307_s25 = sphi %s7371_s25, %s10503_s25   ;;  %s7303_s24 = sphi %s7369_s24, %s10502_s24  }
   0x4   : > { %s7394_s30 = sadd.s32 1, %s7315_s27   ;;  %s179_s8 = sadd.s32 1, %s7311_s26 }
   0x5   : > { %s176_s9 = ssub.s32 %s7315_s27, %s7394_s30  ;;  %p189_p0 = scmp.ne.s32.totalorder %s7311_s26, %s7307_s25 }
   0x6   : > { %p177_p1 = scmp.eq.s32.totalorder %s176_s9, 0  ;;  %p190_p2 = scmp.eq.s32.totalorder %s7390_s28, 1 }
   0x7   : > { %p195_p3 = scmp.ne.s32.totalorder %s7307_s25, %s7303_s24  ;;  %p196_p4 = scmp.eq.s32.totalorder %s6540_s29, 1 }
   0x8   : > { %s7405_s10 = scalar_select %p177_p1, %s7311_s26, %s179_s8  }
   0x9   : > { %p7407_p5 = por %p190_p2, %p189_p0  ;;  %p7411_p6 = por %p196_p4, %p195_p3 }
   0xa   : > { %p6543_p7 = scmp.ge.s32.totalorder %s7315_s27, 1  ;;  %p239_p8 = scmp.lt.s32.totalorder %s7315_s27, 3 }
   0xc   : > { %p240_p9 = pnand %p6543_p7, %p239_p8 }
   0xe   : > { %243 = sbr.rel (%p240_p9) target bundleno = 2109 (0x83d), region = 48 }
  0x15   : > { %v6570_v0 = vld [vmem:[%s10366_s1 + $0x18] sm:$0xff]  ;;  %v275_v1 = vld [vmem:[%s10366_s1] sm:$0xff]  ;;  %v7317_v2 = vmov 1   ;;  %v7318_v3 = vmov 0   ;;  %v276_v4 = vld [vmem:[%s10366_s1 + $0x8] sm:$0xff]  ;;  %p270_p10 = scmp.lt.s32.totalorder %s7390_s28, 1  ;;  %v296_v27 = vlaneseq }
  0x16   : > { %7101 = vset.pattern.permute.xlu0 %v7317_v2  ;;  %7100 = vset.pattern.permute.xlu1 %v7318_v3  ;;  %v6574_v5 = vld [vmem:[%s10367_s2 + $0x20] sm:$0xff]  ;;  %v6573_v7 = vld [vmem:[%s10367_s2 + $0x18] sm:$0xff]  ;;  %v279_v8 = vld [vmem:[%s10367_s2 + $0x8] sm:$0xff]  ;;  %s267_s16 = sand.u32 1, %s7307_s25   ;;  %s6806_s18 = sshll.u32 %s7390_s28, 6 }
  0x17   : > { %1040 = vperm.xlu0 %7101, %v6570_v0   ;;  %283 = vperm.xlu1 %7100, %v275_v1   ;;  %v6571_v6 = vld [vmem:[%s10366_s1 + $0x20] sm:$0xff]  ;;  %v6572_v10 = vld [vmem:[%s10366_s1 + $0x28] sm:$0xff]  ;;  %v280_v12 = vld [vmem:[%s10367_s2 + $0x10] sm:$0xff]  ;;  %s271_s21 = scalar_select %p270_p10, %s7390_s28, 1  ;;  %v297_v30 = vshrl.u32 %v296_v27, 7 }
  0x18   : > { %v278_v9 = vld [vmem:[%s10367_s2] sm:$0xff]  ;;  %v6575_v11 = vld [vmem:[%s10367_s2 + $0x28] sm:$0xff]  ;;  %v277_v13 = vld [vmem:[%s10366_s1 + $0x10] sm:$0xff]  ;;  %s6544_s17 = sshll.u32 %s267_s16, 2  ;;  %s10323_s23 = scalar_lea.hbm %s10372_s7, %s6806_s18 }
  0x19   : > { %v1727_v14 = vld [vmem:[%s10369_s4] sm:$0xff]  ;;  %v1729_v15 = vld [vmem:[%s10369_s4 + $0x10] sm:$0xff]  ;;  %s6545_s22 = sshll.u32 %s271_s21, 2  ;;  %v1053_v31 = vsub.s32 3, %v297_v30  ;;  %v1016_v33 = vsub.s32 2, %v297_v30  ;;  %v298_v57 = vsub.s32 0, %v297_v30 }
  0x1a   : > { %v1731_v16 = vld [vmem:[%s10369_s4 + $0x20] sm:$0xff]  ;;  %v6660_v17 = vld [vmem:[%s10369_s4 + $0x30] sm:$0xff]  ;;  %s273_s8 = scalar_lea.vmem %s10365_s0, %s6545_s22  ;;  %v335_v59 = vsub.s32 1, %v297_v30  ;;  %s269_s19 = scalar_lea.vmem [#allocation4], %s6544_s17 }
  0x1b   : > { %7102 = vset.pattern.permute.xlu0 %v7318_v3  ;;  %288 = vperm.xlu1 %7100, %v276_v4   ;;  %v6662_v18 = vld [vmem:[%s10369_s4 + $0x40] sm:$0xff]  ;;  %v6664_v19 = vld [vmem:[%s10369_s4 + $0x50] sm:$0xff]  ;;  %s6481_s20 = sshll.u32 %s269_s19, 4  ;;  %s6468_s29 = scalar_lea.sflag [#allocation5], %s267_s16  ;;  %s10325_s20 = int_to_ptr.vmem [resolvable:$true] %s6481_s20 }
  0x1c   : > { %1001 = vperm.xlu0 %7102, %v6570_v0   ;;  %v6726_v20 = vld [vmem:[%s10369_s4 + $0x60] sm:$0xff]  ;;  %v6728_v21 = vld [vmem:[%s10369_s4 + $0x70] sm:$0xff]  ;;  %s7328_s28 = smov [#allocation4]  }
  0x1d   : > { %v6730_v22 = vld [vmem:[%s10369_s4 + $0x80] sm:$0xff]  ;;  %v6768_v23 = vld [vmem:[%s10369_s4 + $0x90] sm:$0xff]  ;;  %s7257_s9 = sshll.u32 %s7328_s28, 4  ;;  %s7258_s9 = int_to_ptr.vmem [resolvable:$false] %s7257_s9 }
  0x1e   : > { %v6770_v24 = vld [vmem:[%s10369_s4 + $0xa0] sm:$0xff]  ;;  %v6772_v25 = vld [vmem:[%s10369_s4 + $0xb0] sm:$0xff]  ;;  %s7259_s13 = scalar_lea.vmem %s7258_s9, 128  ;;  %p7260_p0 = scmp.lt.s32.totalorder %s10325_s20, %s7258_s9 }
  0x1f   : > { %1028 = vperm.xlu1 %7100, %v6574_v5   ;;  %v6387_v26 = vld [vmem:[%s10371_s6] sm:$0xf] }
  0x20   : > { %1006 = vperm.xlu0 %7102, %v6571_v6   ;;  %v274_v35 = vld [vmem:[%s273_s8] sm:$0xf]  ;;  %s7253_s8 = scalar_lea.vmem %s10325_s20, 64 }
  0x21   : > { %v1054_v36 = vrot.slane %v274_v35, %v1053_v31  ;;  %v1017_v37 = vrot.slane %v274_v35, %v1016_v33  ;;  %v7509_v63 = vrot.slane %v274_v35, %v298_v57  ;;  %v7511_v0 = vrot.slane %v274_v35, %v335_v59  ;;  %p7254_p11 = scmp.ne.s32.totalorder %s10325_s20, %s7253_s8  ;;  %p7261_p1 = scmp.lt.s32.totalorder %s7259_s13, %s7253_s8 }
  0x22   : > { %v10386_v31 = vmov 2131351028   ;;  %v10394_v33 = vmov 2102212464  }
  0x23   : > { %7103 = vset.pattern.permute.xlu1 %v7317_v2  ;;  %p7255_p12 = pnand %p7254_p11, %p7407_p5  ;;  %p7262_p2 = por %p7261_p1, %p7260_p0 }
  0x24   : > { %1023 = vperm.xlu0 %7102, %v6573_v7   ;;  %1044 = vperm.xlu1 %7103, %v6571_v6  }
  0x25   : > { %p7256_p13 = pneg %p7255_p12 }
  0x27   : > { %p7263_p3 = pnand %p7262_p2, %p7256_p13 }
  0x28   : > { %310 = vperm.xlu0 %7102, %v279_v8   ;;  %7104 = vset.pattern.permute.xlu1 %v7318_v3 }
  0x29   : > { %305 = vperm.xlu1 %7104, %v278_v9  }
  0x2c   : > { %1011 = vperm.xlu0 %7102, %v6572_v10  }
  0x2d   : > { %7105 = vset.pattern.permute.xlu1 %v7317_v2 }
  0x2e   : > { %322 = vperm.xlu1 %7105, %v275_v1  }
  0x30   : > { %1033 = vperm.xlu0 %7102, %v6575_v11  }
  0x32   : > { %326 = vperm.xlu1 %7105, %v276_v4  }
  0x34   : > { %315 = vperm.xlu0 %7102, %v280_v12  }
  0x36   : > { %7106 = vset.pattern.permute.xlu1 %v7318_v3 }
  0x37   : > { %293 = vperm.xlu1 %7106, %v277_v13  }
  0x38   : > { %1735 = vperm.xlu0 %7102, %v1727_v14  }
  0x3b   : > { %7107 = vset.pattern.permute.xlu1 %v7317_v2 }
  0x3c   : > { %1745 = vperm.xlu0 %7102, %v1729_v15   ;;  %1048 = vperm.xlu1 %7107, %v6572_v10  }
  0x40   : > { %1755 = vperm.xlu0 %7102, %v1731_v16   ;;  %330 = vperm.xlu1 %7107, %v277_v13  }
  0x44   : > { %3231 = vperm.xlu0 %7102, %v6660_v17   ;;  %7108 = vset.pattern.permute.xlu1 %v7318_v3 }
  0x48   : > { %3241 = vperm.xlu0 %7102, %v6662_v18  }
  0x4c   : > { %3251 = vperm.xlu0 %7102, %v6664_v19  }
  0x50   : > { %4756 = vperm.xlu0 %7102, %v6726_v20  }
  0x54   : > { %4766 = vperm.xlu0 %7102, %v6728_v21  }
  0x58   : > { %4776 = vperm.xlu0 %7102, %v6730_v22  }
  0x5c   : > { %5579 = vperm.xlu0 %7102, %v6768_v23  }
  0x60   : > { %5589 = vperm.xlu0 %7102, %v6770_v24   ;;  %v10402_v24 = vmov 920167782  }
  0x64   : > { %5599 = vperm.xlu0 %7102, %v6772_v25  }
  0x68   : > { %6390 = vperm.xlu0 %7102, %v6387_v26  }
  0x96   : > { %v284_v28 = vpop.permute.xlu1 %283  ;;  %v1041_v29 = vpop.permute.xlu0 %1040 }
  0x97   : > { %v1055_v41 = vmul.f32 %v1054_v36, %v1041_v29  ;;  %v300_v5 = vmul.f32 %v7509_v63, %v284_v28  ;;  %v10382_v29 = vmov 2475754826  }
  0x9a   : > { %v289_v32 = vpop.permute.xlu1 %288 }
  0x9b   : > { %v1002_v34 = vpop.permute.xlu0 %1001  ;;  %v301_v6 = vmul.f32 %v7509_v63, %v289_v32 }
  0x9c   : > { %v1018_v40 = vmul.f32 %v1017_v37, %v1002_v34 }
  0x9e   : > { %v1029_v38 = vpop.permute.xlu1 %1028 }
  0x9f   : > { %v1007_v39 = vpop.permute.xlu0 %1006 }
  0xa0   : > { %v1019_v42 = vmul.f32 %v1017_v37, %v1007_v39 }
  0xa2   : > { %v1037_v48 = vadd.f32 %v1029_v38, %v1019_v42 }
  0xa3   : > { %v1024_v43 = vpop.permute.xlu0 %1023  ;;  %v1045_v44 = vpop.permute.xlu1 %1044 }
  0xa4   : > { %v1036_v45 = vadd.f32 %v1024_v43, %v1018_v40  ;;  %v1056_v46 = vmul.f32 %v1054_v36, %v1045_v44 }
  0xa6   : > { %v7497_v47 = vadd.f32 %v1055_v41, %v1036_v45  ;;  %v7502_v51 = vadd.f32 %v1056_v46, %v1037_v48  ;;  %v10380_v41 = vmov 683565275  }
  0xa7   : > { %v311_v55 = vpop.permute.xlu0 %310 }
  0xa8   : > { %v7500_v49 = vmul.f32 30.0, %v7497_v47  ;;  %v306_v50 = vpop.permute.xlu1 %305  ;;  %v7506_v54 = vmul.f32 30.0, %v7502_v51  ;;  %v319_v10 = vadd.f32 %v311_v55, %v301_v6  ;;  %v1061_v22 = vmul.f32 -100.0, %v7497_v47 }
  0xa9   : > { %v318_v11 = vadd.f32 %v306_v50, %v300_v5  ;;  %v1062_v39 = vmul.f32 -100.0, %v7502_v51 }
  0xaa   : > { %v1079_v52 = vand.u32 2139095040, %v7500_v49  ;;  %v1182_v61 = vand.u32 2139095040, %v7506_v54  ;;  %v1076_v21 = vand.u32 2147483647, %v7500_v49  ;;  %v1064_v57 = vmul.f32 %v1061_v22, %v7497_v47 }
  0xab   : > { %v1012_v2 = vpop.permute.xlu0 %1011  ;;  %vm1078_vm14 = vcmp.lt.s32.totalorder %v7500_v49, 0 }
  0xac   : > { %v1080_v53 = vshrl.u32 %v1079_v52, 23  ;;  %v1183_v4 = vshrl.u32 %v1182_v61, 23  ;;  %v1020_v15 = vmul.f32 %v1017_v37, %v1012_v2  ;;  %v1083_v40 = vand.u32 8388607, %v1076_v21 }
  0xad   : > { %v323_v56 = vpop.permute.xlu1 %322 }
  0xae   : > { %v6576_v58 = vadd.s32 4294967169, %v1080_v53  ;;  %v337_v7 = vmul.f32 %v7511_v0, %v323_v56  ;;  %v6580_v13 = vadd.s32 4294967169, %v1183_v4 }
  0xaf   : > { %v1034_v14 = vpop.permute.xlu0 %1033 }
  0xb0   : > { %v1086_v60 = vadd.s32 1, %v6576_v58  ;;  %v7517_v16 = vadd.f32 %v337_v7, %v318_v11  ;;  %v1038_v19 = vadd.f32 %v1034_v14, %v1020_v15  ;;  %v1189_v23 = vadd.s32 1, %v6580_v13 }
  0xb1   : > { %v327_v62 = vpop.permute.xlu1 %326  ;;  %v1065_v58 = vmul.f32 %v1062_v39, %v7502_v51 }
  0xb2   : > { %vm1087_vm0 = vcmp.gt.s32.totalorder %v1086_v60, 0  ;;  %v338_v8 = vmul.f32 %v7511_v0, %v327_v62  ;;  %v7525_v26 = vmul.f32 30.0, %v7517_v16  ;;  %vm1190_vm1 = vcmp.gt.s32.totalorder %v1189_v23, 0 }
  0xb3   : > { %v1088_v1 = vsel %vm1087_vm0, %v1086_v60, 0  ;;  %v1191_v59 = vsel %vm1190_vm1, %v1189_v23, 0  ;;  %v1084_v60 = vor.u32 8388608, %v1083_v40  ;;  %v1067_v40 = vmul.f32 1.442695, %v1064_v57 }
  0xb4   : > { %v1090_v3 = vand.u32 31, %v1088_v1  ;;  %v7519_v17 = vadd.f32 %v338_v8, %v319_v10  ;;  %v7537_v38 = vshrl.u32 %v1088_v1, 5  ;;  %v361_v48 = vand.u32 2139095040, %v7525_v26 }
  0xb5   : > { %v1193_v4 = vand.u32 31, %v1191_v59  ;;  %v1179_v8 = vand.u32 2147483647, %v7506_v54  ;;  %v1124_v13 = vshll.u32 %v1084_v60, 8  ;;  %7109 = vpow2.f32 %v1067_v40 }
  0xb6   : > { %v294_v9 = vpop.permute.xlu1 %293  ;;  %v1091_v12 = vsub.s32 32, %v1090_v3  ;;  %v7528_v27 = vmul.f32 30.0, %v7519_v17  ;;  %v1102_v35 = vshll.u32 %v10394_v33, %v1090_v3  ;;  %v1093_v42 = vshll.u32 %v10380_v41, %v1090_v3 }
  0xb7   : > { %v1096_v43 = vshll.u32 %v10382_v29, %v1090_v3  ;;  %v1099_v44 = vshll.u32 %v10386_v31, %v1090_v3  ;;  %v1105_v46 = vshll.u32 %v10402_v24, %v1090_v3  ;;  %vm1111_vm2 = vcmp.lt.s32.totalorder %v7537_v38, 4 }
  0xb8   : > { %v1103_v25 = vshrl.u32 %v10402_v24, %v1091_v12  ;;  %v1094_v30 = vshrl.u32 %v10382_v29, %v1091_v12  ;;  %v1097_v32 = vshrl.u32 %v10386_v31, %v1091_v12  ;;  %v1100_v34 = vshrl.u32 %v10394_v33, %v1091_v12 }
  0xb9   : > { %v464_v50 = vand.u32 2139095040, %v7528_v27  ;;  %v362_v62 = vshrl.u32 %v361_v48, 23  ;;  %vm1108_vm3 = vcmp.lt.s32.totalorder %v7537_v38, 1  ;;  %vm1110_vm4 = vcmp.lt.s32.totalorder %v7537_v38, 3 }
  0xba   : > { %v1104_v45 = vor.u32 %v1103_v25, %v1102_v35  ;;  %v1095_v52 = vor.u32 %v1094_v30, %v1093_v42  ;;  %v1098_v53 = vor.u32 %v1097_v32, %v1096_v43  ;;  %v1101_v55 = vor.u32 %v1100_v34, %v1099_v44 }
  0xbb   : > { %v1049_v18 = vpop.permute.xlu1 %1048  ;;  %v465_v1 = vshrl.u32 %v464_v50, 23  ;;  %v302_v5 = vmul.f32 %v7509_v63, %v294_v9  ;;  %v1092_v10 = vshrl.u32 %v10380_v41, %v1091_v12  ;;  %vm1109_vm5 = vcmp.lt.s32.totalorder %v7537_v38, 2 }
  0xbc   : > { %v1057_v20 = vmul.f32 %v1054_v36, %v1049_v18  ;;  %v10400_v36 = vmov 1326507024   ;;  %v1117_v61 = vsel %vm1111_vm2, %v1104_v45, 920167782  ;;  %v1116_v2 = vsel %vm1108_vm3, %v1095_v52, %v1098_v53 }
  0xbd   : > { %v1106_v37 = vshrl.u32 %v10400_v36, %v1091_v12  ;;  %v1118_v47 = vsel %vm1110_vm4, %v1101_v55, %v1117_v61  ;;  %v1120_v51 = vsel %vm1108_vm3, %v1098_v53, %v1101_v55  ;;  %v6546_v14 = vadd.s32 4294967169, %v362_v62 }
  0xbe   : > { %v7530_v28 = vadd.f32 %v1057_v20, %v1038_v19  ;;  %v1113_v15 = vsel %vm1111_vm2, %v1101_v55, 2102212464  ;;  %v1119_v63 = vsel %vm1109_vm5, %v1116_v2, %v1118_v47  ;;  %v6550_v18 = vadd.s32 4294967169, %v465_v1  ;;  %v316_v19 = vpop.permute.xlu0 %315 }
  0xbf   : > { %v1107_v56 = vor.u32 %v1106_v37, %v1105_v46  ;;  %v331_v7 = vpop.permute.xlu1 %330  ;;  %v1194_v23 = vsub.s32 32, %v1193_v4  ;;  %v320_v25 = vadd.f32 %v316_v19, %v302_v5  ;;  %v1186_v32 = vand.u32 8388607, %v1179_v8 }
  0xc0   : > { %v7565_v6 = vmul.f32 30.0, %v7530_v28  ;;  %v339_v12 = vmul.f32 %v7511_v0, %v331_v7  ;;  %v1112_v34 = vsel %vm1108_vm3, %v1092_v10, %v1095_v52  ;;  %v1114_v35 = vsel %vm1110_vm4, %v1098_v53, %v1113_v15 }
  0xc1   : > { %v1121_v3 = vsel %vm1111_vm2, %v1107_v56, 1326507024  ;;  %v7589_v37 = vmul.u32.u64.low %v1124_v13, %v1119_v63  ;;  %v7590_v39 = vmul.u32.u64.high %v1124_v13, %v1119_v63, %v7589_v37  ;;  %v368_v0 = vadd.s32 1, %v6546_v14 }
  0xc2   : > { %v1122_v11 = vsel %vm1110_vm4, %v1104_v45, %v1121_v3  ;;  %v1285_v30 = vand.u32 2139095040, %v7565_v6  ;;  %v471_v42 = vadd.s32 1, %v6550_v18  ;;  %v7593_v43 = vadd.f32 %v339_v12, %v320_v25 }
  0xc3   : > { %v1123_v9 = vsel %vm1109_vm5, %v1120_v51, %v1122_v11  ;;  %v1069_v44 = vmul.f32 1.442695, %v1065_v58  ;;  %v1115_v46 = vsel %vm1109_vm5, %v1112_v34, %v1114_v35  ;;  %v1197_v48 = vshrl.u32 %v10382_v29, %v1194_v23 }
  0xc4   : > { %v7579_v20 = vmul.u32.u64.low %v1124_v13, %v1123_v9  ;;  %v7580_v22 = vmul.u32.u64.high %v1124_v13, %v1123_v9, %v7579_v20  ;;  %v1286_v45 = vshrl.u32 %v1285_v30, 23  ;;  %v1134_v50 = vadd.s32 1, %v7590_v39 }
  0xc5   : > { %v1187_v52 = vor.u32 8388608, %v1186_v32  ;;  %v1200_v53 = vshrl.u32 %v10386_v31, %v1194_v23  ;;  %v7602_v55 = vshrl.u32 %v1191_v59, 5  ;;  %vm369_vm7 = vcmp.gt.s32.totalorder %v368_v0, 0 }
  0xc6   : > { %vm1133_vm6 = vc.u32 %v7580_v22, %v7589_v37  ;;  %v1196_v56 = vshll.u32 %v10380_v41, %v1193_v4  ;;  %v1203_v57 = vshrl.u32 %v10394_v33, %v1194_v23  ;;  %vm472_vm8 = vcmp.gt.s32.totalorder %v471_v42, 0 }
  0xc7   : > { %v7607_v38 = vmul.f32 30.0, %v7593_v43  ;;  %v1131_v58 = vmul.u32 %v1124_v13, %v1115_v46  ;;  %v1199_v60 = vshll.u32 %v10382_v29, %v1193_v4  ;;  %v6584_v61 = vadd.s32 4294967169, %v1286_v45 }
  0xc8   : > { %v1135_v62 = vsel %vm1133_vm6, %v1134_v50, %v7590_v39  ;;  %v1198_v1 = vor.u32 %v1197_v48, %v1196_v56  ;;  %v1202_v2 = vshll.u32 %v10386_v31, %v1193_v4  ;;  %v1205_v51 = vshll.u32 %v10394_v33, %v1193_v4 }
  0xc9   : > { %v1136_v59 = vadd.s32 %v1135_v62, %v1131_v58  ;;  %v1201_v47 = vor.u32 %v1200_v53, %v1199_v60  ;;  %v1206_v3 = vshrl.u32 %v10402_v24, %v1194_v23  ;;  %v1208_v7 = vshll.u32 %v10402_v24, %v1193_v4 }
  0xca   : > { %v1204_v5 = vor.u32 %v1203_v57, %v1202_v2  ;;  %v1209_v10 = vshrl.u32 %v10400_v36, %v1194_v23  ;;  %v370_v11 = vsel %vm369_vm7, %v368_v0, 0  ;;  %v1227_v15 = vshll.u32 %v1187_v52, 8 }
  0xcb   : > { %v1137_v13 = vadd.s32 536870912, %v1136_v59  ;;  %v1207_v14 = vor.u32 %v1206_v3, %v1205_v51  ;;  %v473_v63 = vsel %vm472_vm8, %v471_v42, 0  ;;  %v567_v9 = vand.u32 2139095040, %v7607_v38 }
  0xcc   : > { %v1210_v18 = vor.u32 %v1209_v10, %v1208_v7  ;;  %vm1211_vm9 = vcmp.lt.s32.totalorder %v7602_v55, 1  ;;  %v1292_v19 = vadd.s32 1, %v6584_v61  ;;  %vm1214_vm10 = vcmp.lt.s32.totalorder %v7602_v55, 4  ;;  %v7655_v61 = vpop.eup %7109 }
  0xcd   : > { %v7620_v12 = vshrl.u32 %v1137_v13, 30  ;;  %v1219_v4 = vsel %vm1211_vm9, %v1198_v1, %v1201_v47  ;;  %vm1213_vm11 = vcmp.lt.s32.totalorder %v7602_v55, 3  ;;  %v1220_v20 = vsel %vm1214_vm10, %v1207_v14, 920167782 }
  0xce   : > { %v1223_v25 = vsel %vm1211_vm9, %v1201_v47, %v1204_v5  ;;  %v1224_v30 = vsel %vm1214_vm10, %v1210_v18, 1326507024  ;;  %vm1212_vm12 = vcmp.lt.s32.totalorder %v7602_v55, 2  ;;  %v1216_v34 = vsel %vm1214_vm10, %v1204_v5, 2102212464 }
  0xcf   : > { %v1139_v32 = vshll.u32 %v7620_v12, 30  ;;  %v1221_v35 = vsel %vm1213_vm11, %v1204_v5, %v1220_v20  ;;  %v568_v39 = vshrl.u32 %v567_v9, 23  ;;  %v1195_v0 = vshrl.u32 %v10380_v41, %v1194_v23 }
  0xd0   : > { %v1222_v40 = vsel %vm1212_vm12, %v1219_v4, %v1221_v35  ;;  %v1225_v42 = vsel %vm1213_vm11, %v1207_v14, %v1224_v30  ;;  %v372_v45 = vand.u32 31, %v370_v11  ;;  %vm1293_vm13 = vcmp.gt.s32.totalorder %v1292_v19, 0 }
  0xd1   : > { %v7637_v46 = vsub.s32 %v1136_v59, %v1139_v32  ;;  %v1226_v48 = vsel %vm1212_vm12, %v1223_v25, %v1225_v42  ;;  %v1215_v50 = vsel %vm1211_vm9, %v1195_v0, %v1198_v1  ;;  %v1217_v52 = vsel %vm1213_vm11, %v1201_v47, %v1216_v34 }
  0xd2   : > { %v7645_v23 = vmul.u32.u64.low %v1227_v15, %v1226_v48  ;;  %v7646_v53 = vmul.u32.u64.high %v1227_v15, %v1226_v48, %v7645_v23  ;;  %v7648_v56 = vand.u32 31, %v473_v63  ;;  %7111 = vpow2.f32 %v1069_v44 }
  0xd3   : > { %v1142_v57 = vsub.s32 0, %v7637_v46  ;;  %v7651_v58 = vmul.u32.u64.low %v1227_v15, %v1222_v40  ;;  %v7652_v60 = vmul.u32.u64.high %v1227_v15, %v1222_v40, %v7651_v58  ;;  %v7657_v62 = vsel %vm1293_vm13, %v1292_v19, 0 }
  0xd4   : > { %v6554_v1 = vadd.s32 4294967169, %v568_v39  ;;  %v7659_v2 = vsub.s32 32, %v372_v45  ;;  %v1218_v47 = vsel %vm1212_vm12, %v1215_v50, %v1217_v52  ;;  %v10374_v51 = vand.u32 2147483647, %v7525_v26 }
  0xd5   : > { %v6577_v59 = vmin.u32 %v1142_v57, %v7637_v46  ;;  %v7666_v3 = vmul.f32 -100.0, %v7517_v16  ;;  %v7668_v5 = vshrl.u32 %v370_v11, 5  ;;  %v7670_v7 = vshrl.u32 %v473_v63, 5 }
  0xd6   : > { %vm1236_vm15 = vc.u32 %v7646_v53, %v7651_v58  ;;  %v7676_v44 = vsub.s32 32, %v7648_v56  ;;  %v7679_v55 = vand.u32 31, %v7657_v62  ;;  %v1237_v13 = vadd.s32 1, %v7652_v60 }
  0xd7   : > { %v1144_v10 = vclz %v6577_v59  ;;  %v7682_v14 = vadd.s32 1, %v6554_v1  ;;  %v1132_v11 = vadd.s32 %v7589_v37, %v7580_v22  ;;  %v1162_v63 = vsub.s32 4, %v7620_v12 }
  0xd8   : > { %v1234_v9 = vmul.u32 %v1227_v15, %v1218_v47  ;;  %v1238_v19 = vsel %vm1236_vm15, %v1237_v13, %v7652_v60  ;;  %v365_v4 = vand.u32 8388607, %v10374_v51  ;;  %v376_v20 = vshrl.u32 %v10382_v29, %v7659_v2 }
  0xd9   : > { %v6578_v18 = vadd.s32 4294967294, %v1144_v10  ;;  %v375_v30 = vshll.u32 %v10380_v41, %v372_v45  ;;  %v379_v32 = vshrl.u32 %v10386_v31, %v7659_v2  ;;  %v382_v22 = vshrl.u32 %v10394_v33, %v7659_v2 }
  0xda   : > { %v1239_v25 = vadd.s32 %v1238_v19, %v1234_v9  ;;  %vm7699_vm0 = vcmp.le.f32.partialorder %v1076_v21, 0.7853982  ;;  %v378_v15 = vshll.u32 %v10382_v29, %v372_v45  ;;  %v384_v34 = vshll.u32 %v10394_v33, %v372_v45 }
  0xdb   : > { %vm6579_vm1 = vcmp.lt.s32.totalorder %v6578_v18, 0  ;;  %v385_v35 = vshrl.u32 %v10402_v24, %v7659_v2  ;;  %v381_v40 = vshll.u32 %v10386_v31, %v372_v45  ;;  %v388_v42 = vshrl.u32 %v10400_v36, %v7659_v2 }
  0xdc   : > { %v1147_v39 = vsel %vm6579_vm1, 0, %v6578_v18  ;;  %v1240_v0 = vadd.s32 536870912, %v1239_v25  ;;  %v377_v50 = vor.u32 %v376_v20, %v375_v30  ;;  %v7710_v23 = vpop.eup %7111  ;;  %v380_v60 = vor.u32 %v379_v32, %v378_v15 }
  0xdd   : > { %v1148_v48 = vsub.s32 32, %v1147_v39  ;;  %v1152_v21 = vsub.s32 4294967266, %v1147_v39  ;;  %v386_v52 = vor.u32 %v385_v35, %v384_v34  ;;  %v383_v1 = vor.u32 %v382_v22, %v381_v40 }
  0xde   : > { %v7712_v57 = vshrl.u32 %v1240_v0, 30  ;;  %v387_v59 = vshll.u32 %v10402_v24, %v372_v45  ;;  %v1149_v47 = vshll.u32 %v7637_v46, %v1147_v39  ;;  %v1163_v9 = vsel %vm1078_vm14, %v1162_v63, %v7620_v12 }
  0xdf   : > { %v1150_v10 = vshrl.u32 %v1132_v11, %v1148_v48  ;;  %v1153_v13 = vadd.s32 127, %v1152_v21  ;;  %vm390_vm2 = vcmp.lt.s32.totalorder %v7668_v5, 1  ;;  %vm393_vm3 = vcmp.lt.s32.totalorder %v7668_v5, 4 }
  0xe0   : > { %v1242_v18 = vshll.u32 %v7712_v57, 30  ;;  %v389_v19 = vor.u32 %v388_v42, %v387_v59  ;;  %vm392_vm4 = vcmp.lt.s32.totalorder %v7668_v5, 3  ;;  %v399_v45 = vsel %vm393_vm3, %v386_v52, 920167782 }
  0xe1   : > { %v1151_v20 = vor.u32 %v1150_v10, %v1149_v47  ;;  %v1154_v30 = vshll.u32 %v1153_v13, 23  ;;  %v366_v11 = vor.u32 8388608, %v365_v4  ;;  %v398_v12 = vsel %vm390_vm2, %v377_v50, %v380_v60 }
  0xe2   : > { %v7725_v46 = vsub.s32 %v1239_v25, %v1242_v18  ;;  %v400_v63 = vsel %vm392_vm4, %v383_v1, %v399_v45  ;;  %v7732_v32 = vshrl.u32 %v7657_v62, 5  ;;  %v7735_v22 = vsub.s32 32, %v7679_v55 }
  0xe3   : > { %v7739_v15 = vshll.u32 %v10394_v33, %v7679_v55  ;;  %v1155_v34 = vor.u32 4788187, %v1154_v30  ;;  %v1158_v25 = vcvt.s32.f32 %v1151_v20  ;;  %v1165_v4 = vsel %vm7699_vm0, 0, %v1163_v9 }
  0xe4   : > { %vm1181_vm5 = vcmp.lt.s32.totalorder %v7506_v54, 0  ;;  %v1245_v35 = vsub.s32 0, %v7725_v46  ;;  %vm391_vm6 = vcmp.lt.s32.totalorder %v7668_v5, 2  ;;  %v402_v0 = vsel %vm390_vm2, %v380_v60, %v383_v1 }
  0xe5   : > { %v1156_v62 = vand.u32 2147483647, %v1155_v34  ;;  %v401_v39 = vsel %vm391_vm6, %v398_v12, %v400_v63  ;;  %v403_v40 = vsel %vm393_vm3, %v389_v19, 1326507024  ;;  %vm575_vm7 = vcmp.gt.s32.totalorder %v7682_v14, 0 }
  0xe6   : > { %v6581_v42 = vmin.u32 %v1245_v35, %v7725_v46  ;;  %v395_v48 = vsel %vm393_vm3, %v383_v1, 2102212464  ;;  %v406_v21 = vshll.u32 %v366_v11, 8  ;;  %v1484_v47 = vadd.s32 3, %v1165_v4 }
  0xe7   : > { %v1159_v59 = vmul.f32 %v1158_v25, %v1156_v62  ;;  %v374_v10 = vshrl.u32 %v10380_v41, %v7659_v2  ;;  %v404_v13 = vsel %vm392_vm4, %v386_v52, %v403_v40  ;;  %vm7762_vm8 = vcmp.le.f32.partialorder %v1179_v8, 0.7853982 }
  0xe8   : > { %v1247_v18 = vclz %v6581_v42  ;;  %v405_v19 = vsel %vm391_vm6, %v402_v0, %v404_v13  ;;  %v7768_v1 = vmul.u32.u64.low %v406_v21, %v401_v39  ;;  %v7769_v20 = vmul.u32.u64.high %v406_v21, %v401_v39, %v7768_v1 }
  0xe9   : > { %v1160_v30 = vxor.u32 2147483648, %v1159_v59  ;;  %v1265_v2 = vsub.s32 4, %v7712_v57  ;;  %v394_v52 = vsel %vm390_vm2, %v374_v10, %v377_v50  ;;  %v396_v8 = vsel %vm392_vm4, %v380_v60, %v395_v48 }
  0xea   : > { %v7779_v45 = vshll.u32 %v10402_v24, %v7679_v55  ;;  %v6582_v11 = vadd.s32 4294967294, %v1247_v18  ;;  %v7781_v12 = vmul.u32.u64.low %v406_v21, %v405_v19  ;;  %v7782_v63 = vmul.u32.u64.high %v406_v21, %v405_v19, %v7781_v12 }
  0xeb   : > { %v7786_v34 = vshrl.u32 %v10402_v24, %v7735_v22  ;;  %v7791_v25 = vsel %vm575_vm7, %v7682_v14, 0  ;;  %v1161_v50 = vsel %vm1078_vm14, %v1160_v30, %v1159_v59  ;;  %v1235_v60 = vadd.s32 %v7651_v58, %v7646_v53 }
  0xec   : > { %v1164_v35 = vsel %vm7699_vm0, %v7500_v49, %v1161_v50  ;;  %vm6583_vm9 = vcmp.lt.s32.totalorder %v6582_v11, 0  ;;  %v397_v62 = vsel %vm391_vm6, %v394_v52, %v396_v8  ;;  %v416_v39 = vadd.s32 1, %v7769_v20 }
  0xed   : > { %7113 = vcosq.f32 %v1164_v35  ;;  %v1250_v0 = vsel %vm6583_vm9, 0, %v6582_v11  ;;  %v1266_v14 = vsel %vm1181_vm5, %v1265_v2, %v7712_v57  ;;  %v7806_v40 = vand.u32 3, %v1484_v47 }
  0xee   : > { %7115 = vsinq.f32 %v1164_v35  ;;  %v1251_v53 = vsub.s32 32, %v1250_v0  ;;  %v1255_v58 = vsub.s32 4294967266, %v1250_v0  ;;  %v10373_v37 = vand.u32 2147483647, %v7528_v27 }
  0xef   : > { %v7811_v42 = vshrl.u32 %v10400_v36, %v7735_v22  ;;  %v7814_v5 = vand.u32 31, %v7791_v25  ;;  %v413_v48 = vmul.u32 %v406_v21, %v397_v62  ;;  %vm415_vm10 = vc.u32 %v7782_v63, %v7768_v1 }
  0xf0   : > { %v1252_v57 = vshll.u32 %v7725_v46, %v1250_v0  ;;  %v1253_v59 = vshrl.u32 %v1235_v60, %v1251_v53  ;;  %v1256_v47 = vadd.s32 127, %v1255_v58  ;;  %v417_v10 = vsel %vm415_vm10, %v416_v39, %v7769_v20 }
  0xf1   : > { %v7820_v13 = vand.u32 3, %v1165_v4  ;;  %v1268_v18 = vsel %vm7762_vm8, 0, %v1266_v14  ;;  %vm1490_vm11 = vcmp.eq.s32.totalorder %v7806_v40, 2  ;;  %v418_v19 = vadd.s32 %v417_v10, %v413_v48 }
  0xf2   : > { %v1254_v30 = vor.u32 %v1253_v59, %v1252_v57  ;;  %v1257_v2 = vshll.u32 %v1256_v47, 23  ;;  %vm1487_vm12 = vcmp.eq.s32.totalorder %v7806_v40, 0  ;;  %v7828_v21 = vand.u32 8388607, %v10373_v37 }
  0xf3   : > { %v488_v46 = vshrl.u32 %v10402_v24, %v7676_v44  ;;  %vm1486_vm13 = vcmp.lt.s32.totalorder %v7806_v40, 2  ;;  %v419_v4 = vadd.s32 536870912, %v418_v19  ;;  %v479_v20 = vshrl.u32 %v10382_v29, %v7676_v44 }
  0xf4   : > { %v485_v52 = vshrl.u32 %v10394_v33, %v7676_v44  ;;  %v487_v8 = vshll.u32 %v10394_v33, %v7648_v56  ;;  %vm1168_vm14 = vweird.f32 %v7500_v49  ;;  %v1258_v11 = vor.u32 4788187, %v1257_v2 }
  0xf5   : > { %v7840_v12 = vand.u32 3, %v1268_v18  ;;  %v477_v50 = vshrl.u32 %v10380_v41, %v7676_v44  ;;  %v482_v60 = vshrl.u32 %v10386_v31, %v7676_v44  ;;  %v7846_v35 = vshrl.u32 %v419_v4, 30 }
  0xf6   : > { %v478_v62 = vshll.u32 %v10380_v41, %v7648_v56  ;;  %v484_v39 = vshll.u32 %v10386_v31, %v7648_v56  ;;  %v489_v0 = vor.u32 %v488_v46, %v487_v8  ;;  %vm1174_vm15 = vcmp.eq.s32.totalorder %v7820_v13, 2 }
  0xf7   : > { %v1259_v14 = vand.u32 2147483647, %v1258_v11  ;;  %v1261_v53 = vcvt.s32.f32 %v1254_v30  ;;  %v469_v58 = vor.u32 8388608, %v7828_v21  ;;  %v481_v48 = vshll.u32 %v10382_v29, %v7648_v56  ;;  %v7114_v57 = vpop.eup %7113 }
  0xf8   : > { %vm1171_vm0 = vcmp.eq.s32.totalorder %v7820_v13, 0  ;;  %v421_v59 = vshll.u32 %v7846_v35, 30  ;;  %v480_v47 = vor.u32 %v479_v20, %v478_v62  ;;  %v486_v10 = vor.u32 %v485_v52, %v484_v39  ;;  %v7116_v46 = vpop.eup %7115 }
  0xf9   : > { %v491_v2 = vshrl.u32 %v10400_v36, %v7676_v44  ;;  %v1175_v4 = vxor.u32 2147483648, %v7114_v57  ;;  %v1262_v8 = vmul.f32 %v1261_v53, %v1259_v14  ;;  %v483_v11 = vor.u32 %v482_v60, %v481_v48 }
  0xfa   : > { %vm496_vm1 = vcmp.lt.s32.totalorder %v7670_v7, 4  ;;  %v1172_v30 = vxor.u32 2147483648, %v7116_v46  ;;  %v7861_v21 = vsub.s32 %v418_v19, %v421_v59  ;;  %v490_v37 = vshll.u32 %v10402_v24, %v7648_v56 }
  0xfb   : > { %v502_v51 = vsel %vm496_vm1, %v489_v0, 920167782  ;;  %v1263_v20 = vxor.u32 2147483648, %v1262_v8  ;;  %v1492_v52 = vsel %vm1490_vm11, %v1175_v4, %v7116_v46  ;;  %vm493_vm2 = vcmp.lt.s32.totalorder %v7670_v7, 1 }
  0xfc   : > { %vm495_vm3 = vcmp.lt.s32.totalorder %v7670_v7, 3  ;;  %v1489_v44 = vsel %vm1487_vm12, %v7114_v57, %v1172_v30  ;;  %v424_v19 = vsub.s32 0, %v7861_v21  ;;  %v492_v60 = vor.u32 %v491_v2, %v490_v37 }
  0xfd   : > { %v498_v56 = vsel %vm496_vm1, %v486_v10, 2102212464  ;;  %v1264_v62 = vsel %vm1181_vm5, %v1263_v20, %v1262_v8  ;;  %v1493_v39 = vsel %vm1486_vm13, %v1489_v44, %v1492_v52  ;;  %v501_v14 = vsel %vm493_vm2, %v480_v47, %v483_v11 }
  0xfe   : > { %v503_v53 = vsel %vm495_vm3, %v486_v10, %v502_v51  ;;  %v1267_v48 = vsel %vm7762_vm8, %v7506_v54, %v1264_v62  ;;  %v7889_v37 = vsel %vm1168_vm14, nan, %v1493_v39  ;;  %v1588_v59 = vadd.s32 3, %v1268_v18 }
  0xff   : > { %v6547_v2 = vmin.u32 %v424_v19, %v7861_v21  ;;  %7117 = vcosq.f32 %v1267_v48  ;;  %vm494_vm4 = vcmp.lt.s32.totalorder %v7670_v7, 2  ;;  %v497_v40 = vsel %vm493_vm2, %v477_v50, %v480_v47 }
 0x100   : > { %v499_v51 = vsel %vm495_vm3, %v483_v11, %v498_v56  ;;  %v1176_v9 = vsel %vm1174_vm15, %v1175_v4, %v7116_v46  ;;  %7119 = vsinq.f32 %v1267_v48  ;;  %v504_v20 = vsel %vm494_vm4, %v501_v14, %v503_v53 }
 0x101   : > { %v426_v8 = vclz %v6547_v2  ;;  %v1173_v18 = vsel %vm1171_vm0, %v7114_v57, %v1172_v30  ;;  %v505_v52 = vsel %vm493_vm2, %v483_v11, %v486_v10  ;;  %v506_v50 = vsel %vm496_vm1, %v492_v60, 1326507024 }
 0x102   : > { %v509_v47 = vshll.u32 %v469_v58, 8  ;;  %v7909_v44 = vor.u32 %v7786_v34, %v7739_v15  ;;  %vm1170_vm5 = vcmp.lt.s32.totalorder %v7820_v13, 2  ;;  %v507_v4 = vsel %vm495_vm3, %v489_v0, %v506_v50 }
 0x103   : > { %v6548_v46 = vadd.s32 4294967294, %v426_v8  ;;  %v500_v57 = vsel %vm494_vm4, %v497_v40, %v499_v51  ;;  %v508_v10 = vsel %vm494_vm4, %v505_v52, %v507_v4  ;;  %v1177_v58 = vsel %vm1170_vm5, %v1173_v18, %v1176_v9  ;;  %v1728_v52 = vld [vmem:[%s10369_s4 + $0x8] sm:$0xff] }
 0x104   : > { %v7918_v11 = vmul.u32.u64.low %v509_v47, %v504_v20  ;;  %v7919_v30 = vmul.u32.u64.high %v509_v47, %v504_v20, %v7918_v11  ;;  %v7922_v15 = vmul.u32.u64.low %v509_v47, %v508_v10  ;;  %v7923_v34 = vmul.u32.u64.high %v509_v47, %v508_v10, %v7922_v15  ;;  %1740 = vperm.xlu1 %7108, %v1728_v52  }
 0x105   : > { %vm6549_vm6 = vcmp.lt.s32.totalorder %v6548_v46, 0  ;;  %v1313_v13 = vor.u32 %v7811_v42, %v7779_v45  ;;  %vm1273_vm7 = vcmp.lt.s32.totalorder %v7840_v12, 2  ;;  %v1589_v0 = vand.u32 3, %v1588_v59  ;;  %v1730_v15 = vld [vmem:[%s10369_s4 + $0x18] sm:$0xff] }
 0x106   : > { %v429_v19 = vsel %vm6549_vm6, 0, %v6548_v46  ;;  %vm1271_vm8 = vweird.f32 %v7506_v54  ;;  %vm1274_vm9 = vcmp.eq.s32.totalorder %v7840_v12, 0  ;;  %v414_v7 = vadd.s32 %v7768_v1, %v7782_v63 }
 0x107   : > { %v430_v60 = vsub.s32 32, %v429_v19  ;;  %v434_v56 = vsub.s32 4294967266, %v429_v19  ;;  %v1178_v62 = vsel %vm1168_vm14, nan, %v1177_v58  ;;  %vm1277_vm10 = vcmp.eq.s32.totalorder %v7840_v12, 2 }
 0x108   : > { %v516_v39 = vmul.u32 %v509_v47, %v500_v57  ;;  %v519_v14 = vadd.s32 1, %v7919_v30  ;;  %v431_v53 = vshll.u32 %v7861_v21, %v429_v19  ;;  %vm518_vm11 = vc.u32 %v7923_v34, %v7918_v11  ;;  %1750 = vperm.xlu1 %7108, %v1730_v15  }
 0x109   : > { %v432_v48 = vshrl.u32 %v414_v7, %v430_v60  ;;  %v435_v59 = vadd.s32 127, %v434_v56  ;;  %v7118_v2 = vpop.eup %7117  ;;  %vm1590_vm12 = vcmp.lt.s32.totalorder %v1589_v0, 2  ;;  %vm1591_vm13 = vcmp.eq.s32.totalorder %v1589_v0, 0 }
 0x10a   : > { %vm1594_vm15 = vcmp.eq.s32.totalorder %v1589_v0, 2  ;;  %v520_v1 = vsel %vm518_vm11, %v519_v14, %v7919_v30  ;;  %v7120_v49 = vpop.eup %7119  ;;  %v1278_v63 = vxor.u32 2147483648, %v7118_v2  ;;  %v1385_v20 = vmul.f32 %v7655_v61, %v1178_v62 }
 0x10b   : > { %v433_v40 = vor.u32 %v432_v48, %v431_v53  ;;  %v436_v51 = vshll.u32 %v435_v59, 23  ;;  %v521_v9 = vadd.s32 %v520_v1, %v516_v39  ;;  %v1275_v8 = vxor.u32 2147483648, %v7120_v49  ;;  %v1732_v1 = vld [vmem:[%s10369_s4 + $0x28] sm:$0xff] }
 0x10c   : > { %v1282_v21 = vand.u32 2147483647, %v7565_v6  ;;  %v1299_v18 = vshll.u32 %v10380_v41, %v7679_v55  ;;  %v1279_v50 = vsel %vm1277_vm10, %v1278_v63, %v7120_v49  ;;  %v1596_v47 = vsel %vm1594_vm15, %v1278_v63, %v7120_v49  ;;  %1760 = vperm.xlu1 %7108, %v1732_v1  }
 0x10d   : > { %v437_v46 = vor.u32 4788187, %v436_v51  ;;  %v1300_v4 = vshrl.u32 %v10382_v29, %v7735_v22  ;;  %v1276_v57 = vsel %vm1274_vm9, %v7118_v2, %v1275_v8  ;;  %v1593_v10 = vsel %vm1591_vm13, %v7118_v2, %v1275_v8 }
 0x10e   : > { %v522_v30 = vadd.s32 536870912, %v521_v9  ;;  %v1303_v58 = vshrl.u32 %v10386_v31, %v7735_v22  ;;  %v1280_v19 = vsel %vm1273_vm7, %v1276_v57, %v1279_v50  ;;  %v1597_v7 = vsel %vm1590_vm12, %v1593_v10, %v1596_v47 }
 0x10f   : > { %v438_v60 = vand.u32 2147483647, %v437_v46  ;;  %v440_v56 = vcvt.s32.f32 %v433_v40  ;;  %v1281_v62 = vsel %vm1271_vm8, nan, %v1280_v19  ;;  %v7966_v39 = vsel %vm1271_vm8, nan, %v1597_v7 }
 0x110   : > { %v7968_v14 = vshrl.u32 %v522_v30, 30  ;;  %v1306_v53 = vshrl.u32 %v10394_v33, %v7735_v22  ;;  %v1386_v48 = vmul.f32 %v7710_v23, %v1281_v62  ;;  %v1302_v0 = vshll.u32 %v10382_v29, %v7679_v55 }
 0x111   : > { %v441_v12 = vmul.f32 %v440_v56, %v438_v60  ;;  %v1305_v59 = vshll.u32 %v10386_v31, %v7679_v55  ;;  %vm1317_vm14 = vcmp.lt.s32.totalorder %v7732_v32, 4  ;;  %v1289_v2 = vand.u32 8388607, %v1282_v21  ;;  %v6663_v56 = vld [vmem:[%s10369_s4 + $0x48] sm:$0xff] }
 0x112   : > { %v524_v54 = vshll.u32 %v7968_v14, 30  ;;  %v6897_v49 = vpack.c.bf16 %v1386_v48, %v1385_v20  ;;  %v1301_v63 = vor.u32 %v1300_v4, %v1299_v18  ;;  %v1304_v40 = vor.u32 %v1303_v58, %v1302_v0 }
 0x113   : > { %v1307_v51 = vor.u32 %v1306_v53, %v1305_v59  ;;  %v1323_v55 = vsel %vm1317_vm14, %v7909_v44, 920167782  ;;  %v1327_v8 = vsel %vm1317_vm14, %v1313_v13, 1326507024  ;;  %v7996_v50 = vmul.f32 %v7666_v3, %v7517_v16  ;;  %v6661_v16 = vld [vmem:[%s10369_s4 + $0x38] sm:$0xff] }
 0x114   : > { %v7992_v52 = vsub.s32 %v521_v9, %v524_v54  ;;  %v7999_v20 = vmul.f32 -100.0, %v7519_v17  ;;  %v8002_v18 = vsub.s32 32, %v7814_v5  ;;  %6898 = vmatprep.subr.bf16.mxu0 %v6897_v49  ;;  %v442_v47 = vxor.u32 2147483648, %v441_v12  ;;  %3236 = vperm.xlu1 %7108, %v6661_v16  }
 0x115   : > { %v1290_v42 = vor.u32 8388608, %v1289_v2  ;;  %vm1314_vm0 = vcmp.lt.s32.totalorder %v7732_v32, 1  ;;  %vm1316_vm1 = vcmp.lt.s32.totalorder %v7732_v32, 3  ;;  %vm360_vm2 = vcmp.lt.s32.totalorder %v7525_v26, 0 }
 0x116   : > { %v527_v45 = vsub.s32 0, %v7992_v52  ;;  %v1322_v3 = vsel %vm1314_vm0, %v1301_v63, %v1304_v40  ;;  %v1324_v13 = vsel %vm1316_vm1, %v1307_v51, %v1323_v55  ;;  %v1326_v9 = vsel %vm1314_vm0, %v1304_v40, %v1307_v51  ;;  %v6665_v55 = vld [vmem:[%s10369_s4 + $0x58] sm:$0xff] }
 0x117   : > { %v1328_v46 = vsel %vm1316_vm1, %v7909_v44, %v1327_v8  ;;  %vm1315_vm3 = vcmp.lt.s32.totalorder %v7732_v32, 2  ;;  %v1319_v57 = vsel %vm1317_vm14, %v1307_v51, 2102212464  ;;  %v591_v10 = vshrl.u32 %v10402_v24, %v8002_v18 }
 0x118   : > { %v6551_v4 = vmin.u32 %v527_v45, %v7992_v52  ;;  %v443_v30 = vsel %vm360_vm2, %v442_v47, %v441_v12  ;;  %v1298_v58 = vshrl.u32 %v10380_v41, %v7735_v22  ;;  %v1329_v44 = vsel %vm1315_vm3, %v1326_v9, %v1328_v46  ;;  %3246 = vperm.xlu1 %7108, %v6663_v56  }
 0x119   : > { %v1325_v19 = vsel %vm1315_vm3, %v1322_v3, %v1324_v13  ;;  %v1330_v7 = vshll.u32 %v1290_v42, 8  ;;  %v8036_v60 = vmul.f32 %v7655_v61, %v7889_v37  ;;  %v590_v22 = vshll.u32 %v10394_v33, %v7814_v5 }
 0x11a   : > { %v529_v15 = vclz %v6551_v4  ;;  %v594_v62 = vshrl.u32 %v10400_v36, %v8002_v18  ;;  %v1318_v53 = vsel %vm1314_vm0, %v1298_v58, %v1301_v63  ;;  %v1320_v48 = vsel %vm1316_vm1, %v1304_v40, %v1319_v57 }
 0x11b   : > { %v10414_v12 = vand.u32 2147483647, %v7525_v26  ;;  %v8055_v0 = vmul.u32.u64.low %v1330_v7, %v1329_v44  ;;  %v8056_v59 = vmul.u32.u64.high %v1330_v7, %v1329_v44, %v8055_v0  ;;  %v593_v54 = vshll.u32 %v10402_v24, %v7814_v5 }
 0x11c   : > { %v6552_v37 = vadd.s32 4294967294, %v529_v15  ;;  %v8063_v1 = vmul.u32.u64.low %v1330_v7, %v1325_v19  ;;  %v8064_v49 = vmul.u32.u64.high %v1330_v7, %v1325_v19, %v8063_v1  ;;  %v8068_v63 = vshrl.u32 %v7791_v25, 5  ;;  %3256 = vperm.xlu1 %7108, %v6665_v55  }
 0x11d   : > { %vm8051_vm4 = vcmp.le.f32.partialorder %v10414_v12, 0.7853982  ;;  %v8070_v40 = vor.u32 %v591_v10, %v590_v22  ;;  %v1321_v51 = vsel %vm1315_vm3, %v1318_v53, %v1320_v48  ;;  %v595_v8 = vor.u32 %v594_v62, %v593_v54 }
 0x11e   : > { %v446_v2 = vsel %vm8051_vm4, %v7525_v26, %v443_v30  ;;  %vm6553_vm5 = vcmp.lt.s32.totalorder %v6552_v37, 0  ;;  %v444_v47 = vsub.s32 4, %v7846_v35  ;;  %v564_v42 = vand.u32 2147483647, %v7607_v38 }
 0x11f   : > { %v532_v45 = vsel %vm6553_vm5, 0, %v6552_v37  ;;  %7121 = vcosq.f32 %v446_v2  ;;  %v517_v25 = vadd.s32 %v7918_v11, %v7923_v34  ;;  %v1337_v13 = vmul.u32 %v1330_v7, %v1321_v51  ;;  %v6727_v11 = vld [vmem:[%s10369_s4 + $0x68] sm:$0xff]  ;;  %v6729_v37 = vld [vmem:[%s10369_s4 + $0x78] sm:$0xff] }
 0x120   : > { %v533_v16 = vsub.s32 32, %v532_v45  ;;  %v537_v3 = vsub.s32 4294967266, %v532_v45  ;;  %vm1339_vm6 = vc.u32 %v8056_v59, %v8063_v1  ;;  %v1340_v32 = vadd.s32 1, %v8064_v49  ;;  %4761 = vperm.xlu1 %7108, %v6727_v11  }
 0x121   : > { %v582_v9 = vshrl.u32 %v10382_v29, %v8002_v18  ;;  %v534_v46 = vshll.u32 %v7992_v52, %v532_v45  ;;  %v585_v10 = vshrl.u32 %v10386_v31, %v8002_v18  ;;  %v571_v30 = vand.u32 8388607, %v564_v42 }
 0x122   : > { %v535_v4 = vshrl.u32 %v517_v25, %v533_v16  ;;  %v538_v57 = vadd.s32 127, %v537_v3  ;;  %v1341_v34 = vsel %vm1339_vm6, %v1340_v32, %v8064_v49  ;;  %v581_v58 = vshll.u32 %v10380_v41, %v7814_v5  ;;  %v6731_v3 = vld [vmem:[%s10369_s4 + $0x88] sm:$0xff] }
 0x123   : > { %v588_v52 = vshrl.u32 %v10394_v33, %v8002_v18  ;;  %v584_v19 = vshll.u32 %v10382_v29, %v7814_v5  ;;  %v587_v7 = vshll.u32 %v10386_v31, %v7814_v5  ;;  %v347_v56 = vmul.f32 %v7999_v20, %v7519_v17 }
 0x124   : > { %v536_v44 = vor.u32 %v535_v4, %v534_v46  ;;  %v539_v15 = vshll.u32 %v538_v57, 23  ;;  %vm599_vm7 = vcmp.lt.s32.totalorder %v8068_v63, 4  ;;  %7123 = vsinq.f32 %v446_v2  ;;  %4771 = vperm.xlu1 %7108, %v6729_v37  }
 0x125   : > { %v1342_v22 = vadd.s32 %v1341_v34, %v1337_v13  ;;  %v583_v53 = vor.u32 %v582_v9, %v581_v58  ;;  %v586_v48 = vor.u32 %v585_v10, %v584_v19  ;;  %v589_v12 = vor.u32 %v588_v52, %v587_v7 }
 0x126   : > { %v540_v62 = vor.u32 4788187, %v539_v15  ;;  %v605_v5 = vsel %vm599_vm7, %v8070_v40, 920167782  ;;  %v609_v17 = vsel %vm599_vm7, %v595_v8, 1326507024  ;;  %v445_v0 = vsel %vm360_vm2, %v444_v47, %v7846_v35 }
 0x127   : > { %vm463_vm8 = vcmp.lt.s32.totalorder %v7528_v27, 0  ;;  %v1343_v20 = vadd.s32 536870912, %v1342_v22  ;;  %v543_v2 = vcvt.s32.f32 %v536_v44  ;;  %v572_v49 = vor.u32 8388608, %v571_v30 }
 0x128   : > { %v541_v54 = vand.u32 2147483647, %v540_v62  ;;  %v10417_v51 = vand.u32 2147483647, %v7528_v27  ;;  %vm596_vm10 = vcmp.lt.s32.totalorder %v8068_v63, 1  ;;  %vm598_vm11 = vcmp.lt.s32.totalorder %v8068_v63, 3  ;;  %4781 = vperm.xlu1 %7108, %v6731_v3  }
 0x129   : > { %v8124_v45 = vshrl.u32 %v1343_v20, 30  ;;  %v8128_v8 = vpop.eup %7121  ;;  %v604_v35 = vsel %vm596_vm10, %v583_v53, %v586_v48  ;;  %v606_v47 = vsel %vm598_vm11, %v589_v12, %v605_v5  ;;  %v608_v16 = vsel %vm596_vm10, %v586_v48, %v589_v12 }
 0x12a   : > { %vm8120_vm9 = vcmp.le.f32.partialorder %v10417_v51, 0.7853982  ;;  %v544_v25 = vmul.f32 %v543_v2, %v541_v54  ;;  %v8141_v13 = vsel %vm8051_vm4, 0, %v445_v0  ;;  %vm597_vm12 = vcmp.lt.s32.totalorder %v8068_v63, 2 }
 0x12b   : > { %v1345_v32 = vshll.u32 %v8124_v45, 30  ;;  %v610_v9 = vsel %vm598_vm11, %v8070_v40, %v609_v17  ;;  %v601_v4 = vsel %vm599_vm7, %v589_v12, 2102212464  ;;  %v612_v10 = vshll.u32 %v572_v49, 8 }
 0x12c   : > { %v545_v46 = vxor.u32 2147483648, %v544_v25  ;;  %v611_v57 = vsel %vm597_vm12, %v608_v16, %v610_v9  ;;  %v580_v61 = vshrl.u32 %v10380_v41, %v8002_v18  ;;  %v607_v34 = vsel %vm597_vm12, %v604_v35, %v606_v47  ;;  %v6769_v18 = vld [vmem:[%s10369_s4 + $0x98] sm:$0xff] }
 0x12d   : > { %v8152_v11 = vsub.s32 %v1342_v22, %v1345_v32  ;;  %v8160_v30 = vmul.f32 %v7710_v23, %v7966_v39  ;;  %v547_v58 = vsub.s32 4, %v7968_v14  ;;  %v602_v7 = vsel %vm598_vm11, %v586_v48, %v601_v4  ;;  %5584 = vperm.xlu1 %7108, %v6769_v18  }
 0x12e   : > { %v546_v40 = vsel %vm463_vm8, %v545_v46, %v544_v25  ;;  %v8165_v52 = vmul.u32.u64.low %v612_v10, %v611_v57  ;;  %v8166_v44 = vmul.u32.u64.high %v612_v10, %v611_v57, %v8165_v52  ;;  %v8171_v15 = vpop.eup %7123  ;;  %v600_v19 = vsel %vm596_vm10, %v580_v61, %v583_v53  ;;  %v6773_v25 = vld [vmem:[%s10369_s4 + $0xb8] sm:$0xff] }
 0x12f   : > { %v549_v23 = vsel %vm8120_vm9, %v7528_v27, %v546_v40  ;;  %v1348_v39 = vsub.s32 0, %v8152_v11  ;;  %v8181_v22 = vmul.u32.u64.low %v612_v10, %v607_v34  ;;  %v8182_v62 = vmul.u32.u64.high %v612_v10, %v607_v34, %v8181_v22 }
 0x130   : > { %7125 = vcosq.f32 %v549_v23  ;;  %v349_v12 = vmul.f32 1.442695, %v7996_v50  ;;  %v351_v37 = vmul.f32 1.442695, %v347_v56  ;;  %v451_v17 = vand.u32 3, %v8141_v13  ;;  %v6771_v50 = vld [vmem:[%s10369_s4 + $0xa8] sm:$0xff] }
 0x131   : > { %7127 = vsinq.f32 %v549_v23  ;;  %v6585_v5 = vmin.u32 %v1348_v39, %v8152_v11  ;;  %v457_v20 = vxor.u32 2147483648, %v8128_v8  ;;  %v548_v53 = vsel %vm463_vm8, %v547_v58, %v7968_v14  ;;  %5594 = vperm.xlu1 %7108, %v6771_v50  }
 0x132   : > { %v603_v48 = vsel %vm597_vm12, %v600_v19, %v602_v7  ;;  %v454_v56 = vxor.u32 2147483648, %v8171_v15  ;;  %vm621_vm13 = vc.u32 %v8166_v44, %v8181_v22  ;;  %v622_v54 = vadd.s32 1, %v8182_v62 }
 0x133   : > { %v1350_v0 = vclz %v6585_v5  ;;  %v10375_v2 = vmov 0.0   ;;  %7129 = vpow2.f32 %v349_v12  ;;  %v8205_v14 = vsel %vm8120_vm9, 0, %v548_v53 }
 0x134   : > { %1846 = vmatprep.mubr.f32.mxu0 %v10375_v2  ;;  %3341 = vmatprep.mubr.f32.mxu1 %v10375_v2  ;;  %v619_v49 = vmul.u32 %v612_v10, %v603_v48  ;;  %7131 = vpow2.f32 %v351_v37  ;;  %vm453_vm15 = vcmp.eq.s32.totalorder %v451_v17, 0  ;;  %vm456_vm14 = vcmp.eq.s32.totalorder %v451_v17, 2 }
 0x135   : > { %v6586_v63 = vadd.s32 4294967294, %v1350_v0  ;;  %v623_v51 = vsel %vm621_vm13, %v622_v54, %v8182_v62  ;;  %v455_v35 = vsel %vm453_vm15, %v8128_v8, %v454_v56  ;;  %v458_v55 = vsel %vm456_vm14, %v457_v20, %v8171_v15  ;;  %5604 = vperm.xlu1 %7108, %v6773_v25  }
 0x136   : > { %v624_v47 = vadd.s32 %v623_v51, %v619_v49  ;;  %vm452_vm1 = vcmp.lt.s32.totalorder %v451_v17, 2  ;;  %v554_v16 = vand.u32 3, %v8205_v14  ;;  %v1338_v32 = vadd.s32 %v8063_v1, %v8056_v59 }
 0x137   : > { %vm6587_vm0 = vcmp.lt.s32.totalorder %v6586_v63, 0  ;;  %v459_v10 = vsel %vm452_vm1, %v455_v35, %v458_v55  ;;  %vm450_vm2 = vweird.f32 %v7525_v26  ;;  %vm553_vm6 = vweird.f32 %v7528_v27 }
 0x138   : > { %v1353_v3 = vsel %vm6587_vm0, 0, %v6586_v63  ;;  %v625_v4 = vadd.s32 536870912, %v624_v47  ;;  %vm559_vm3 = vcmp.eq.s32.totalorder %v554_v16, 2  ;;  %vm556_vm4 = vcmp.eq.s32.totalorder %v554_v16, 0 }
 0x139   : > { %v1354_v9 = vsub.s32 32, %v1353_v3  ;;  %v1358_v46 = vsub.s32 4294967266, %v1353_v3  ;;  %v1355_v61 = vshll.u32 %v8152_v11, %v1353_v3  ;;  %v460_v39 = vsel %vm450_vm2, nan, %v459_v10 }
 0x13a   : > { %v8220_v57 = vpop.eup %7125  ;;  %v8226_v18 = vshrl.u32 %v625_v4, 30  ;;  %vm555_vm5 = vcmp.lt.s32.totalorder %v554_v16, 2  ;;  %v1063_v49 = vmul.f32 -100.0, %v7530_v28  ;;  %v1368_v35 = vsub.s32 4, %v8124_v45 }
 0x13b   : > { %v8223_v34 = vpop.eup %7127  ;;  %v560_v40 = vxor.u32 2147483648, %v8220_v57  ;;  %v1356_v58 = vshrl.u32 %v1338_v32, %v1354_v9  ;;  %v1359_v52 = vadd.s32 127, %v1358_v46  ;;  %vm1284_vm7 = vcmp.lt.s32.totalorder %v7565_v6, 0 }
 0x13c   : > { %v557_v59 = vxor.u32 2147483648, %v8223_v34  ;;  %v627_v7 = vshll.u32 %v8226_v18, 30  ;;  %vm1283_vm8 = vcmp.le.f32.partialorder %v1282_v21, 0.7853982  ;;  %v1369_v9 = vsel %vm1284_vm7, %v1368_v35, %v8124_v45 }
 0x13d   : > { %v561_v1 = vsel %vm559_vm3, %v560_v40, %v8223_v34  ;;  %v1357_v23 = vor.u32 %v1356_v58, %v1355_v61  ;;  %v1360_v11 = vshll.u32 %v1359_v52, 23  ;;  %v8239_v62 = vpop.eup %7129  ;;  %v1371_v10 = vsel %vm1283_vm8, 0, %v1369_v9 }
 0x13e   : > { %v558_v19 = vsel %vm556_vm4, %v8220_v57, %v557_v59  ;;  %v8242_v5 = vpop.eup %7131  ;;  %v628_v53 = vsub.s32 %v624_v47, %v627_v7  ;;  %v667_v48 = vmul.f32 %v8239_v62, %v460_v39  ;;  %v1066_v47 = vmul.f32 %v1063_v49, %v7530_v28 }
 0x13f   : > { %v562_v12 = vsel %vm555_vm5, %v558_v19, %v561_v1  ;;  %v1361_v37 = vor.u32 4788187, %v1360_v11  ;;  %v1364_v54 = vcvt.s32.f32 %v1357_v23  ;;  %v620_v52 = vadd.s32 %v8181_v22, %v8166_v44 }
 0x140   : > { %v563_v17 = vsel %vm553_vm6, nan, %v562_v12  ;;  %v630_v63 = vsub.s32 0, %v628_v53  ;;  %v1071_v61 = vmul.f32 1.442695, %v1066_v47  ;;  %v1692_v23 = vadd.s32 3, %v1371_v10 }
 0x141   : > { %v668_v50 = vmul.f32 %v8242_v5, %v563_v17  ;;  %v1362_v0 = vand.u32 2147483647, %v1361_v37  ;;  %v345_v45 = vmul.f32 -100.0, %v7593_v43  ;;  %v1375_v19 = vand.u32 3, %v1371_v10 }
 0x142   : > { %v6555_v55 = vmin.u32 %v630_v63, %v628_v53  ;;  %v1693_v37 = vand.u32 3, %v1692_v23  ;;  %v870_v44 = vadd.s32 3, %v8205_v14  ;;  %v650_v35 = vsub.s32 4, %v8226_v18 }
 0x143   : > { %v6899_v51 = vpack.c.bf16 %v668_v50, %v667_v48  ;;  %v1365_v25 = vmul.f32 %v1364_v54, %v1362_v0  ;;  %v348_v50 = vmul.f32 %v345_v45, %v7593_v43  ;;  %v766_v0 = vadd.s32 3, %v8141_v13 }
 0x144   : > { %v632_v3 = vclz %v6555_v55  ;;  %vm1377_vm10 = vcmp.eq.s32.totalorder %v1375_v19, 0  ;;  %vm1380_vm11 = vcmp.eq.s32.totalorder %v1375_v19, 2  ;;  %vm1695_vm12 = vcmp.eq.s32.totalorder %v1693_v37, 0 }
 0x145   : > { %6900 = vmatpush1.bf16.msra.mxu0 %v6899_v51  ;;  %v1366_v16 = vxor.u32 2147483648, %v1365_v25  ;;  %vm1698_vm13 = vcmp.eq.s32.totalorder %v1693_v37, 2  ;;  %vm1376_vm15 = vcmp.lt.s32.totalorder %v1375_v19, 2  ;;  %vm1694_vm14 = vcmp.lt.s32.totalorder %v1693_v37, 2 }
 0x146   : > { %v6556_v4 = vadd.s32 4294967294, %v632_v3  ;;  %vm1374_vm0 = vweird.f32 %v7565_v6  ;;  %vm565_vm1 = vcmp.le.f32.partialorder %v564_v42, 0.7853982  ;;  %vm566_vm3 = vcmp.lt.s32.totalorder %v7607_v38, 0 }
 0x147   : > { %v1367_v32 = vsel %vm1284_vm7, %v1366_v16, %v1365_v25  ;;  %v651_v10 = vsel %vm566_vm3, %v650_v35, %v8226_v18  ;;  %v353_v42 = vmul.f32 1.442695, %v348_v50  ;;  %v1736_v35 = vpop.permute.xlu0 %1735 }
 0x148   : > { %v1370_v46 = vsel %vm1283_vm8, %v7565_v6, %v1367_v32  ;;  %vm6557_vm9 = vcmp.lt.s32.totalorder %v6556_v4, 0  ;;  %v653_v23 = vsel %vm565_vm1, 0, %v651_v10 }
 0x149   : > { %7133 = vcosq.f32 %v1370_v46  ;;  %v635_v58 = vsel %vm6557_vm9, 0, %v6556_v4  ;;  %v657_v45 = vand.u32 3, %v653_v23 }
 0x14a   : > { %7135 = vsinq.f32 %v1370_v46  ;;  %v636_v1 = vsub.s32 32, %v635_v58  ;;  %v640_v28 = vsub.s32 4294967266, %v635_v58  ;;  %v637_v11 = vshll.u32 %v628_v53, %v635_v58 }
 0x14b   : > { %7137 = vpow2.f32 %v1071_v61 }
 0x14c   : > { %v638_v21 = vshrl.u32 %v620_v52, %v636_v1  ;;  %v641_v39 = vadd.s32 127, %v640_v28  ;;  %v767_v52 = vand.u32 3, %v766_v0  ;;  %v871_v28 = vand.u32 3, %v870_v44 }
 0x14e   : > { %v639_v7 = vor.u32 %v638_v21, %v637_v11  ;;  %v642_v12 = vshll.u32 %v641_v39, 23  ;;  %vm769_vm4 = vcmp.eq.s32.totalorder %v767_v52, 0  ;;  %vm772_vm5 = vcmp.eq.s32.totalorder %v767_v52, 2 }
 0x14f   : > { %v974_v11 = vadd.s32 3, %v653_v23  ;;  %v771_v18 = vsel %vm769_vm4, %v8128_v8, %v454_v56  ;;  %v774_v21 = vsel %vm772_vm5, %v457_v20, %v8171_v15  ;;  %vm873_vm7 = vcmp.eq.s32.totalorder %v871_v28, 0 }
 0x150   : > { %v643_v17 = vor.u32 4788187, %v642_v12  ;;  %v646_v63 = vcvt.s32.f32 %v639_v7  ;;  %vm876_vm8 = vcmp.eq.s32.totalorder %v871_v28, 2  ;;  %vm768_vm9 = vcmp.lt.s32.totalorder %v767_v52, 2 }
 0x151   : > { %v775_v39 = vsel %vm768_vm9, %v771_v18, %v774_v21  ;;  %v975_v56 = vand.u32 3, %v974_v11 }
 0x152   : > { %v644_v54 = vand.u32 2147483647, %v643_v17  ;;  %v776_v15 = vsel %vm450_vm2, nan, %v775_v39  ;;  %vm10404_vm2 = vcmask 392192  }
 0x153   : > { %v7134_v48 = vpop.eup %7133  ;;  %v985_v44 = vmul.f32 %v8239_v62, %v776_v15  ;;  %v1710_v62 = vld [vmem:[%s10368_s3 + $0x8] sm:$0xff] }
 0x154   : > { %v7136_v22 = vpop.eup %7135  ;;  %v1381_v53 = vxor.u32 2147483648, %v7134_v48  ;;  %v647_v25 = vmul.f32 %v646_v63, %v644_v54 }
 0x155   : > { %v1378_v49 = vxor.u32 2147483648, %v7136_v22  ;;  %v7138_v47 = vpop.eup %7137 }
 0x156   : > { %v1382_v51 = vsel %vm1380_vm11, %v1381_v53, %v7136_v22  ;;  %v1700_v55 = vsel %vm1698_vm13, %v1381_v53, %v7136_v22  ;;  %v648_v16 = vxor.u32 2147483648, %v647_v25  ;;  %vm662_vm11 = vcmp.eq.s32.totalorder %v657_v45, 2 }
 0x157   : > { %v1379_v43 = vsel %vm1377_vm10, %v7134_v48, %v1378_v49  ;;  %v1697_v13 = vsel %vm1695_vm12, %v7134_v48, %v1378_v49  ;;  %vm872_vm10 = vcmp.lt.s32.totalorder %v871_v28, 2  ;;  %vm980_vm12 = vcmp.eq.s32.totalorder %v975_v56, 2  ;;  %v1712_v49 = vld [vmem:[%s10368_s3 + $0x18] sm:$0xff] }
 0x158   : > { %v1383_v14 = vsel %vm1376_vm15, %v1379_v43, %v1382_v51  ;;  %v1701_v3 = vsel %vm1694_vm14, %v1697_v13, %v1700_v55  ;;  %v649_v4 = vsel %vm566_vm3, %v648_v16, %v647_v25  ;;  %vm659_vm13 = vcmp.eq.s32.totalorder %v657_v45, 0  ;;  %v1713_v51 = vld [vmem:[%s10368_s3 + $0x20] sm:$0xff]  ;;  %v1714_v25 = vld [vmem:[%s10368_s3 + $0x28] sm:$0xff] }
 0x159   : > { %v1384_v32 = vsel %vm1374_vm0, nan, %v1383_v14  ;;  %v1702_v9 = vsel %vm1374_vm0, nan, %v1701_v3  ;;  %v652_v58 = vsel %vm565_vm1, %v7607_v38, %v649_v4  ;;  %vm977_vm15 = vcmp.eq.s32.totalorder %v975_v56, 0 }
 0x15a   : > { %v1387_v46 = vmul.f32 %v7138_v47, %v1384_v32  ;;  %v1705_v61 = vmul.f32 %v7138_v47, %v1702_v9  ;;  %7139 = vcosq.f32 %v652_v58  ;;  %vm658_vm14 = vcmp.lt.s32.totalorder %v657_v45, 2 }
 0x15b   : > { %7141 = vsinq.f32 %v652_v58  ;;  %vm976_vm0 = vcmp.lt.s32.totalorder %v975_v56, 2  ;;  %vm656_vm1 = vweird.f32 %v7607_v38  ;;  %v1709_v38 = vld [vmem:[%s10368_s3] sm:$0xff] }
 0x15c   : > { %v6901_v6 = vpack.c.bf16 %v8036_v60, %v1387_v46  ;;  %v6905_v1 = vpack.c.bf16 %v1705_v61, %v8160_v30  ;;  %7143 = vpow2.f32 %v353_v42  ;;  %v875_v60 = vsel %vm873_vm7, %v8220_v57, %v557_v59 }
 0x15d   : > { %v878_v30 = vsel %vm876_vm8, %v560_v40, %v8223_v34 }
 0x15e   : > { %6902 = vmatprep.subr.bf16.mxu0 %v6901_v6  ;;  %v879_v19 = vsel %vm872_vm10, %v875_v60, %v878_v30 }
 0x15f   : > { %v880_v12 = vsel %vm553_vm6, nan, %v879_v19 }
 0x160   : > { %v986_v22 = vmul.f32 %v8242_v5, %v880_v12  ;;  %v1711_v5 = vld [vmem:[%s10368_s3 + $0x10] sm:$0xff] }
 0x164   : > { %v7140_v7 = vpop.eup %7139 }
 0x165   : > { %v7142_v8 = vpop.eup %7141  ;;  %v663_v20 = vxor.u32 2147483648, %v7140_v7 }
 0x166   : > { %v660_v59 = vxor.u32 2147483648, %v7142_v8  ;;  %v7144_v48 = vpop.eup %7143 }
 0x167   : > { %v664_v57 = vsel %vm662_vm11, %v663_v20, %v7142_v8  ;;  %v982_v34 = vsel %vm980_vm12, %v663_v20, %v7142_v8 }
 0x168   : > { %v661_v40 = vsel %vm659_vm13, %v7140_v7, %v660_v59  ;;  %v979_v37 = vsel %vm977_vm15, %v7140_v7, %v660_v59 }
 0x169   : > { %v665_v17 = vsel %vm658_vm14, %v661_v40, %v664_v57  ;;  %v983_v26 = vsel %vm976_vm0, %v979_v37, %v982_v34 }
 0x16a   : > { %v666_v50 = vsel %vm656_vm1, nan, %v665_v17  ;;  %v984_v0 = vsel %vm656_vm1, nan, %v983_v26 }
 0x16b   : > { %v669_v27 = vmul.f32 %v7144_v48, %v666_v50  ;;  %v987_v53 = vmul.f32 %v7144_v48, %v984_v0 }
 0x16d   : > { %v6903_v54 = vpack.c.bf16 %v985_v44, %v669_v27  ;;  %v6907_v63 = vpack.c.bf16 %v987_v53, %v986_v22 }
 0x16f   : > { %6904 = vmatpush1.bf16.msra.mxu0 %v6903_v54 }
 0x170   : > { %6906 = vmatprep.subr.bf16.mxu0 %v6905_v1 }
 0x173   : > { %6908 = vmatpush1.bf16.msra.mxu0 %v6907_v63 }
 0x176   : > { %6600 = vmatmul.mubr.msk.f32.vlgmr.msra.gmra.mrb[0].mxu0 %vm10404_vm2, %v1709_v38 }
 0x177   : > { %1852 = vmatprep.mubr.f32.mxu0 %v10375_v2 }
 0x17a   : > { %6601 = vmatmul.mubr.msk.f32.gmra.mrb[2].mxu0 %vm10404_vm2, %v1710_v62 }
 0x17b   : > { %1858 = vmatprep.mubr.f32.mxu0 %v10375_v2 }
 0x17e   : > { %6602 = vmatmul.mubr.msk.f32.gmra.mrb[4].mxu0 %vm10404_vm2, %v1711_v5 }
 0x17f   : > { %1864 = vmatprep.mubr.f32.mxu0 %v10375_v2 }
 0x182   : > { %6603 = vmatmul.mubr.msk.f32.gmra.mrb[6].mxu0 %vm10404_vm2, %v1712_v49 }
 0x183   : > { %1870 = vmatprep.mubr.f32.mxu0 %v10375_v2  ;;  %v1741_v3 = vpop.permute.xlu1 %1740 }
 0x186   : > { %6604 = vmatmul.mubr.msk.f32.gmra.mrb[8].mxu0 %vm10404_vm2, %v1713_v51 }
 0x187   : > { %1876 = vmatprep.mubr.f32.mxu0 %v10375_v2 }
 0x18a   : > { %6605 = vmatmul.mubr.msk.f32.gmra.mrb[10].mxu0 %vm10404_vm2, %v1714_v25 }
 0x249   : > { %v1848_v55 = vpop.f32.mrb[0].mxu0 }
 0x24a   : > { %v8319_v43 = vadd.f32 %v1848_v55, %v1736_v35  ;;  %v1850_v13 = vpop.f32.mrb[1].mxu0 }
 0x24b   : > { %v8321_v14 = vadd.f32 %v1850_v13, %v1736_v35 }
 0x24c   : > { %v8324_v16 = vmul.f32 30.0, %v8319_v43 }
 0x24d   : > { %v8327_v47 = vmul.f32 30.0, %v8321_v14  ;;  %v1854_v32 = vpop.f32.mrb[2].mxu0 }
 0x24e   : > { %v10378_v9 = vand.u32 2147483647, %v8324_v16  ;;  %v1940_v46 = vand.u32 2139095040, %v8324_v16  ;;  %v8331_v4 = vadd.f32 %v1854_v32, %v1741_v3  ;;  %v1856_v10 = vpop.f32.mrb[3].mxu0 }
 0x24f   : > { %v2043_v61 = vand.u32 2139095040, %v8327_v47  ;;  %v8334_v58 = vadd.f32 %v1856_v10, %v1741_v3 }
 0x250   : > { %v1941_v52 = vshrl.u32 %v1940_v46, 23  ;;  %v8337_v6 = vmul.f32 30.0, %v8331_v4  ;;  %v1944_v1 = vand.u32 8388607, %v10378_v9 }
 0x251   : > { %v2044_v28 = vshrl.u32 %v2043_v61, 23  ;;  %v8341_v23 = vpop.f32.mrb[4].mxu0  ;;  %v8345_v18 = vmul.f32 30.0, %v8334_v58 }
 0x252   : > { %10420 = vst [vmem:[#allocation7_spill] sm:$0xff] %v8337_v6  ;;  %v6606_v42 = vadd.s32 4294967169, %v1941_v52  ;;  %v10377_v11 = vand.u32 2147483647, %v8337_v6  ;;  %v8347_v21 = vpop.f32.mrb[5].mxu0  ;;  %v2146_v30 = vand.u32 2139095040, %v8337_v6 }
 0x253   : > { %v6610_v60 = vadd.s32 4294967169, %v2044_v28  ;;  %v1945_v45 = vor.u32 8388608, %v1944_v1  ;;  %v2249_v8 = vand.u32 2139095040, %v8345_v18 }
 0x254   : > { %v1947_v39 = vadd.s32 1, %v6606_v42  ;;  %v8354_v7 = vand.u32 8388607, %v10377_v11  ;;  %v2147_v12 = vshrl.u32 %v2146_v30, 23 }
 0x255   : > { %v8350_v56 = vpop.f32.mrb[6].mxu0  ;;  %v2050_v19 = vadd.s32 1, %v6610_v60  ;;  %v8359_v57 = vshll.u32 %v1945_v45, 8  ;;  %v2250_v17 = vshrl.u32 %v2249_v8, 23 }
 0x256   : > { %vm1948_vm6 = vcmp.gt.s32.totalorder %v1947_v39, 0  ;;  %v8357_v15 = vpop.f32.mrb[7].mxu0  ;;  %v2151_v37 = vor.u32 8388608, %v8354_v7  ;;  %v6614_v27 = vadd.s32 4294967169, %v2147_v12 }
 0x257   : > { %v1949_v20 = vsel %vm1948_vm6, %v1947_v39, 0  ;;  %vm2051_vm3 = vcmp.gt.s32.totalorder %v2050_v19, 0  ;;  %v6618_v55 = vadd.s32 4294967169, %v2250_v17 }
 0x258   : > { %v1951_v59 = vand.u32 31, %v1949_v20  ;;  %v1950_v48 = vshrl.u32 %v1949_v20, 5  ;;  %v2153_v52 = vadd.s32 1, %v6614_v27  ;;  %v8382_v39 = vsel %vm2051_vm3, %v2050_v19, 0 }
 0x259   : > { %v8361_v34 = vpop.f32.mrb[8].mxu0  ;;  %v8400_v27 = vmul.f32 %v8319_v43, %v8319_v43 }
 0x25a   : > { %v1952_v40 = vsub.s32 32, %v1951_v59  ;;  %v8364_v26 = vpop.f32.mrb[9].mxu0  ;;  %v1954_v50 = vshll.u32 %v10380_v41, %v1951_v59  ;;  %v1957_v0 = vshll.u32 %v10382_v29, %v1951_v59  ;;  %v1960_v53 = vshll.u32 %v10386_v31, %v1951_v59 }
 0x25b   : > { %v1963_v63 = vshll.u32 %v10394_v33, %v1951_v59  ;;  %v1966_v62 = vshll.u32 %v10402_v24, %v1951_v59  ;;  %vm1969_vm4 = vcmp.lt.s32.totalorder %v1950_v48, 1  ;;  %vm1972_vm5 = vcmp.lt.s32.totalorder %v1950_v48, 4 }
 0x25c   : > { %v1955_v44 = vshrl.u32 %v10382_v29, %v1952_v40  ;;  %v1958_v22 = vshrl.u32 %v10386_v31, %v1952_v40  ;;  %v1961_v54 = vshrl.u32 %v10394_v33, %v1952_v40  ;;  %v1964_v38 = vshrl.u32 %v10402_v24, %v1952_v40 }
 0x25d   : > { %v1967_v5 = vshrl.u32 %v10400_v36, %v1952_v40  ;;  %v8376_v49 = vpop.f32.mrb[10].mxu0  ;;  %v1953_v1 = vshrl.u32 %v10380_v41, %v1952_v40  ;;  %vm1971_vm7 = vcmp.lt.s32.totalorder %v1950_v48, 3  ;;  %vm1970_vm8 = vcmp.lt.s32.totalorder %v1950_v48, 2 }
 0x25e   : > { %v1956_v51 = vor.u32 %v1955_v44, %v1954_v50  ;;  %v1959_v25 = vor.u32 %v1958_v22, %v1957_v0  ;;  %v1962_v35 = vor.u32 %v1961_v54, %v1960_v53  ;;  %v8378_v13 = vpop.f32.mrb[11].mxu0  ;;  %v1965_v3 = vor.u32 %v1964_v38, %v1963_v63  ;;  %v8396_v50 = vpop.permute.xlu0 %1745 }
 0x25f   : > { %v1968_v32 = vor.u32 %v1967_v5, %v1966_v62  ;;  %v8394_v48 = vand.u32 31, %v8382_v39  ;;  %vm2154_vm9 = vcmp.gt.s32.totalorder %v2153_v52, 0  ;;  %v8404_v44 = vmul.f32 %v8321_v14, %v8321_v14 }
 0x260   : > { %v1974_v46 = vsel %vm1972_vm5, %v1962_v35, 2102212464  ;;  %v1977_v10 = vsel %vm1969_vm4, %v1956_v51, %v1959_v25  ;;  %v1981_v61 = vsel %vm1969_vm4, %v1959_v25, %v1962_v35  ;;  %v1978_v28 = vsel %vm1972_vm5, %v1965_v3, 920167782 }
 0x261   : > { %v1982_v42 = vsel %vm1972_vm5, %v1968_v32, 1326507024  ;;  %v1979_v60 = vsel %vm1971_vm7, %v1962_v35, %v1978_v28  ;;  %v1973_v45 = vsel %vm1969_vm4, %v1953_v1, %v1956_v51  ;;  %v1975_v7 = vsel %vm1971_vm7, %v1959_v25, %v1974_v46 }
 0x262   : > { %v1983_v30 = vsel %vm1971_vm7, %v1965_v3, %v1982_v42  ;;  %v1980_v8 = vsel %vm1970_vm8, %v1977_v10, %v1979_v60  ;;  %v1976_v19 = vsel %vm1970_vm8, %v1973_v45, %v1975_v7  ;;  %v2155_v0 = vsel %vm2154_vm9, %v2153_v52, 0 }
 0x263   : > { %v1984_v20 = vsel %vm1970_vm8, %v1981_v61, %v1983_v30  ;;  %v8389_v17 = vmul.u32.u64.low %v8359_v57, %v1980_v8  ;;  %v8390_v40 = vmul.u32.u64.high %v8359_v57, %v1980_v8, %v8389_v17  ;;  %v2157_v22 = vand.u32 31, %v2155_v0 }
 0x264   : > { %v8385_v12 = vmul.u32.u64.low %v8359_v57, %v1984_v20  ;;  %v8386_v59 = vmul.u32.u64.high %v8359_v57, %v1984_v20, %v8385_v12  ;;  %v8408_v53 = vadd.f32 %v8341_v23, %v8396_v50  ;;  %v8413_v63 = vshll.u32 %v2151_v37, 8 }
 0x265   : > { %v1995_v54 = vadd.s32 1, %v8390_v40  ;;  %v2256_v38 = vadd.s32 1, %v6618_v55  ;;  %v1992_v43 = vmul.u32 %v8359_v57, %v1976_v19  ;;  %v8417_v62 = vsub.s32 32, %v8394_v48 }
 0x266   : > { %vm1994_vm10 = vc.u32 %v8386_v59, %v8389_v17  ;;  %v2156_v14 = vshrl.u32 %v2155_v0, 5  ;;  %v2158_v5 = vsub.s32 32, %v2157_v22  ;;  %v2160_v23 = vshll.u32 %v10380_v41, %v2157_v22 }
 0x267   : > { %v1996_v51 = vsel %vm1994_vm10, %v1995_v54, %v8390_v40  ;;  %v2163_v25 = vshll.u32 %v10382_v29, %v2157_v22  ;;  %v2166_v35 = vshll.u32 %v10386_v31, %v2157_v22  ;;  %v2169_v57 = vshll.u32 %v10394_v33, %v2157_v22 }
 0x268   : > { %v1997_v3 = vadd.s32 %v1996_v51, %v1992_v43  ;;  %v2161_v37 = vshrl.u32 %v10382_v29, %v2158_v5  ;;  %v2164_v55 = vshrl.u32 %v10386_v31, %v2158_v5  ;;  %v2167_v32 = vshrl.u32 %v10394_v33, %v2158_v5 }
 0x269   : > { %v2170_v46 = vshrl.u32 %v10402_v24, %v2158_v5  ;;  %v2172_v10 = vshll.u32 %v10402_v24, %v2157_v22  ;;  %v2173_v61 = vshrl.u32 %v10400_v36, %v2158_v5  ;;  %vm2175_vm11 = vcmp.lt.s32.totalorder %v2156_v14, 1 }
 0x26a   : > { %v1998_v52 = vadd.s32 536870912, %v1997_v3  ;;  %v2162_v1 = vor.u32 %v2161_v37, %v2160_v23  ;;  %v2165_v28 = vor.u32 %v2164_v55, %v2163_v25  ;;  %v2159_v42 = vshrl.u32 %v10380_v41, %v2158_v5 }
 0x26b   : > { %v2168_v60 = vor.u32 %v2167_v32, %v2166_v35  ;;  %v2171_v30 = vor.u32 %v2170_v46, %v2169_v57  ;;  %v2174_v45 = vor.u32 %v2173_v61, %v2172_v10  ;;  %vm2177_vm12 = vcmp.lt.s32.totalorder %v2156_v14, 3 }
 0x26c   : > { %v8431_v7 = vshrl.u32 %v1998_v52, 30  ;;  %vm2178_vm13 = vcmp.lt.s32.totalorder %v2156_v14, 4  ;;  %v2183_v8 = vsel %vm2175_vm11, %v2162_v1, %v2165_v28  ;;  %vm2176_vm15 = vcmp.lt.s32.totalorder %v2156_v14, 2 }
 0x26d   : > { %v2180_v20 = vsel %vm2178_vm13, %v2168_v60, 2102212464  ;;  %v2184_v12 = vsel %vm2178_vm13, %v2171_v30, 920167782  ;;  %v2187_v40 = vsel %vm2175_vm11, %v2165_v28, %v2168_v60  ;;  %v2188_v19 = vsel %vm2178_vm13, %v2174_v45, 1326507024 }
 0x26e   : > { %10421 = vst [vmem:[#allocation8_spill] sm:$0xff] %v8431_v7  ;;  %v2000_v0 = vshll.u32 %v8431_v7, 30  ;;  %v2185_v22 = vsel %vm2177_vm12, %v2168_v60, %v2184_v12  ;;  %v2189_v54 = vsel %vm2177_vm12, %v2171_v30, %v2188_v19  ;;  %v2179_v43 = vsel %vm2175_vm11, %v2159_v42, %v2162_v1 }
 0x26f   : > { %v2186_v5 = vsel %vm2176_vm15, %v2183_v8, %v2185_v22  ;;  %v2190_v51 = vsel %vm2176_vm15, %v2187_v40, %v2189_v54  ;;  %v8442_v23 = vmul.f32 30.0, %v8408_v53  ;;  %v2181_v35 = vsel %vm2177_vm12, %v2165_v28, %v2180_v20 }
 0x270   : > { %v8444_v25 = vsub.s32 %v1997_v3, %v2000_v0  ;;  %v8448_v37 = vmul.u32.u64.low %v8413_v63, %v2190_v51  ;;  %v8449_v55 = vmul.u32.u64.high %v8413_v63, %v2190_v51, %v8448_v37  ;;  %v2067_v57 = vshrl.u32 %v10402_v24, %v8417_v62 }
 0x271   : > { %10422 = vst [vmem:[#allocation9_spill] sm:$0xff] %v8442_v23  ;;  %v8454_v32 = vmul.u32.u64.low %v8413_v63, %v2186_v5  ;;  %v8455_v46 = vmul.u32.u64.high %v8413_v63, %v2186_v5, %v8454_v32  ;;  %vm2257_vm14 = vcmp.gt.s32.totalorder %v2256_v38, 0  ;;  %v8461_v3 = vmul.f32 %v8331_v4, %v8331_v4 }
 0x272   : > { %v2003_v10 = vsub.s32 0, %v8444_v25  ;;  %v1863_v61 = vadd.f32 %v8347_v21, %v8396_v50  ;;  %v2066_v1 = vshll.u32 %v10394_v33, %v8394_v48  ;;  %v2182_v28 = vsel %vm2176_vm15, %v2179_v43, %v2181_v35  ;;  %v8482_v50 = vpop.permute.xlu1 %1750 }
 0x273   : > { %v8471_v42 = vmul.f32 %v8334_v58, %v8334_v58  ;;  %v2352_v60 = vand.u32 2139095040, %v8442_v23  ;;  %v8476_v4 = vshrl.u32 %v8382_v39, 5  ;;  %vm2200_vm0 = vc.u32 %v8449_v55, %v8454_v32 }
 0x274   : > { %v6607_v30 = vmin.u32 %v2003_v10, %v8444_v25  ;;  %v8480_v21 = vsel %vm2257_vm14, %v2256_v38, 0  ;;  %v8484_v14 = vor.u32 %v2067_v57, %v2066_v1  ;;  %v2070_v58 = vshrl.u32 %v10400_v36, %v8417_v62 }
 0x275   : > { %v2201_v45 = vadd.s32 1, %v8455_v46  ;;  %v2353_v8 = vshrl.u32 %v2352_v60, 23  ;;  %v2198_v12 = vmul.u32 %v8413_v63, %v2182_v28  ;;  %v8490_v39 = vmul.f32 30.0, %v1863_v61 }
 0x276   : > { %v2005_v20 = vclz %v6607_v30  ;;  %v1867_v40 = vadd.f32 %v8350_v56, %v8482_v50  ;;  %v8496_v19 = vand.u32 31, %v8480_v21  ;;  %v8500_v0 = vmul.f32 %v8408_v53, %v8408_v53 }
 0x277   : > { %10423 = vst [vmem:[#allocation10_spill] sm:$0xff] %v8490_v39  ;;  %v2202_v38 = vsel %vm2200_vm0, %v2201_v45, %v8455_v46  ;;  %v6622_v22 = vadd.s32 4294967169, %v2353_v8  ;;  %v2069_v43 = vshll.u32 %v10402_v24, %v8394_v48  ;;  %v8504_v5 = vmul.f32 %v1863_v61, %v1863_v61 }
 0x278   : > { %v6608_v54 = vadd.s32 4294967294, %v2005_v20  ;;  %v2203_v63 = vadd.s32 %v2202_v38, %v2198_v12  ;;  %vm2075_vm1 = vcmp.lt.s32.totalorder %v8476_v4, 4  ;;  %v2455_v51 = vand.u32 2139095040, %v8490_v39 }
 0x279   : > { %v2359_v56 = vadd.s32 1, %v6622_v22  ;;  %v1895_v35 = vmul.f32 %v1867_v40, %v1867_v40  ;;  %v2071_v37 = vor.u32 %v2070_v58, %v2069_v43  ;;  %v8511_v53 = vsel %vm2075_vm1, %v8484_v14, 920167782 }
 0x27a   : > { %vm6609_vm6 = vcmp.lt.s32.totalorder %v6608_v54, 0  ;;  %v2204_v57 = vadd.s32 536870912, %v2203_v63  ;;  %v8514_v10 = vsub.s32 32, %v8496_v19  ;;  %v10379_v60 = vand.u32 2147483647, %v8442_v23 }
 0x27b   : > { %v2008_v46 = vsel %vm6609_vm6, 0, %v6608_v54  ;;  %vm2360_vm3 = vcmp.gt.s32.totalorder %v2359_v56, 0  ;;  %v1901_v61 = vadd.f32 %v1895_v35, %v8400_v27  ;;  %v8520_v30 = vmul.f32 -30.0, %v1867_v40 }
 0x27c   : > { %10424 = vst [vmem:[#allocation11_spill] sm:$0xff] %v8514_v10  ;;  %v2013_v1 = vsub.s32 4294967266, %v2008_v46  ;;  %v8517_v28 = vshrl.u32 %v2204_v57, 30  ;;  %v2009_v58 = vsub.s32 32, %v2008_v46  ;;  %v2361_v45 = vsel %vm2360_vm3, %v2359_v56, 0 }
 0x27d   : > { %v2456_v8 = vshrl.u32 %v2455_v51, 23  ;;  %v8522_v20 = vmul.f32 100.0, %v1901_v61  ;;  %v1993_v12 = vadd.s32 %v8389_v17, %v8386_v59  ;;  %v8528_v22 = vsel %vm2075_vm1, %v2071_v37, 1326507024 }
 0x27e   : > { %10425 = vst [vmem:[#allocation12_spill] sm:$0xff] %v8517_v28  ;;  %v2014_v38 = vadd.s32 127, %v2013_v1  ;;  %v2206_v27 = vshll.u32 %v8517_v28, 30  ;;  %v8533_v54 = vshrl.u32 %v10402_v24, %v8514_v10  ;;  %v8537_v40 = vshrl.u32 %v10400_v36, %v8514_v10 }
 0x27f   : > { %v2363_v43 = vand.u32 31, %v2361_v45  ;;  %v2010_v59 = vshll.u32 %v8444_v25, %v2008_v46  ;;  %v2356_v51 = vand.u32 8388607, %v10379_v60  ;;  %v2011_v37 = vshrl.u32 %v1993_v12, %v2009_v58 }
 0x280   : > { %v8542_v17 = vsub.s32 %v2203_v63, %v2206_v27  ;;  %v2362_v57 = vshrl.u32 %v2361_v45, 5  ;;  %v6626_v1 = vadd.s32 4294967169, %v2456_v8  ;;  %v2015_v2 = vshll.u32 %v2014_v38, 23 }
 0x281   : > { %v2364_v61 = vsub.s32 32, %v2363_v43  ;;  %v2366_v9 = vshll.u32 %v10380_v41, %v2363_v43  ;;  %v2369_v52 = vshll.u32 %v10382_v29, %v2363_v43  ;;  %v2372_v46 = vshll.u32 %v10386_v31, %v2363_v43 }
 0x282   : > { %v2209_v11 = vsub.s32 0, %v8542_v17  ;;  %v2375_v45 = vshll.u32 %v10394_v33, %v2363_v43  ;;  %v2378_v12 = vshll.u32 %v10402_v24, %v2363_v43  ;;  %v2357_v35 = vor.u32 8388608, %v2356_v51 }
 0x283   : > { %v2367_v25 = vshrl.u32 %v10382_v29, %v2364_v61  ;;  %v2370_v63 = vshrl.u32 %v10386_v31, %v2364_v61  ;;  %v2373_v27 = vshrl.u32 %v10394_v33, %v2364_v61  ;;  %v2376_v8 = vshrl.u32 %v10402_v24, %v2364_v61 }
 0x284   : > { %v6615_v58 = vmin.u32 %v2209_v11, %v8542_v17  ;;  %v2379_v41 = vshrl.u32 %v10400_v36, %v2364_v61  ;;  %v2016_v29 = vor.u32 4788187, %v2015_v2  ;;  %v10426_v31 = vand.u32 2147483647, %v8490_v39 }
 0x285   : > { %v2368_v38 = vor.u32 %v2367_v25, %v2366_v9  ;;  %v2371_v60 = vor.u32 %v2370_v63, %v2369_v52  ;;  %v2374_v56 = vor.u32 %v2373_v27, %v2372_v46  ;;  %v2377_v28 = vor.u32 %v2376_v8, %v2375_v45 }
 0x286   : > { %v2459_v7 = vand.u32 8388607, %v10426_v31  ;;  %v2012_v6 = vor.u32 %v2011_v37, %v2010_v59  ;;  %v2380_v23 = vor.u32 %v2379_v41, %v2378_v12  ;;  %vm2381_vm4 = vcmp.lt.s32.totalorder %v2362_v57, 1 }
 0x287   : > { %v2462_v11 = vadd.s32 1, %v6626_v1  ;;  %v2211_v33 = vclz %v6615_v58  ;;  %vm2383_vm5 = vcmp.lt.s32.totalorder %v2362_v57, 3  ;;  %vm2384_vm7 = vcmp.lt.s32.totalorder %v2362_v57, 4 }
 0x288   : > { %v2389_v43 = vsel %vm2381_vm4, %v2368_v38, %v2371_v60  ;;  %v2386_v9 = vsel %vm2384_vm7, %v2374_v56, 2102212464  ;;  %v2390_v52 = vsel %vm2384_vm7, %v2377_v28, 920167782  ;;  %v2393_v25 = vsel %vm2381_vm4, %v2371_v60, %v2374_v56 }
 0x289   : > { %v2394_v63 = vsel %vm2384_vm7, %v2380_v23, 1326507024  ;;  %v2017_v2 = vand.u32 2147483647, %v2016_v29  ;;  %v10427_v51 = vmov 683565275   ;;  %v2391_v31 = vsel %vm2383_vm5, %v2374_v56, %v2390_v52 }
 0x28a   : > { %v2365_v46 = vshrl.u32 %v10427_v51, %v2364_v61  ;;  %vm2382_vm8 = vcmp.lt.s32.totalorder %v2362_v57, 2  ;;  %v2019_v59 = vcvt.s32.f32 %v2012_v6  ;;  %v2395_v37 = vsel %vm2383_vm5, %v2377_v28, %v2394_v63 }
 0x28b   : > { %v2392_v41 = vsel %vm2382_vm8, %v2389_v43, %v2391_v31  ;;  %v2397_v1 = vshll.u32 %v2357_v35, 8  ;;  %v6616_v27 = vadd.s32 4294967294, %v2211_v33  ;;  %v2387_v45 = vsel %vm2383_vm5, %v2371_v60, %v2386_v9 }
 0x28c   : > { %v2385_v58 = vsel %vm2381_vm4, %v2365_v46, %v2368_v38  ;;  %v2396_v8 = vsel %vm2382_vm8, %v2393_v25, %v2395_v37  ;;  %v8577_v6 = vmul.f32 %v2019_v59, %v2017_v2  ;;  %v10428_v56 = vmov 2102212464  }
 0x28d   : > { %v8570_v23 = vmul.u32.u64.low %v2397_v1, %v2396_v8  ;;  %v8571_v29 = vmul.u32.u64.high %v2397_v1, %v2396_v8, %v8570_v23  ;;  %v8573_v61 = vmul.u32.u64.low %v2397_v1, %v2392_v41  ;;  %v8574_v12 = vmul.u32.u64.high %v2397_v1, %v2392_v41, %v8573_v61 }
 0x28e   : > { %v2272_v28 = vshll.u32 %v10428_v56, %v8496_v19  ;;  %v2460_v35 = vor.u32 8388608, %v2459_v7  ;;  %vm2463_vm9 = vcmp.gt.s32.totalorder %v2462_v11, 0  ;;  %v8582_v33 = vshrl.u32 %v8480_v21, 5 }
 0x28f   : > { %v8586_v60 = vshll.u32 %v10402_v24, %v8496_v19  ;;  %v2388_v38 = vsel %vm2382_vm8, %v2385_v58, %v2387_v45  ;;  %v2464_v43 = vsel %vm2463_vm9, %v2462_v11, 0  ;;  %v8591_v9 = vadd.s32 %v8454_v32, %v8449_v55 }
 0x290   : > { %vm6617_vm10 = vcmp.lt.s32.totalorder %v6616_v27, 0  ;;  %v8594_v52 = vor.u32 %v8533_v54, %v2272_v28  ;;  %v2466_v7 = vand.u32 31, %v2464_v43  ;;  %vm2406_vm11 = vc.u32 %v8571_v29, %v8573_v61 }
 0x291   : > { %v2407_v25 = vadd.s32 1, %v8574_v12  ;;  %v1869_v57 = vadd.f32 %v8357_v15, %v8482_v50  ;;  %v2404_v55 = vmul.u32 %v2397_v1, %v2388_v38  ;;  %v8604_v63 = vshll.u32 %v2460_v35, 8  ;;  %v1756_v38 = vpop.permute.xlu0 %1755 }
 0x292   : > { %v2467_v32 = vsub.s32 32, %v2466_v7  ;;  %v8606_v54 = vsel %vm6617_vm10, 0, %v6616_v27  ;;  %v2465_v46 = vshrl.u32 %v2464_v43, 5  ;;  %v2469_v31 = vshll.u32 %v10427_v51, %v2466_v7 }
 0x293   : > { %v2408_v2 = vsel %vm2406_vm11, %v2407_v25, %v8574_v12  ;;  %v10429_v41 = vmov 2475754826   ;;  %v10430_v45 = vmov 2131351028   ;;  %v2478_v8 = vshll.u32 %v10428_v56, %v2466_v7 }
 0x294   : > { %v2409_v59 = vadd.s32 %v2408_v2, %v2404_v55  ;;  %v2470_v37 = vshrl.u32 %v10429_v41, %v2467_v32  ;;  %v2472_v58 = vshll.u32 %v10429_v41, %v2466_v7  ;;  %v2475_v15 = vshll.u32 %v10430_v45, %v2466_v7 }
 0x295   : > { %v2473_v50 = vshrl.u32 %v10430_v45, %v2467_v32  ;;  %v2476_v1 = vshrl.u32 %v10428_v56, %v2467_v32  ;;  %v2479_v27 = vshrl.u32 %v10402_v24, %v2467_v32  ;;  %v2481_v28 = vshll.u32 %v10402_v24, %v2466_v7 }
 0x296   : > { %v2410_v23 = vadd.s32 536870912, %v2409_v59  ;;  %v2471_v12 = vor.u32 %v2470_v37, %v2469_v31  ;;  %v2482_v35 = vshrl.u32 %v10400_v36, %v2467_v32  ;;  %v1896_v2 = vmul.f32 %v1869_v57, %v1869_v57 }
 0x297   : > { %v2474_v43 = vor.u32 %v2473_v50, %v2472_v58  ;;  %v2477_v25 = vor.u32 %v2476_v1, %v2475_v15  ;;  %v2480_v55 = vor.u32 %v2479_v27, %v2478_v8  ;;  %vm2484_vm12 = vcmp.lt.s32.totalorder %v2465_v46, 1 }
 0x298   : > { %v8619_v11 = vshrl.u32 %v2410_v23, 30  ;;  %v2483_v21 = vor.u32 %v2482_v35, %v2481_v28  ;;  %v1873_v39 = vadd.f32 %v8361_v34, %v1756_v38  ;;  %v2468_v10 = vshrl.u32 %v10427_v51, %v2467_v32 }
 0x299   : > { %vm2485_vm13 = vcmp.lt.s32.totalorder %v2465_v46, 2  ;;  %vm2487_vm15 = vcmp.lt.s32.totalorder %v2465_v46, 4  ;;  %v2492_v31 = vsel %vm2484_vm12, %v2471_v12, %v2474_v43  ;;  %vm2486_vm14 = vcmp.lt.s32.totalorder %v2465_v46, 3 }
 0x29a   : > { %v2412_v7 = vshll.u32 %v8619_v11, 30  ;;  %v2489_v37 = vsel %vm2487_vm15, %v2477_v25, 2102212464  ;;  %v2493_v36 = vsel %vm2487_vm15, %v2480_v55, 920167782  ;;  %v2488_v58 = vsel %vm2484_vm12, %v2468_v10, %v2471_v12  ;;  %v1761_v12 = vpop.permute.xlu1 %1760 }
 0x29b   : > { %v2494_v15 = vsel %vm2486_vm14, %v2477_v25, %v2493_v36  ;;  %v2496_v50 = vsel %vm2484_vm12, %v2474_v43, %v2477_v25  ;;  %v2497_v1 = vsel %vm2487_vm15, %v2483_v21, 1326507024  ;;  %v2490_v27 = vsel %vm2486_vm14, %v2474_v43, %v2489_v37 }
 0x29c   : > { %v8624_v8 = vsub.s32 %v2409_v59, %v2412_v7  ;;  %v2495_v23 = vsel %vm2485_vm13, %v2492_v31, %v2494_v15  ;;  %v2498_v34 = vsel %vm2486_vm14, %v2480_v55, %v2497_v1  ;;  %v2215_v32 = vsub.s32 32, %v8606_v54 }
 0x29d   : > { %v2499_v28 = vsel %vm2485_vm13, %v2496_v50, %v2498_v34  ;;  %v8630_v35 = vmul.u32.u64.low %v8604_v63, %v2495_v23  ;;  %v8631_v24 = vmul.u32.u64.high %v8604_v63, %v2495_v23, %v8630_v35  ;;  %v1902_v59 = vadd.f32 %v1896_v2, %v8404_v44 }
 0x29e   : > { %v2415_v10 = vsub.s32 0, %v8624_v8  ;;  %v8636_v36 = vmul.u32.u64.low %v8604_v63, %v2499_v28  ;;  %v8637_v21 = vmul.u32.u64.high %v8604_v63, %v2499_v28, %v8636_v36  ;;  %v2219_v43 = vsub.s32 4294967266, %v8606_v54 }
 0x29f   : > { %v2491_v25 = vsel %vm2485_vm13, %v2488_v58, %v2490_v27  ;;  %v1897_v55 = vmul.f32 %v1873_v39, %v1873_v39  ;;  %v1875_v31 = vadd.f32 %v8364_v26, %v1756_v38  ;;  %v8644_v37 = vmul.f32 -30.0, %v1869_v57 }
 0x2a0   : > { %v6623_v7 = vmin.u32 %v2415_v10, %v8624_v8  ;;  %v8646_v15 = vmul.f32 100.0, %v1902_v59  ;;  %v1879_v50 = vadd.f32 %v8376_v49, %v1761_v12  ;;  %vm2281_vm0 = vcmp.lt.s32.totalorder %v8582_v33, 4 }
 0x2a1   : > { %v2510_v44 = vadd.s32 1, %v8631_v24  ;;  %v1903_v2 = vadd.f32 %v1897_v55, %v8461_v3  ;;  %v1898_v1 = vmul.f32 %v1875_v31, %v1875_v31  ;;  %v1881_v46 = vadd.f32 %v8378_v13, %v1761_v12 }
 0x2a2   : > { %vm1939_vm6 = vcmp.lt.s32.totalorder %v8324_v16, 0  ;;  %v2417_v26 = vclz %v6623_v7  ;;  %v2507_v38 = vmul.u32 %v8604_v63, %v2491_v25  ;;  %vm2509_vm3 = vc.u32 %v8637_v21, %v8630_v35 }
 0x2a3   : > { %v1914_v49 = vsub.f32 %v8644_v37, %v8646_v15  ;;  %v2511_v57 = vsel %vm2509_vm3, %v2510_v44, %v8631_v24  ;;  %v8660_v58 = vmul.f32 -30.0, %v1873_v39  ;;  %v8662_v27 = vmul.f32 100.0, %v1903_v2 }
 0x2a4   : > { %v1904_v3 = vadd.f32 %v1898_v1, %v8471_v42  ;;  %v2220_v13 = vadd.s32 127, %v2219_v43  ;;  %v6624_v23 = vadd.s32 4294967294, %v2417_v26  ;;  %v2512_v34 = vadd.s32 %v2511_v57, %v2507_v38 }
 0x2a5   : > { %v1899_v28 = vmul.f32 %v1879_v50, %v1879_v50  ;;  %v1915_v63 = vsub.f32 %v8660_v58, %v8662_v27  ;;  %v8667_v10 = vmul.f32 -30.0, %v1875_v31  ;;  %v1900_v59 = vmul.f32 %v1881_v46, %v1881_v46 }
 0x2a6   : > { %v8669_v36 = vmul.f32 100.0, %v1904_v3  ;;  %v2216_v24 = vshll.u32 %v8542_v17, %v8606_v54  ;;  %vm6625_vm4 = vcmp.lt.s32.totalorder %v6624_v23, 0  ;;  %v2513_v39 = vadd.s32 536870912, %v2512_v34 }
 0x2a7   : > { %v1905_v12 = vadd.f32 %v1899_v28, %v8500_v0  ;;  %v2217_v42 = vshrl.u32 %v8591_v9, %v2215_v32  ;;  %v2420_v43 = vsel %vm6625_vm4, 0, %v6624_v23  ;;  %v1906_v55 = vadd.f32 %v1900_v59, %v8504_v5 }
 0x2a8   : > { %v1916_v25 = vsub.f32 %v8667_v10, %v8669_v36  ;;  %v2221_v31 = vshll.u32 %v2220_v13, 23  ;;  %v2425_v7 = vsub.s32 4294967266, %v2420_v43  ;;  %v8678_v44 = vshrl.u32 %v2513_v39, 30 }
 0x2a9   : > { %v10431_v2 = vsub.f32 %v8520_v30, %v8522_v20  ;;  %v8683_v54 = vmul.f32 -30.0, %v1879_v50  ;;  %v8685_v1 = vmul.f32 100.0, %v1905_v12  ;;  %v8687_v0 = vmul.f32 -30.0, %v1881_v46 }
 0x2aa   : > { %v8689_v9 = vmul.f32 100.0, %v1906_v55  ;;  %v8694_v5 = vsel %vm2281_vm0, %v8594_v52, 920167782  ;;  %v10432_v32 = vor.u32 %v8537_v40, %v8586_v60  ;;  %v2426_v20 = vadd.s32 127, %v2425_v7 }
 0x2ab   : > { %v1919_v17 = vmul.f32 1.442695, %v10431_v2  ;;  %v2515_v50 = vshll.u32 %v8678_v44, 30  ;;  %v10433_v46 = vxor.u32 2147483648, %v8577_v6  ;;  %v2218_v38 = vor.u32 %v2217_v42, %v2216_v24 }
 0x2ac   : > { %v8701_v30 = vsel %vm2281_vm0, %v10432_v32, 1326507024  ;;  %v1917_v57 = vsub.f32 %v8683_v54, %v8685_v1  ;;  %v1918_v40 = vsub.f32 %v8687_v0, %v8689_v9  ;;  %v2405_v60 = vadd.s32 %v8573_v61, %v8571_v29 }
 0x2ad   : > { %v8709_v26 = vsel %vm1939_vm6, %v10433_v46, %v8577_v6  ;;  %v2421_v3 = vsub.s32 32, %v2420_v43  ;;  %v8717_v13 = vsub.s32 %v2512_v34, %v2515_v50  ;;  %7145 = vpow2.f32 %v1919_v17 }
 0x2ae   : > { %v2222_v23 = vor.u32 4788187, %v2221_v31  ;;  %v10434_v28 = vand.u32 2147483647, %v8327_v47  ;;  %v2057_v6 = vshll.u32 %v10427_v51, %v8394_v48  ;;  %v2058_v24 = vshrl.u32 %v10429_v41, %v8417_v62 }
 0x2af   : > { %v2427_v39 = vshll.u32 %v2426_v20, 23  ;;  %v2518_v12 = vsub.s32 0, %v8717_v13  ;;  %v2060_v29 = vshll.u32 %v10429_v41, %v8394_v48  ;;  %v2061_v61 = vshrl.u32 %v10430_v45, %v8417_v62 }
 0x2b0   : > { %v2047_v59 = vand.u32 8388607, %v10434_v28  ;;  %v2225_v34 = vcvt.s32.f32 %v2218_v38  ;;  %v2059_v42 = vor.u32 %v2058_v24, %v2057_v6  ;;  %v2063_v55 = vshll.u32 %v10430_v45, %v8394_v48 }
 0x2b1   : > { %v2064_v31 = vshrl.u32 %v10428_v56, %v8417_v62  ;;  %v2422_v7 = vshll.u32 %v8624_v8, %v2420_v43  ;;  %v2423_v2 = vshrl.u32 %v2405_v60, %v2421_v3  ;;  %v6627_v17 = vmin.u32 %v2518_v12, %v8717_v13 }
 0x2b2   : > { %v2062_v32 = vor.u32 %v2061_v61, %v2060_v29  ;;  %v2048_v20 = vor.u32 8388608, %v2047_v59  ;;  %v2056_v50 = vshrl.u32 %v10427_v51, %v8417_v62  ;;  %vm2072_vm5 = vcmp.lt.s32.totalorder %v8476_v4, 1 }
 0x2b3   : > { %v2065_v46 = vor.u32 %v2064_v31, %v2063_v55  ;;  %v2428_v38 = vor.u32 4788187, %v2427_v39  ;;  %v2520_v28 = vclz %v6627_v17  ;;  %vm2074_vm7 = vcmp.lt.s32.totalorder %v8476_v4, 3 }
 0x2b4   : > { %v2080_v48 = vsel %vm2072_vm5, %v2059_v42, %v2062_v32  ;;  %v2086_v60 = vsel %vm2074_vm7, %v8484_v14, %v8528_v22  ;;  %v2223_v3 = vand.u32 2147483647, %v2222_v23  ;;  %v2424_v59 = vor.u32 %v2423_v2, %v2422_v7 }
 0x2b5   : > { %v2077_v6 = vsel %vm2075_vm1, %v2065_v46, 2102212464  ;;  %v2082_v8 = vsel %vm2074_vm7, %v2065_v46, %v8511_v53  ;;  %v2084_v43 = vsel %vm2072_vm5, %v2062_v32, %v2065_v46  ;;  %v6628_v62 = vadd.s32 4294967294, %v2520_v28 }
 0x2b6   : > { %vm2073_vm8 = vcmp.lt.s32.totalorder %v8476_v4, 2  ;;  %v2076_v24 = vsel %vm2072_vm5, %v2056_v50, %v2059_v42  ;;  %v2078_v39 = vsel %vm2074_vm7, %v2062_v32, %v2077_v6  ;;  %v2088_v29 = vshll.u32 %v2048_v20, 8  ;;  %v10435_v6 = vld [vmem:[#allocation11_spill] sm:$0xff] }
 0x2b7   : > { %v2087_v12 = vsel %vm2073_vm8, %v2084_v43, %v2086_v60  ;;  %v8748_v61 = vpop.eup %7145  ;;  %v2429_v55 = vand.u32 2147483647, %v2428_v38  ;;  %vm6629_vm1 = vcmp.lt.s32.totalorder %v6628_v62, 0  ;;  %v1921_v53 = vmul.f32 1.442695, %v1914_v49 }
 0x2b8   : > { %v2083_v14 = vsel %vm2073_vm8, %v2080_v48, %v2082_v8  ;;  %v2523_v22 = vsel %vm6629_vm1, 0, %v6628_v62  ;;  %v8755_v23 = vmul.u32.u64.low %v2088_v29, %v2087_v12  ;;  %v8756_v31 = vmul.u32.u64.high %v2088_v29, %v2087_v12, %v8755_v23 }
 0x2b9   : > { %v2246_v42 = vand.u32 2147483647, %v8345_v18  ;;  %v2508_v7 = vadd.s32 %v8630_v35, %v8637_v21  ;;  %v2524_v2 = vsub.s32 32, %v2523_v22  ;;  %v2528_v17 = vsub.s32 4294967266, %v2523_v22 }
 0x2ba   : > { %v2079_v32 = vsel %vm2073_vm8, %v2076_v24, %v2078_v39  ;;  %v8763_v20 = vmul.f32 %v2225_v34, %v2223_v3  ;;  %v2431_v37 = vcvt.s32.f32 %v2424_v59  ;;  %7147 = vpow2.f32 %v1921_v53 }
 0x2bb   : > { %v8765_v15 = vmul.u32.u64.low %v2088_v29, %v2083_v14  ;;  %v8766_v49 = vmul.u32.u64.high %v2088_v29, %v2083_v14, %v8765_v15  ;;  %v2526_v50 = vshrl.u32 %v2508_v7, %v2524_v2  ;;  %v2529_v46 = vadd.s32 127, %v2528_v17  ;;  %v10437_v7 = vld [vmem:[#allocation7_spill] sm:$0xff] }
 0x2bc   : > { %v1923_v38 = vmul.f32 1.442695, %v1915_v63  ;;  %v2432_v35 = vmul.f32 %v2431_v37, %v2429_v55  ;;  %v2525_v21 = vshll.u32 %v8717_v13, %v2523_v22  ;;  %v2095_v28 = vmul.u32 %v2088_v29, %v2079_v32  ;;  %v10436_v13 = vld [vmem:[#allocation9_spill] sm:$0xff] }
 0x2bd   : > { %v2253_v4 = vand.u32 8388607, %v2246_v42  ;;  %v2530_v34 = vshll.u32 %v2529_v46, 23  ;;  %vm2097_vm9 = vc.u32 %v8756_v31, %v8765_v15  ;;  %v2263_v48 = vshll.u32 %v10427_v51, %v8496_v19 }
 0x2be   : > { %v2264_v8 = vshrl.u32 %v10429_v41, %v10435_v6  ;;  %v2527_v43 = vor.u32 %v2526_v50, %v2525_v21  ;;  %v2098_v58 = vadd.s32 1, %v8766_v49  ;;  %v2266_v27 = vshll.u32 %v10429_v41, %v8496_v19 }
 0x2bf   : > { %v2267_v63 = vshrl.u32 %v10430_v45, %v10435_v6  ;;  %vm2351_vm10 = vcmp.lt.s32.totalorder %v10436_v13, 0  ;;  %v2531_v60 = vor.u32 4788187, %v2530_v34  ;;  %v2269_v59 = vshll.u32 %v10430_v45, %v8496_v19 }
 0x2c0   : > { %v2265_v3 = vor.u32 %v2264_v8, %v2263_v48  ;;  %v2270_v62 = vshrl.u32 %v10428_v56, %v10435_v6  ;;  %v2099_v24 = vsel %vm2097_vm9, %v2098_v58, %v8766_v49  ;;  %v2254_v39 = vor.u32 8388608, %v2253_v4 }
 0x2c1   : > { %v2268_v12 = vor.u32 %v2267_v63, %v2266_v27  ;;  %vm2278_vm11 = vcmp.lt.s32.totalorder %v8582_v33, 1  ;;  %v2532_v29 = vand.u32 2147483647, %v2531_v60  ;;  %v2100_v55 = vadd.s32 %v2099_v24, %v2095_v28 }
 0x2c2   : > { %v2271_v53 = vor.u32 %v2270_v62, %v2269_v59  ;;  %vm2280_vm12 = vcmp.lt.s32.totalorder %v8582_v33, 3  ;;  %v2433_v14 = vxor.u32 2147483648, %v2432_v35  ;;  %v1927_v22 = vmul.f32 1.442695, %v1917_v57  ;;  %v10444_v62 = vld [vmem:[#allocation10_spill] sm:$0xff] }
 0x2c3   : > { %v2286_v19 = vsel %vm2278_vm11, %v2265_v3, %v2268_v12  ;;  %v2292_v23 = vsel %vm2280_vm12, %v8594_v52, %v8701_v30  ;;  %vm2145_vm13 = vcmp.lt.s32.totalorder %v10437_v7, 0  ;;  %v10438_v2 = vand.u32 2147483647, %v10436_v13 }
 0x2c4   : > { %v2534_v32 = vcvt.s32.f32 %v2527_v43  ;;  %v2101_v37 = vadd.s32 536870912, %v2100_v55  ;;  %vm2279_vm14 = vcmp.lt.s32.totalorder %v8582_v33, 2  ;;  %v2288_v54 = vsel %vm2280_vm12, %v2271_v53, %v8694_v5  ;;  %v8821_v49 = vpop.eup %7147 }
 0x2c5   : > { %vm8806_vm15 = vcmp.le.f32.partialorder %v10438_v2, 0.7853982  ;;  %vm2042_vm3 = vcmp.lt.s32.totalorder %v8327_v47, 0  ;;  %v2283_v52 = vsel %vm2281_vm0, %v2271_v53, 2102212464  ;;  %v2289_v1 = vsel %vm2279_vm14, %v2286_v19, %v2288_v54  ;;  %v10449_v2 = vld [vmem:[#allocation12_spill] sm:$0xff] }
 0x2c6   : > { %v2290_v30 = vsel %vm2278_vm11, %v2268_v12, %v2271_v53  ;;  %v2294_v57 = vshll.u32 %v2254_v39, 8  ;;  %v2535_v50 = vmul.f32 %v2534_v32, %v2532_v29  ;;  %v2102_v46 = vshrl.u32 %v2101_v37, 30 }
 0x2c7   : > { %v2262_v21 = vshrl.u32 %v10427_v51, %v10435_v6  ;;  %v2293_v5 = vsel %vm2279_vm14, %v2290_v30, %v2292_v23  ;;  %v1929_v8 = vmul.f32 1.442695, %v1918_v40  ;;  %v2284_v6 = vsel %vm2280_vm12, %v2268_v12, %v2283_v52 }
 0x2c8   : > { %v8827_v28 = vmul.u32.u64.low %v2294_v57, %v2293_v5  ;;  %v8828_v4 = vmul.u32.u64.high %v2294_v57, %v2293_v5, %v8827_v28  ;;  %v8830_v34 = vmul.u32.u64.low %v2294_v57, %v2289_v1  ;;  %v8831_v48 = vmul.u32.u64.high %v2294_v57, %v2289_v1, %v8830_v34 }
 0x2c9   : > { %v2103_v43 = vshll.u32 %v2102_v46, 30  ;;  %v2282_v58 = vsel %vm2278_vm11, %v2262_v21, %v2265_v3  ;;  %v2227_v27 = vxor.u32 2147483648, %v8763_v20  ;;  %v2434_v63 = vsel %vm2351_vm10, %v2433_v14, %v2432_v35  ;;  %v10445_v35 = vld [vmem:[#allocation8_spill] sm:$0xff] }
 0x2ca   : > { %7149 = vpow2.f32 %v1923_v38  ;;  %v10441_v60 = vand.u32 2147483647, %v8324_v16  ;;  %v2536_v0 = vxor.u32 2147483648, %v2535_v50  ;;  %v2126_v40 = vsub.s32 4, %v2102_v46 }
 0x2cb   : > { %v8850_v9 = vsub.s32 %v2100_v55, %v2103_v43  ;;  %vm2454_vm4 = vcmp.lt.s32.totalorder %v10444_v62, 0  ;;  %7151 = vpow2.f32 %v1927_v22  ;;  %v2285_v38 = vsel %vm2279_vm14, %v2282_v58, %v2284_v6 }
 0x2cc   : > { %vm8846_vm0 = vcmp.le.f32.partialorder %v10441_v60, 0.7853982  ;;  %v2023_v24 = vsub.s32 4, %v10445_v35  ;;  %7153 = vpow2.f32 %v1929_v8  ;;  %vm2303_vm5 = vc.u32 %v8828_v4, %v8830_v34 }
 0x2cd   : > { %v2025_v3 = vsel %vm8846_vm0, %v8324_v16, %v8709_v26  ;;  %v2106_v39 = vsub.s32 0, %v8850_v9  ;;  %v2304_v12 = vadd.s32 1, %v8831_v48  ;;  %v2228_v26 = vsel %vm2145_vm13, %v2227_v27, %v8763_v20 }
 0x2ce   : > { %v2437_v29 = vsel %vm8806_vm15, %v10436_v13, %v2434_v63  ;;  %v10446_v33 = vand.u32 2147483647, %v10444_v62  ;;  %7155 = vcosq.f32 %v2025_v3  ;;  %v2537_v53 = vsel %vm2454_vm4, %v2536_v0, %v2535_v50 }
 0x2cf   : > { %v6611_v14 = vmin.u32 %v2106_v39, %v8850_v9  ;;  %v2127_v22 = vsel %vm2042_vm3, %v2126_v40, %v2102_v46  ;;  %v2301_v20 = vmul.u32 %v2294_v57, %v2285_v38  ;;  %v2305_v19 = vsel %vm2303_vm5, %v2304_v12, %v8831_v48 }
 0x2d0   : > { %vm8872_vm7 = vcmp.le.f32.partialorder %v10446_v33, 0.7853982  ;;  %v2024_v23 = vsel %vm1939_vm6, %v2023_v24, %v10445_v35  ;;  %7157 = vsinq.f32 %v2025_v3  ;;  %v2229_v32 = vsub.s32 4, %v10449_v2 }
 0x2d1   : > { %7159 = vcosq.f32 %v2437_v29  ;;  %v2108_v37 = vclz %v6611_v14  ;;  %v2306_v54 = vadd.s32 %v2305_v19, %v2301_v20  ;;  %v10450_v52 = vand.u32 2147483647, %v10437_v7 }
 0x2d2   : > { %7161 = vsinq.f32 %v2437_v29  ;;  %v2540_v30 = vsel %vm8872_vm7, %v10444_v62, %v2537_v53  ;;  %v10453_v57 = vand.u32 2147483647, %v8327_v47  ;;  %v2026_v48 = vsel %vm8846_vm0, 0, %v2024_v23 }
 0x2d3   : > { %vm8888_vm8 = vcmp.le.f32.partialorder %v10450_v52, 0.7853982  ;;  %v6612_v21 = vadd.s32 4294967294, %v2108_v37  ;;  %v2307_v28 = vadd.s32 536870912, %v2306_v54  ;;  %v2230_v43 = vsel %vm2145_vm13, %v2229_v32, %v10449_v2 }
 0x2d4   : > { %vm8897_vm6 = vcmp.le.f32.partialorder %v10453_v57, 0.7853982  ;;  %v2231_v46 = vsel %vm8888_vm8, %v10437_v7, %v2228_v26  ;;  %v8910_v8 = vpop.eup %7149  ;;  %v2096_v58 = vadd.s32 %v8765_v15, %v8756_v31  ;;  %v2030_v59 = vand.u32 3, %v2026_v48 }
 0x2d5   : > { %v8906_v5 = vsel %vm8897_vm6, 0, %v2127_v22  ;;  %7163 = vcosq.f32 %v2231_v46  ;;  %vm6613_vm1 = vcmp.lt.s32.totalorder %v6612_v21, 0  ;;  %v2308_v6 = vshrl.u32 %v2307_v28, 30  ;;  %v8917_v27 = vpop.eup %7151 }
 0x2d6   : > { %7165 = vsinq.f32 %v2231_v46  ;;  %v2111_v63 = vsel %vm6613_vm1, 0, %v6612_v21  ;;  %v2764_v60 = vadd.s32 3, %v8906_v5  ;;  %v8920_v0 = vpop.eup %7153  ;;  %v2232_v35 = vsel %vm8888_vm8, 0, %v2230_v43 }
 0x2d7   : > { %7167 = vcosq.f32 %v2540_v30  ;;  %v2112_v40 = vsub.s32 32, %v2111_v63  ;;  %v2116_v3 = vsub.s32 4294967266, %v2111_v63  ;;  %v2309_v38 = vshll.u32 %v2308_v6, 30 }
 0x2d8   : > { %v8924_v24 = vpop.eup %7155  ;;  %7169 = vsinq.f32 %v2540_v30  ;;  %v2113_v31 = vshll.u32 %v8850_v9, %v2111_v63  ;;  %vm2248_vm9 = vcmp.lt.s32.totalorder %v8345_v18, 0  ;;  %vm2029_vm11 = vweird.f32 %v8324_v16 }
 0x2d9   : > { %v2114_v15 = vshrl.u32 %v2096_v58, %v2112_v40  ;;  %v2117_v39 = vadd.s32 127, %v2116_v3  ;;  %v8928_v12 = vsub.s32 %v2306_v54, %v2309_v38  ;;  %v2036_v26 = vxor.u32 2147483648, %v8924_v24 }
 0x2da   : > { %v7158_v29 = vpop.eup %7157  ;;  %v2302_v33 = vadd.s32 %v8830_v34, %v8828_v4  ;;  %v8934_v53 = vand.u32 3, %v2764_v60  ;;  %v2236_v14 = vand.u32 3, %v2232_v35  ;;  %v2660_v22 = vadd.s32 3, %v2026_v48 }
 0x2db   : > { %v8936_v20 = vpop.eup %7159  ;;  %v2115_v9 = vor.u32 %v2114_v15, %v2113_v31  ;;  %v2118_v19 = vshll.u32 %v2117_v39, 23  ;;  %v2312_v23 = vsub.s32 0, %v8928_v12  ;;  %vm2031_vm12 = vcmp.lt.s32.totalorder %v2030_v59, 2 }
 0x2dc   : > { %v8939_v2 = vpop.eup %7161  ;;  %v2332_v32 = vsub.s32 4, %v2308_v6  ;;  %vm2032_vm13 = vcmp.eq.s32.totalorder %v2030_v59, 0  ;;  %v2033_v37 = vxor.u32 2147483648, %v7158_v29  ;;  %vm2035_vm14 = vcmp.eq.s32.totalorder %v2030_v59, 2 }
 0x2dd   : > { %v2119_v54 = vor.u32 4788187, %v2118_v19  ;;  %v6619_v4 = vmin.u32 %v2312_v23, %v8928_v12  ;;  %v2037_v34 = vsel %vm2035_vm14, %v2036_v26, %v7158_v29  ;;  %vm2235_vm0 = vweird.f32 %v10437_v7 }
 0x2de   : > { %v2868_v52 = vadd.s32 3, %v2232_v35  ;;  %v2122_v30 = vcvt.s32.f32 %v2115_v9  ;;  %vm2237_vm5 = vcmp.lt.s32.totalorder %v2236_v14, 2  ;;  %v2661_v57 = vand.u32 3, %v2660_v22 }
 0x2df   : > { %v8943_v1 = vpop.eup %7163  ;;  %v2538_v46 = vsub.s32 4, %v8678_v44  ;;  %v2120_v28 = vand.u32 2147483647, %v2119_v54  ;;  %v2314_v48 = vclz %v6619_v4  ;;  %v2034_v43 = vsel %vm2032_vm13, %v8924_v24, %v2033_v37 }
 0x2e0   : > { %v8946_v21 = vpop.eup %7165  ;;  %v2242_v58 = vxor.u32 2147483648, %v8943_v1  ;;  %v2333_v60 = vsel %vm2248_vm9, %v2332_v32, %v2308_v6  ;;  %v2038_v40 = vsel %vm2031_vm12, %v2034_v43, %v2037_v34  ;;  %vm2238_vm8 = vcmp.eq.s32.totalorder %v2236_v14, 0 }
 0x2e1   : > { %v8951_v63 = vpop.eup %7167  ;;  %vm2241_vm1 = vcmp.eq.s32.totalorder %v2236_v14, 2  ;;  %v2123_v3 = vmul.f32 %v2122_v30, %v2120_v28  ;;  %v6620_v38 = vadd.s32 4294967294, %v2314_v48  ;;  %v2239_v35 = vxor.u32 2147483648, %v8946_v21 }
 0x2e2   : > { %v8957_v31 = vand.u32 3, %v2868_v52  ;;  %v8959_v15 = vpop.eup %7169  ;;  %v2039_v39 = vsel %vm2029_vm11, nan, %v2038_v40  ;;  %v2243_v22 = vsel %vm2241_vm1, %v2242_v58, %v8946_v21  ;;  %vm2662_vm13 = vcmp.lt.s32.totalorder %v2661_v57, 2 }
 0x2e3   : > { %v2539_v6 = vsel %vm2454_vm4, %v2538_v46, %v8678_v44  ;;  %v2124_v59 = vxor.u32 2147483648, %v2123_v3  ;;  %vm6621_vm12 = vcmp.lt.s32.totalorder %v6620_v38, 0  ;;  %v2240_v9 = vsel %vm2238_vm8, %v8943_v1, %v2239_v35 }
 0x2e4   : > { %vm2663_vm14 = vcmp.eq.s32.totalorder %v2661_v57, 0  ;;  %v2317_v19 = vsel %vm6621_vm12, 0, %v6620_v38  ;;  %v2244_v23 = vsel %vm2237_vm5, %v2240_v9, %v2243_v22  ;;  %vm2666_vm2 = vcmp.eq.s32.totalorder %v2661_v57, 2 }
 0x2e5   : > { %v2665_v32 = vsel %vm2663_vm14, %v8924_v24, %v2033_v37  ;;  %v2125_v54 = vsel %vm2042_vm3, %v2124_v59, %v2123_v3  ;;  %v2318_v4 = vsub.s32 32, %v2317_v19  ;;  %v2322_v34 = vsub.s32 4294967266, %v2317_v19 }
 0x2e6   : > { %v2668_v52 = vsel %vm2666_vm2, %v2036_v26, %v7158_v29  ;;  %v2128_v44 = vsel %vm8897_vm6, %v8327_v47, %v2125_v54  ;;  %v2319_v30 = vshll.u32 %v8928_v12, %v2317_v19  ;;  %v2245_v46 = vsel %vm2235_vm0, nan, %v2244_v23 }
 0x2e7   : > { %v8983_v14 = vmul.f32 %v8748_v61, %v2039_v39  ;;  %7171 = vcosq.f32 %v2128_v44  ;;  %v2320_v24 = vshrl.u32 %v2302_v33, %v2318_v4  ;;  %v2323_v37 = vadd.s32 127, %v2322_v34 }
 0x2e8   : > { %v8986_v28 = vmul.f32 %v8910_v8, %v2245_v46  ;;  %v8991_v26 = vmul.f32 1.442695, %v1916_v25  ;;  %7173 = vsinq.f32 %v2128_v44  ;;  %v2669_v50 = vsel %vm2662_vm13, %v2665_v32, %v2668_v52 }
 0x2e9   : > { %vm8996_vm2 = vcmp.le.f32.partialorder %v2246_v42, 0.7853982  ;;  %v2321_v29 = vor.u32 %v2320_v24, %v2319_v30  ;;  %v2324_v33 = vshll.u32 %v2323_v37, 23  ;;  %v9003_v43 = vand.u32 3, %v8906_v5 }
 0x2ea   : > { %v6911_v48 = vpack.c.bf16 %v8986_v28, %v8983_v14  ;;  %v9007_v10 = vsel %vm8996_vm2, 0, %v2333_v60  ;;  %v2541_v36 = vsel %vm8872_vm7, 0, %v2539_v6  ;;  %v2548_v25 = vxor.u32 2147483648, %v8959_v15  ;;  %v6657_v14 = vld [vmem:[%s10368_s3 + $0x48] sm:$0xff]  ;;  %v6658_v28 = vld [vmem:[%s10368_s3 + $0x50] sm:$0xff] }
 0x2eb   : > { %v2325_v42 = vor.u32 4788187, %v2324_v33  ;;  %vm2770_vm3 = vcmp.eq.s32.totalorder %v8934_v53, 2  ;;  %v2670_v57 = vsel %vm2029_vm11, nan, %v2669_v50  ;;  %vm2871_vm4 = vcmp.eq.s32.totalorder %v8957_v31, 0 }
 0x2ec   : > { %v2545_v40 = vand.u32 3, %v2541_v36  ;;  %v2328_v5 = vcvt.s32.f32 %v2321_v29  ;;  %vm2767_vm6 = vcmp.eq.s32.totalorder %v8934_v53, 0  ;;  %vm2874_vm5 = vcmp.eq.s32.totalorder %v8957_v31, 2 }
 0x2ed   : > { %v2551_v60 = vxor.u32 2147483648, %v8951_v63  ;;  %v2435_v55 = vsub.s32 4, %v8619_v11  ;;  %v2326_v3 = vand.u32 2147483647, %v2325_v42  ;;  %vm2766_vm7 = vcmp.lt.s32.totalorder %v8934_v53, 2 }
 0x2ee   : > { %vm2547_vm8 = vcmp.eq.s32.totalorder %v2545_v40, 0  ;;  %vm2550_vm1 = vcmp.eq.s32.totalorder %v2545_v40, 2  ;;  %v2445_v16 = vxor.u32 2147483648, %v8939_v2  ;;  %vm2132_vm11 = vweird.f32 %v8327_v47  ;;  %v6654_v47 = vld [vmem:[%s10368_s3 + $0x30] sm:$0xff] }
 0x2ef   : > { %vm2546_vm13 = vcmp.lt.s32.totalorder %v2545_v40, 2  ;;  %v2549_v38 = vsel %vm2547_vm8, %v8951_v63, %v2548_v25  ;;  %v2552_v39 = vsel %vm2550_vm1, %v2551_v60, %v8959_v15  ;;  %v2436_v22 = vsel %vm2351_vm10, %v2435_v55, %v8619_v11 }
 0x2f0   : > { %v2329_v6 = vmul.f32 %v2328_v5, %v2326_v3  ;;  %v2553_v59 = vsel %vm2546_vm13, %v2549_v38, %v2552_v39  ;;  %v2438_v9 = vsel %vm8806_vm15, 0, %v2436_v22  ;;  %v2448_v19 = vxor.u32 2147483648, %v8936_v20 }
 0x2f1   : > { %v2873_v23 = vsel %vm2871_vm4, %v8943_v1, %v2239_v35  ;;  %v2876_v32 = vsel %vm2874_vm5, %v2242_v58, %v8946_v21  ;;  %vm2544_vm10 = vweird.f32 %v10444_v62  ;;  %v2442_v11 = vand.u32 3, %v2438_v9  ;;  %v7172_v54 = vpop.eup %7171 }
 0x2f2   : > { %v2330_v17 = vxor.u32 2147483648, %v2329_v6  ;;  %v2554_v4 = vsel %vm2544_vm10, nan, %v2553_v59  ;;  %v3180_v34 = vadd.s32 3, %v2541_v36  ;;  %v3076_v52 = vadd.s32 3, %v2438_v9  ;;  %v7174_v44 = vpop.eup %7173 }
 0x2f3   : > { %v2139_v30 = vxor.u32 2147483648, %v7172_v54  ;;  %vm2443_vm15 = vcmp.lt.s32.totalorder %v2442_v11, 2  ;;  %vm2444_vm12 = vcmp.eq.s32.totalorder %v2442_v11, 0  ;;  %vm2447_vm14 = vcmp.eq.s32.totalorder %v2442_v11, 2 }
 0x2f4   : > { %v2136_v35 = vxor.u32 2147483648, %v7174_v44  ;;  %v2331_v1 = vsel %vm2248_vm9, %v2330_v17, %v2329_v6  ;;  %v2446_v21 = vsel %vm2444_vm12, %v8936_v20, %v2445_v16  ;;  %v2449_v58 = vsel %vm2447_vm14, %v2448_v19, %v8939_v2 }
 0x2f5   : > { %v2334_v46 = vsel %vm8996_vm2, %v8345_v18, %v2331_v1  ;;  %v2772_v24 = vsel %vm2770_vm3, %v2139_v30, %v7174_v44  ;;  %vm2441_vm4 = vweird.f32 %v10436_v13  ;;  %v2450_v37 = vsel %vm2443_vm15, %v2446_v21, %v2449_v58 }
 0x2f6   : > { %7175 = vcosq.f32 %v2334_v46  ;;  %v2769_v50 = vsel %vm2767_vm6, %v7172_v54, %v2136_v35  ;;  %v2451_v29 = vsel %vm2441_vm4, nan, %v2450_v37  ;;  %v9063_v33 = vmul.f32 %v8748_v61, %v2670_v57 }
 0x2f7   : > { %7177 = vsinq.f32 %v2334_v46  ;;  %v2773_v12 = vsel %vm2766_vm7, %v2769_v50, %v2772_v24  ;;  %v9068_v36 = vmul.f32 %v8920_v0, %v2554_v4  ;;  %v9071_v42 = vmul.f32 %v8917_v27, %v2451_v29  ;;  %v3232_v24 = vpop.permute.xlu0 %3231 }
 0x2f8   : > { %7179 = vpow2.f32 %v8991_v26  ;;  %v2774_v40 = vsel %vm2132_vm11, nan, %v2773_v12  ;;  %v3181_v5 = vand.u32 3, %v3180_v34  ;;  %v3077_v55 = vand.u32 3, %v3076_v52 }
 0x2f9   : > { %v2972_v61 = vadd.s32 3, %v9007_v10  ;;  %vm2870_vm9 = vcmp.lt.s32.totalorder %v8957_v31, 2  ;;  %v3192_v53 = vmul.f32 %v8821_v49, %v2774_v40  ;;  %v6915_v57 = vpack.c.bf16 %v9063_v33, %v9071_v42 }
 0x2fa   : > { %vm2135_vm2 = vcmp.eq.s32.totalorder %v9003_v43, 0  ;;  %vm2138_vm3 = vcmp.eq.s32.totalorder %v9003_v43, 2  ;;  %v2339_v26 = vand.u32 3, %v9007_v10  ;;  %v2877_v3 = vsel %vm2870_vm9, %v2873_v23, %v2876_v32 }
 0x2fb   : > { %v6913_v38 = vpack.c.bf16 %v3192_v53, %v9068_v36  ;;  %vm3183_vm6 = vcmp.eq.s32.totalorder %v3181_v5, 0  ;;  %vm3186_vm5 = vcmp.eq.s32.totalorder %v3181_v5, 2  ;;  %vm3079_vm7 = vcmp.eq.s32.totalorder %v3077_v55, 0  ;;  %v3237_v36 = vpop.permute.xlu1 %3236 }
 0x2fc   : > { %v3185_v31 = vsel %vm3183_vm6, %v8951_v63, %v2548_v25  ;;  %v3188_v39 = vsel %vm3186_vm5, %v2551_v60, %v8959_v15  ;;  %v3081_v22 = vsel %vm3079_vm7, %v8936_v20, %v2445_v16  ;;  %vm3082_vm8 = vcmp.eq.s32.totalorder %v3077_v55, 2 }
 0x2fd   : > { %v2973_v6 = vand.u32 3, %v2972_v61  ;;  %v2878_v10 = vsel %vm2235_vm0, nan, %v2877_v3  ;;  %vm3078_vm1 = vcmp.lt.s32.totalorder %v3077_v55, 2  ;;  %v3084_v59 = vsel %vm3082_vm8, %v2448_v19, %v8939_v2 }
 0x2fe   : > { %v2137_v9 = vsel %vm2135_vm2, %v7172_v54, %v2136_v35  ;;  %v2140_v25 = vsel %vm2138_vm3, %v2139_v30, %v7174_v44  ;;  %vm3182_vm13 = vcmp.lt.s32.totalorder %v3181_v5, 2  ;;  %v3085_v23 = vsel %vm3078_vm1, %v3081_v22, %v3084_v59 }
 0x2ff   : > { %v3189_v63 = vsel %vm3182_vm13, %v3185_v31, %v3188_v39  ;;  %v3086_v20 = vsel %vm2441_vm4, nan, %v3085_v23  ;;  %vm2134_vm15 = vcmp.lt.s32.totalorder %v9003_v43, 2  ;;  %v3193_v7 = vmul.f32 %v8910_v8, %v2878_v10 }
 0x300   : > { %v7176_v15 = vpop.eup %7175  ;;  %v3195_v60 = vmul.f32 %v8917_v27, %v3086_v20  ;;  %v2141_v16 = vsel %vm2134_vm15, %v2137_v9, %v2140_v25  ;;  %vm2340_vm0 = vcmp.lt.s32.totalorder %v2339_v26, 2  ;;  %vm2344_vm12 = vcmp.eq.s32.totalorder %v2339_v26, 2 }
 0x301   : > { %v7178_v2 = vpop.eup %7177  ;;  %v2345_v19 = vxor.u32 2147483648, %v7176_v15  ;;  %vm2978_vm14 = vcmp.eq.s32.totalorder %v2973_v6, 2  ;;  %v3190_v54 = vsel %vm2544_vm10, nan, %v3189_v63  ;;  %vm2341_vm4 = vcmp.eq.s32.totalorder %v2339_v26, 0 }
 0x302   : > { %v7180_v32 = vpop.eup %7179  ;;  %v2342_v11 = vxor.u32 2147483648, %v7178_v2  ;;  %v6919_v13 = vpack.c.bf16 %v3195_v60, %v3193_v7  ;;  %vm2975_vm9 = vcmp.eq.s32.totalorder %v2973_v6, 0  ;;  %v2142_v8 = vsel %vm2132_vm11, nan, %v2141_v16 }
 0x303   : > { %v2346_v17 = vsel %vm2344_vm12, %v2345_v19, %v7178_v2  ;;  %v2980_v43 = vsel %vm2978_vm14, %v2345_v19, %v7178_v2  ;;  %vm2974_vm2 = vcmp.lt.s32.totalorder %v2973_v6, 2  ;;  %vm2338_vm3 = vweird.f32 %v8345_v18 }
 0x304   : > { %v2343_v27 = vsel %vm2341_vm4, %v7176_v15, %v2342_v11  ;;  %v2977_v4 = vsel %vm2975_vm9, %v7176_v15, %v2342_v11  ;;  %v3196_v44 = vmul.f32 %v8920_v0, %v3190_v54  ;;  %v2556_v35 = vmul.f32 %v8821_v49, %v2142_v8  ;;  %v6655_v49 = vld [vmem:[%s10368_s3 + $0x38] sm:$0xff]  ;;  %v6656_v0 = vld [vmem:[%s10368_s3 + $0x40] sm:$0xff] }
 0x305   : > { %v2347_v34 = vsel %vm2340_vm0, %v2343_v27, %v2346_v17  ;;  %v2981_v52 = vsel %vm2974_vm2, %v2977_v4, %v2980_v43  ;;  %vm10458_vm11 = vcmask 392192   ;;  %v10459_v18 = vmov 0.0  }
 0x306   : > { %v2348_v62 = vsel %vm2338_vm3, nan, %v2347_v34  ;;  %v2982_v30 = vsel %vm2338_vm3, nan, %v2981_v52  ;;  %vm10460_vm10 = vmmov %vm10458_vm11 }
 0x307   : > { %v2558_v1 = vmul.f32 %v7180_v32, %v2348_v62  ;;  %v3194_v21 = vmul.f32 %v7180_v32, %v2982_v30  ;;  %vm10461_vm6 = vmmov %vm10460_vm10 }
 0x308   : > { %vm10462_vm5 = vmmov %vm10461_vm6 }
 0x309   : > { %v6909_v58 = vpack.c.bf16 %v2558_v1, %v2556_v35  ;;  %v6917_v46 = vpack.c.bf16 %v3196_v44, %v3194_v21  ;;  %vm10463_vm7 = vmmov %vm10462_vm5 }
 0x30a   : > { %vm10464_vm8 = vmmov %vm10462_vm5 }
 0x30b   : > { %6910 = vmatprep.subr.bf16.mxu1 %v6909_v58 }
 0x30c   : > { %6912 = vmatpush1.bf16.msra.mxu1 %v6911_v48  ;;  %v6659_v48 = vld [vmem:[%s10368_s3 + $0x58] sm:$0xff] }
 0x30d   : > { %6914 = vmatprep.subr.bf16.mxu1 %v6913_v38 }
 0x310   : > { %6916 = vmatpush1.bf16.msra.mxu1 %v6915_v57 }
 0x311   : > { %6918 = vmatprep.subr.bf16.mxu1 %v6917_v46 }
 0x314   : > { %6920 = vmatpush1.bf16.msra.mxu1 %v6919_v13 }
 0x317   : > { %6666 = vmatmul.mubr.msk.f32.vlgmr.msra.gmra.mrb[0].mxu1 %vm10458_vm11, %v6654_v47 }
 0x318   : > { %3347 = vmatprep.mubr.f32.mxu1 %v10459_v18 }
 0x31b   : > { %6667 = vmatmul.mubr.msk.f32.gmra.mrb[2].mxu1 %vm10460_vm10, %v6655_v49  ;;  %v10465_v49 = vmov 920167782  }
 0x31c   : > { %3353 = vmatprep.mubr.f32.mxu1 %v10459_v18 }
 0x31f   : > { %6668 = vmatmul.mubr.msk.f32.gmra.mrb[4].mxu1 %vm10461_vm6, %v6656_v0 }
 0x320   : > { %3359 = vmatprep.mubr.f32.mxu1 %v10459_v18 }
 0x323   : > { %6669 = vmatmul.mubr.msk.f32.gmra.mrb[6].mxu1 %vm10462_vm5, %v6657_v14 }
 0x324   : > { %3365 = vmatprep.mubr.f32.mxu1 %v10459_v18 }
 0x327   : > { %6670 = vmatmul.mubr.msk.f32.gmra.mrb[8].mxu1 %vm10463_vm7, %v6658_v28 }
 0x328   : > { %3371 = vmatprep.mubr.f32.mxu1 %v10459_v18 }
 0x32b   : > { %6671 = vmatmul.mubr.msk.f32.gmra.mrb[10].mxu1 %vm10464_vm8, %v6659_v48 }
 0x3ea   : > { %v3343_v37 = vpop.f32.mrb[0].mxu1 }
 0x3eb   : > { %v3344_v50 = vadd.f32 %v3343_v37, %v3232_v24  ;;  %v3345_v29 = vpop.f32.mrb[1].mxu1 }
 0x3ec   : > { %v9144_v33 = vadd.f32 %v3345_v29, %v3232_v24 }
 0x3ed   : > { %v9146_v12 = vmul.f32 30.0, %v3344_v50  ;;  %v9177_v32 = vmul.f32 %v3344_v50, %v3344_v50  ;;  %v10466_v50 = vmov 1326507024  }
 0x3ee   : > { %v9149_v42 = vmul.f32 30.0, %v9144_v33  ;;  %v3349_v40 = vpop.f32.mrb[2].mxu1 }
 0x3ef   : > { %v3432_v5 = vand.u32 2147483647, %v9146_v12  ;;  %v3435_v55 = vand.u32 2139095040, %v9146_v12  ;;  %v9153_v61 = vadd.f32 %v3349_v40, %v3237_v36  ;;  %v3351_v53 = vpop.f32.mrb[3].mxu1  ;;  %vm3434_vm6 = vcmp.lt.s32.totalorder %v9146_v12, 0 }
 0x3f0   : > { %v3535_v57 = vand.u32 2147483647, %v9149_v42  ;;  %v3538_v26 = vand.u32 2139095040, %v9149_v42  ;;  %v9164_v6 = vadd.f32 %v3351_v53, %v3237_v36  ;;  %vm3537_vm7 = vcmp.lt.s32.totalorder %v9149_v42, 0 }
 0x3f1   : > { %v3436_v3 = vshrl.u32 %v3435_v55, 23  ;;  %v3439_v38 = vand.u32 8388607, %v3432_v5  ;;  %v9162_v22 = vmul.f32 30.0, %v9153_v61 }
 0x3f2   : > { %v3539_v31 = vshrl.u32 %v3538_v26, 23  ;;  %v3542_v39 = vand.u32 8388607, %v3535_v57  ;;  %v9166_v59 = vpop.f32.mrb[4].mxu1  ;;  %v9173_v2 = vmul.f32 30.0, %v9164_v6 }
 0x3f3   : > { %v6672_v10 = vadd.s32 4294967169, %v3436_v3  ;;  %v9168_v25 = vpop.f32.mrb[5].mxu1  ;;  %v3440_v23 = vor.u32 8388608, %v3439_v38  ;;  %v3641_v20 = vand.u32 2139095040, %v9162_v22  ;;  %v3638_v60 = vand.u32 2147483647, %v9162_v22 }
 0x3f4   : > { %v6676_v9 = vadd.s32 4294967169, %v3539_v31  ;;  %v3543_v15 = vor.u32 8388608, %v3542_v39  ;;  %v3744_v52 = vand.u32 2139095040, %v9173_v2 }
 0x3f5   : > { %v3442_v63 = vadd.s32 1, %v6672_v10  ;;  %v3642_v16 = vshrl.u32 %v3641_v20, 23  ;;  %v9181_v43 = vshll.u32 %v3440_v23, 8  ;;  %v9189_v34 = vand.u32 8388607, %v3638_v60 }
 0x3f6   : > { %v3545_v7 = vadd.s32 1, %v6676_v9  ;;  %v9175_v19 = vpop.f32.mrb[6].mxu1  ;;  %v9183_v27 = vshll.u32 %v3543_v15, 8 }
 0x3f7   : > { %vm3443_vm1 = vcmp.gt.s32.totalorder %v3442_v63, 0  ;;  %v9179_v54 = vpop.f32.mrb[7].mxu1  ;;  %v9185_v4 = vadd.s32 4294967169, %v3642_v16 }
 0x3f8   : > { %v3444_v11 = vsel %vm3443_vm1, %v3442_v63, 0  ;;  %vm3546_vm13 = vcmp.gt.s32.totalorder %v3545_v7, 0 }
 0x3f9   : > { %v3445_v13 = vshrl.u32 %v3444_v11, 5  ;;  %v3446_v17 = vand.u32 31, %v3444_v11  ;;  %v3547_v8 = vsel %vm3546_vm13, %v3545_v7, 0 }
 0x3fa   : > { %v9192_v44 = vpop.f32.mrb[8].mxu1  ;;  %v9195_v35 = vshrl.u32 %v3547_v8, 5  ;;  %v3549_v1 = vand.u32 31, %v3547_v8 }
 0x3fb   : > { %v3447_v62 = vsub.s32 32, %v3446_v17  ;;  %v3449_v30 = vshll.u32 %v10427_v51, %v3446_v17  ;;  %v9197_v21 = vpop.f32.mrb[9].mxu1  ;;  %v3452_v58 = vshll.u32 %v10429_v41, %v3446_v17  ;;  %v3455_v46 = vshll.u32 %v10430_v45, %v3446_v17 }
 0x3fc   : > { %v3458_v47 = vshll.u32 %v10428_v56, %v3446_v17  ;;  %v3461_v0 = vshll.u32 %v10465_v49, %v3446_v17  ;;  %vm3464_vm15 = vcmp.lt.s32.totalorder %v3445_v13, 1  ;;  %vm3465_vm0 = vcmp.lt.s32.totalorder %v3445_v13, 2 }
 0x3fd   : > { %v3450_v14 = vshrl.u32 %v10429_v41, %v3447_v62  ;;  %v3453_v28 = vshrl.u32 %v10430_v45, %v3447_v62  ;;  %v3456_v48 = vshrl.u32 %v10428_v56, %v3447_v62  ;;  %v3448_v24 = vshrl.u32 %v10427_v51, %v3447_v62 }
 0x3fe   : > { %v3459_v37 = vshrl.u32 %v10465_v49, %v3447_v62  ;;  %v3462_v29 = vshrl.u32 %v10466_v50, %v3447_v62  ;;  %v9209_v36 = vpop.f32.mrb[10].mxu1  ;;  %v3550_v26 = vsub.s32 32, %v3549_v1  ;;  %vm3466_vm12 = vcmp.lt.s32.totalorder %v3445_v13, 3 }
 0x3ff   : > { %v3451_v40 = vor.u32 %v3450_v14, %v3449_v30  ;;  %v3454_v55 = vor.u32 %v3453_v28, %v3452_v58  ;;  %v3457_v53 = vor.u32 %v3456_v48, %v3455_v46  ;;  %v9211_v3 = vpop.f32.mrb[11].mxu1  ;;  %vm3467_vm14 = vcmp.lt.s32.totalorder %v3445_v13, 4 }
 0x400   : > { %v3460_v38 = vor.u32 %v3459_v37, %v3458_v47  ;;  %v3463_v31 = vor.u32 %v3462_v29, %v3461_v0  ;;  %v3552_v7 = vshll.u32 %v10427_v51, %v3549_v1  ;;  %v3553_v17 = vshrl.u32 %v10429_v41, %v3550_v26 }
 0x401   : > { %v3468_v39 = vsel %vm3464_vm15, %v3448_v24, %v3451_v40  ;;  %v3469_v10 = vsel %vm3467_vm14, %v3457_v53, 2102212464  ;;  %v3472_v9 = vsel %vm3464_vm15, %v3451_v40, %v3454_v55  ;;  %v3476_v23 = vsel %vm3464_vm15, %v3454_v55, %v3457_v53 }
 0x402   : > { %v3470_v63 = vsel %vm3466_vm12, %v3454_v55, %v3469_v10  ;;  %v3473_v20 = vsel %vm3467_vm14, %v3460_v38, 920167782  ;;  %v3477_v15 = vsel %vm3467_vm14, %v3463_v31, 1326507024  ;;  %v3555_v8 = vshll.u32 %v10429_v41, %v3549_v1 }
 0x403   : > { %v3474_v16 = vsel %vm3466_vm12, %v3457_v53, %v3473_v20  ;;  %v3478_v11 = vsel %vm3466_vm12, %v3460_v38, %v3477_v15  ;;  %v3471_v62 = vsel %vm3465_vm0, %v3468_v39, %v3470_v63  ;;  %v3556_v46 = vshrl.u32 %v10430_v45, %v3550_v26 }
 0x404   : > { %v3475_v30 = vsel %vm3465_vm0, %v3472_v9, %v3474_v16  ;;  %v3479_v58 = vsel %vm3465_vm0, %v3476_v23, %v3478_v11  ;;  %v3554_v48 = vor.u32 %v3553_v17, %v3552_v7  ;;  %v3558_v37 = vshll.u32 %v10430_v45, %v3549_v1 }
 0x405   : > { %v9224_v47 = vmul.u32.u64.low %v9181_v43, %v3479_v58  ;;  %v9225_v0 = vmul.u32.u64.high %v9181_v43, %v3479_v58, %v9224_v47  ;;  %v9228_v14 = vmul.u32.u64.low %v9181_v43, %v3475_v30  ;;  %v9229_v28 = vmul.u32.u64.high %v9181_v43, %v3475_v30, %v9228_v14 }
 0x406   : > { %v3557_v24 = vor.u32 %v3556_v46, %v3555_v8  ;;  %v3559_v29 = vshrl.u32 %v10428_v56, %v3550_v26  ;;  %v3551_v40 = vshrl.u32 %v10427_v51, %v3550_v26  ;;  %v3561_v13 = vshll.u32 %v10428_v56, %v3549_v1 }
 0x407   : > { %v3562_v55 = vshrl.u32 %v10465_v49, %v3550_v26  ;;  %v3565_v53 = vshrl.u32 %v10466_v50, %v3550_v26  ;;  %v3487_v38 = vmul.u32 %v9181_v43, %v3471_v62  ;;  %v3564_v39 = vshll.u32 %v10465_v49, %v3549_v1 }
 0x408   : > { %v3560_v31 = vor.u32 %v3559_v29, %v3558_v37  ;;  %vm3567_vm4 = vcmp.lt.s32.totalorder %v9195_v35, 1  ;;  %vm3489_vm9 = vc.u32 %v9225_v0, %v9228_v14  ;;  %v3490_v10 = vadd.s32 1, %v9229_v28 }
 0x409   : > { %v3563_v9 = vor.u32 %v3562_v55, %v3561_v13  ;;  %vm3568_vm2 = vcmp.lt.s32.totalorder %v9195_v35, 2  ;;  %v3566_v23 = vor.u32 %v3565_v53, %v3564_v39  ;;  %vm3569_vm3 = vcmp.lt.s32.totalorder %v9195_v35, 3 }
 0x40a   : > { %vm3570_vm11 = vcmp.lt.s32.totalorder %v9195_v35, 4  ;;  %v3575_v26 = vsel %vm3567_vm4, %v3554_v48, %v3557_v24  ;;  %v3491_v43 = vsel %vm3489_vm9, %v3490_v10, %v9229_v28  ;;  %v3579_v1 = vsel %vm3567_vm4, %v3557_v24, %v3560_v31 }
 0x40b   : > { %v3572_v63 = vsel %vm3570_vm11, %v3560_v31, 2102212464  ;;  %v3576_v20 = vsel %vm3570_vm11, %v3563_v9, 920167782  ;;  %v3492_v15 = vadd.s32 %v3491_v43, %v3487_v38  ;;  %v3571_v7 = vsel %vm3567_vm4, %v3551_v40, %v3554_v48 }
 0x40c   : > { %v3577_v16 = vsel %vm3569_vm3, %v3560_v31, %v3576_v20  ;;  %v3580_v11 = vsel %vm3570_vm11, %v3566_v23, 1326507024  ;;  %v3573_v17 = vsel %vm3569_vm3, %v3557_v24, %v3572_v63  ;;  %v3648_v30 = vadd.s32 1, %v9185_v4 }
 0x40d   : > { %v3578_v8 = vsel %vm3568_vm2, %v3575_v26, %v3577_v16  ;;  %v3581_v62 = vsel %vm3569_vm3, %v3563_v9, %v3580_v11  ;;  %v3493_v58 = vadd.s32 536870912, %v3492_v15  ;;  %v3646_v24 = vor.u32 8388608, %v9189_v34 }
 0x40e   : > { %v3582_v46 = vsel %vm3568_vm2, %v3579_v1, %v3581_v62  ;;  %v9252_v47 = vmul.u32.u64.low %v9183_v27, %v3578_v8  ;;  %v9253_v28 = vmul.u32.u64.high %v9183_v27, %v3578_v8, %v9252_v47  ;;  %vm3649_vm10 = vcmp.gt.s32.totalorder %v3648_v30, 0 }
 0x40f   : > { %v9257_v48 = vmul.u32.u64.low %v9183_v27, %v3582_v46  ;;  %v9258_v37 = vmul.u32.u64.high %v9183_v27, %v3582_v46, %v9257_v48  ;;  %v3494_v29 = vshrl.u32 %v3493_v58, 30  ;;  %v3574_v4 = vsel %vm3568_vm2, %v3571_v7, %v3573_v17  ;;  %v9303_v58 = vpop.permute.xlu0 %3241 }
 0x410   : > { %v3650_v40 = vsel %vm3649_vm10, %v3648_v30, 0  ;;  %v3745_v13 = vshrl.u32 %v3744_v52, 23  ;;  %v9268_v55 = vmul.f32 %v9144_v33, %v9144_v33  ;;  %v9272_v53 = vmul.f32 %v9153_v61, %v9153_v61 }
 0x411   : > { %v3652_v34 = vand.u32 31, %v3650_v40  ;;  %v3495_v38 = vshll.u32 %v3494_v29, 30  ;;  %v3593_v31 = vadd.s32 1, %v9253_v28  ;;  %v9277_v35 = vmul.f32 %v9164_v6, %v9164_v6 }
 0x412   : > { %v3741_v52 = vand.u32 2147483647, %v9173_v2  ;;  %v3590_v39 = vmul.u32 %v9183_v27, %v3574_v4  ;;  %vm3592_vm5 = vc.u32 %v9258_v37, %v9252_v47  ;;  %v9283_v10 = vshll.u32 %v3646_v24, 8 }
 0x413   : > { %v3653_v33 = vsub.s32 32, %v3652_v34  ;;  %v3488_v61 = vadd.s32 %v9228_v14, %v9225_v0  ;;  %v9286_v9 = vsub.s32 %v3492_v15, %v3495_v38  ;;  %v3594_v23 = vsel %vm3592_vm5, %v3593_v31, %v9253_v28 }
 0x414   : > { %v9289_v26 = vadd.s32 4294967169, %v3745_v13  ;;  %v3595_v6 = vadd.s32 %v3594_v23, %v3590_v39  ;;  %v9291_v43 = vshrl.u32 %v3650_v40, 5  ;;  %v3655_v63 = vshll.u32 %v10427_v51, %v3652_v34 }
 0x415   : > { %v3656_v27 = vshrl.u32 %v10429_v41, %v3653_v33  ;;  %v3498_v20 = vsub.s32 0, %v9286_v9  ;;  %v3518_v1 = vsub.s32 4, %v3494_v29  ;;  %v3658_v7 = vshll.u32 %v10429_v41, %v3652_v34 }
 0x416   : > { %v3659_v0 = vshrl.u32 %v10430_v45, %v3653_v33  ;;  %v3596_v14 = vadd.s32 536870912, %v3595_v6  ;;  %v3661_v16 = vshll.u32 %v10430_v45, %v3652_v34  ;;  %v3662_v11 = vshrl.u32 %v10428_v56, %v3653_v33 }
 0x417   : > { %v3657_v15 = vor.u32 %v3656_v27, %v3655_v63  ;;  %v6673_v17 = vmin.u32 %v3498_v20, %v9286_v9  ;;  %v3664_v62 = vshll.u32 %v10428_v56, %v3652_v34  ;;  %v3665_v30 = vshrl.u32 %v10465_v49, %v3653_v33 }
 0x418   : > { %v3660_v8 = vor.u32 %v3659_v0, %v3658_v7  ;;  %v3597_v46 = vshrl.u32 %v3596_v14, 30  ;;  %v3663_v28 = vor.u32 %v3662_v11, %v3661_v16  ;;  %v3668_v48 = vshrl.u32 %v10466_v50, %v3653_v33 }
 0x419   : > { %v9309_v24 = vand.u32 8388607, %v3741_v52  ;;  %v3500_v4 = vclz %v6673_v17  ;;  %v3519_v40 = vsel %vm3434_vm6, %v3518_v1, %v3494_v29  ;;  %v3666_v13 = vor.u32 %v3665_v30, %v3664_v62 }
 0x41a   : > { %v9315_v38 = vadd.f32 %v9166_v59, %v9303_v58  ;;  %v3598_v31 = vshll.u32 %v3597_v46, 30  ;;  %v3654_v39 = vshrl.u32 %v10427_v51, %v3653_v33  ;;  %v3667_v23 = vshll.u32 %v10465_v49, %v3652_v34 }
 0x41b   : > { %vm3670_vm8 = vcmp.lt.s32.totalorder %v9291_v43, 1  ;;  %v6674_v63 = vadd.s32 4294967294, %v3500_v4  ;;  %vm3672_vm1 = vcmp.lt.s32.totalorder %v9291_v43, 3  ;;  %vm3673_vm13 = vcmp.lt.s32.totalorder %v9291_v43, 4 }
 0x41c   : > { %v3678_v29 = vsel %vm3670_vm8, %v3657_v15, %v3660_v8  ;;  %v9324_v27 = vsub.s32 %v3595_v6, %v3598_v31  ;;  %v3669_v20 = vor.u32 %v3668_v48, %v3667_v23  ;;  %v3675_v59 = vsel %vm3673_vm13, %v3663_v28, 2102212464 }
 0x41d   : > { %v3679_v33 = vsel %vm3673_vm13, %v3666_v13, 920167782  ;;  %vm9332_vm15 = vcmp.le.f32.partialorder %v3432_v5, 0.7853982  ;;  %vm6675_vm0 = vcmp.lt.s32.totalorder %v6674_v63, 0  ;;  %v3621_v6 = vsub.s32 4, %v3597_v46 }
 0x41e   : > { %vm9338_vm12 = vcmp.le.f32.partialorder %v3535_v57, 0.7853982  ;;  %vm3671_vm14 = vcmp.lt.s32.totalorder %v9291_v43, 2  ;;  %v3680_v7 = vsel %vm3672_vm1, %v3663_v28, %v3679_v33  ;;  %v3503_v0 = vsel %vm6675_vm0, 0, %v6674_v63 }
 0x41f   : > { %v3601_v14 = vsub.s32 0, %v9324_v27  ;;  %v3674_v5 = vsel %vm3670_vm8, %v3654_v39, %v3657_v15  ;;  %v3681_v16 = vsel %vm3671_vm14, %v3678_v29, %v3680_v7  ;;  %v3504_v11 = vsub.s32 32, %v3503_v0 }
 0x420   : > { %v3508_v57 = vsub.s32 4294967266, %v3503_v0  ;;  %v3676_v17 = vsel %vm3672_vm1, %v3660_v8, %v3675_v59  ;;  %v3682_v62 = vsel %vm3670_vm8, %v3660_v8, %v3663_v28  ;;  %v3683_v48 = vsel %vm3673_vm13, %v3669_v20, 1326507024 }
 0x421   : > { %v6677_v30 = vmin.u32 %v3601_v14, %v9324_v27  ;;  %v9358_v4 = vmul.u32.u64.low %v9283_v10, %v3681_v16  ;;  %v9359_v31 = vmul.u32.u64.high %v9283_v10, %v3681_v16, %v9358_v4  ;;  %v3506_v15 = vshrl.u32 %v3488_v61, %v3504_v11 }
 0x422   : > { %v3509_v39 = vadd.s32 127, %v3508_v57  ;;  %v3622_v23 = vsel %vm3537_vm7, %v3621_v6, %v3597_v46  ;;  %v3684_v63 = vsel %vm3672_vm1, %v3666_v13, %v3683_v48  ;;  %v3505_v8 = vshll.u32 %v9286_v9, %v3503_v0 }
 0x423   : > { %v3603_v28 = vclz %v6677_v30  ;;  %v3685_v29 = vsel %vm3671_vm14, %v3682_v62, %v3684_v63  ;;  %v3751_v20 = vadd.s32 1, %v9289_v26  ;;  %v3677_v33 = vsel %vm3671_vm14, %v3674_v5, %v3676_v17 }
 0x424   : > { %v3510_v59 = vshll.u32 %v3509_v39, 23  ;;  %v9373_v61 = vmul.u32.u64.low %v9283_v10, %v3685_v29  ;;  %v9374_v7 = vmul.u32.u64.high %v9283_v10, %v3685_v29, %v9373_v61  ;;  %v3507_v46 = vor.u32 %v3506_v15, %v3505_v8 }
 0x425   : > { %v6678_v6 = vadd.s32 4294967294, %v3603_v28  ;;  %v3696_v13 = vadd.s32 1, %v9359_v31  ;;  %vm3752_vm4 = vcmp.gt.s32.totalorder %v3751_v20, 0  ;;  %v3591_v0 = vadd.s32 %v9252_v47, %v9258_v37 }
 0x426   : > { %v3511_v9 = vor.u32 4788187, %v3510_v59  ;;  %v3749_v14 = vor.u32 8388608, %v9309_v24  ;;  %v3753_v26 = vsel %vm3752_vm4, %v3751_v20, 0  ;;  %v9382_v43 = vsel %vm9332_vm15, 0, %v3519_v40 }
 0x427   : > { %vm6679_vm9 = vcmp.lt.s32.totalorder %v6678_v6, 0  ;;  %v9386_v5 = vsel %vm9338_vm12, 0, %v3622_v23  ;;  %v3755_v16 = vand.u32 31, %v3753_v26  ;;  %v3693_v17 = vmul.u32 %v9283_v10, %v3677_v33 }
 0x428   : > { %v3512_v11 = vand.u32 2147483647, %v3511_v9  ;;  %v3606_v57 = vsel %vm6679_vm9, 0, %v6678_v6  ;;  %vm3695_vm2 = vc.u32 %v9374_v7, %v9358_v4  ;;  %v3514_v47 = vcvt.s32.f32 %v3507_v46 }
 0x429   : > { %v3607_v37 = vsub.s32 32, %v3606_v57  ;;  %v3611_v24 = vsub.s32 4294967266, %v3606_v57  ;;  %v3697_v62 = vsel %vm3695_vm2, %v3696_v13, %v9359_v31  ;;  %v9393_v40 = vadd.s32 3, %v9382_v43 }
 0x42a   : > { %v3698_v30 = vadd.s32 %v3697_v62, %v3693_v17  ;;  %v3756_v48 = vsub.s32 32, %v3755_v16  ;;  %v9397_v15 = vadd.f32 %v9168_v25, %v9303_v58  ;;  %v3515_v39 = vmul.f32 %v3514_v47, %v3512_v11 }
 0x42b   : > { %10471 = vst [vmem:[#allocation11_spill] sm:$0xff] %v9393_v40  ;;  %v3608_v10 = vshll.u32 %v9324_v27, %v3606_v57  ;;  %v3609_v23 = vshrl.u32 %v3591_v0, %v3607_v37  ;;  %v3612_v63 = vadd.s32 127, %v3611_v24  ;;  %v9401_v8 = vadd.s32 3, %v9386_v5 }
 0x42c   : > { %v3699_v28 = vadd.s32 536870912, %v3698_v30  ;;  %v3759_v31 = vshrl.u32 %v10429_v41, %v3756_v48  ;;  %v9404_v29 = vshll.u32 %v3749_v14, 8  ;;  %v3762_v33 = vshrl.u32 %v10430_v45, %v3756_v48 }
 0x42d   : > { %10472 = vst [vmem:[#allocation9_spill] sm:$0xff] %v9401_v8  ;;  %v3610_v20 = vor.u32 %v3609_v23, %v3608_v10  ;;  %v3613_v59 = vshll.u32 %v3612_v63, 23  ;;  %v9409_v25 = vmul.f32 %v9315_v38, %v9315_v38  ;;  %v3758_v27 = vshll.u32 %v10427_v51, %v3755_v16  ;;  %v6720_v63 = vld [vmem:[%s10368_s3 + $0x60] sm:$0xff] }
 0x42e   : > { %v3700_v58 = vshrl.u32 %v3699_v28, 30  ;;  %v3765_v61 = vshrl.u32 %v10428_v56, %v3756_v48  ;;  %v9414_v46 = vmul.f32 30.0, %v9315_v38  ;;  %v3516_v6 = vxor.u32 2147483648, %v3515_v39 }
 0x42f   : > { %v3614_v13 = vor.u32 4788187, %v3613_v59  ;;  %vm3640_vm3 = vcmp.lt.s32.totalorder %v9162_v22, 0  ;;  %v3754_v9 = vshrl.u32 %v3753_v26, 5  ;;  %v3761_v0 = vshll.u32 %v10429_v41, %v3755_v16 }
 0x430   : > { %v3701_v14 = vshll.u32 %v3700_v58, 30  ;;  %v3760_v11 = vor.u32 %v3759_v31, %v3758_v27  ;;  %v3764_v57 = vshll.u32 %v10430_v45, %v3755_v16  ;;  %v3767_v17 = vshll.u32 %v10428_v56, %v3755_v16 }
 0x431   : > { %v3615_v47 = vand.u32 2147483647, %v3614_v13  ;;  %v3617_v37 = vcvt.s32.f32 %v3610_v20  ;;  %v3763_v24 = vor.u32 %v3762_v33, %v3761_v0  ;;  %v3768_v62 = vshrl.u32 %v10465_v49, %v3756_v48 }
 0x432   : > { %v9421_v38 = vsub.s32 %v3698_v30, %v3701_v14  ;;  %v3766_v10 = vor.u32 %v3765_v61, %v3764_v57  ;;  %v3770_v23 = vshll.u32 %v10465_v49, %v3755_v16  ;;  %v3771_v26 = vshrl.u32 %v10466_v50, %v3756_v48 }
 0x433   : > { %v3517_v28 = vsel %vm3434_vm6, %v3516_v6, %v3515_v39  ;;  %vm9432_vm11 = vcmp.le.f32.partialorder %v3638_v60, 0.7853982  ;;  %v3724_v30 = vsub.s32 4, %v3700_v58  ;;  %v3757_v20 = vshrl.u32 %v10427_v51, %v3756_v48 }
 0x434   : > { %v3769_v59 = vor.u32 %v3768_v62, %v3767_v17  ;;  %vm10475_vm10 = vcmask 392192   ;;  %v3618_v16 = vmul.f32 %v3617_v37, %v3615_v47  ;;  %v3704_v33 = vsub.s32 0, %v9421_v38 }
 0x435   : > { %6852 = vmatprep.mubr.msk.f32.mxu0 %vm10475_vm10, %v6720_v63  ;;  %v3772_v27 = vor.u32 %v3771_v26, %v3770_v23  ;;  %vm3773_vm5 = vcmp.lt.s32.totalorder %v3754_v9, 1  ;;  %vm3774_vm8 = vcmp.lt.s32.totalorder %v3754_v9, 2  ;;  %vm3775_vm1 = vcmp.lt.s32.totalorder %v3754_v9, 3 }
 0x436   : > { %vm3776_vm6 = vcmp.lt.s32.totalorder %v3754_v9, 4  ;;  %v3781_v39 = vsel %vm3773_vm5, %v3760_v11, %v3763_v24  ;;  %v6681_v60 = vmin.u32 %v3704_v33, %v9421_v38  ;;  %v3777_v61 = vsel %vm3773_vm5, %v3757_v20, %v3760_v11 }
 0x437   : > { %v3778_v6 = vsel %vm3776_vm6, %v3766_v10, 2102212464  ;;  %v3782_v13 = vsel %vm3776_vm6, %v3769_v59, 920167782  ;;  %v3785_v14 = vsel %vm3773_vm5, %v3763_v24, %v3766_v10  ;;  %v3786_v57 = vsel %vm3776_vm6, %v3772_v27, 1326507024 }
 0x438   : > { %v3779_v0 = vsel %vm3775_vm1, %v3763_v24, %v3778_v6  ;;  %v3783_v48 = vsel %vm3775_vm1, %v3766_v10, %v3782_v13  ;;  %v3520_v17 = vsel %vm9332_vm15, %v9146_v12, %v3517_v28  ;;  %v3706_v47 = vclz %v6681_v60 }
 0x439   : > { %v3725_v37 = vsel %vm3640_vm3, %v3724_v30, %v3700_v58  ;;  %v3784_v62 = vsel %vm3774_vm8, %v3781_v39, %v3783_v48  ;;  %v3619_v23 = vxor.u32 2147483648, %v3618_v16  ;;  %v3787_v11 = vsel %vm3775_vm1, %v3769_v59, %v3786_v57 }
 0x43a   : > { %v9450_v26 = vmul.u32.u64.low %v9404_v29, %v3784_v62  ;;  %v9451_v63 = vmul.u32.u64.high %v9404_v29, %v3784_v62, %v9450_v26  ;;  %v3694_v24 = vadd.s32 %v9358_v4, %v9374_v7  ;;  %v6682_v10 = vadd.s32 4294967294, %v3706_v47  ;;  %v9470_v7 = vpop.permute.xlu1 %3246 }
 0x43b   : > { %v3780_v34 = vsel %vm3774_vm8, %v3777_v61, %v3779_v0  ;;  %v3788_v28 = vsel %vm3774_vm8, %v3785_v14, %v3787_v11  ;;  %7181 = vcosq.f32 %v3520_v17  ;;  %v10406_v20 = vand.u32 2147483647, %v9414_v46 }
 0x43c   : > { %v9458_v58 = vmul.u32.u64.low %v9404_v29, %v3788_v28  ;;  %v9459_v30 = vmul.u32.u64.high %v9404_v29, %v3788_v28, %v9458_v58  ;;  %vm6683_vm13 = vcmp.lt.s32.totalorder %v6682_v10, 0  ;;  %v9464_v59 = vsel %vm9432_vm11, 0, %v3725_v37 }
 0x43d   : > { %v3847_v33 = vand.u32 2139095040, %v9414_v46  ;;  %v9468_v4 = vmul.f32 30.0, %v9397_v15  ;;  %v3620_v9 = vsel %vm3537_vm7, %v3619_v23, %v3618_v16  ;;  %v3709_v27 = vsel %vm6683_vm13, 0, %v6682_v10 }
 0x43e   : > { %v3796_v39 = vmul.u32 %v9404_v29, %v3780_v34  ;;  %v3799_v60 = vadd.s32 1, %v9451_v63  ;;  %v3710_v61 = vsub.s32 32, %v3709_v27  ;;  %v3714_v6 = vsub.s32 4294967266, %v3709_v27 }
 0x43f   : > { %v3848_v13 = vshrl.u32 %v3847_v33, 23  ;;  %v3362_v0 = vadd.f32 %v9175_v19, %v9470_v7  ;;  %v3711_v48 = vshll.u32 %v9421_v38, %v3709_v27  ;;  %vm3798_vm15 = vc.u32 %v9459_v30, %v9450_v26 }
 0x440   : > { %v3851_v14 = vand.u32 8388607, %v10406_v20  ;;  %v10405_v16 = vand.u32 2147483647, %v9468_v4  ;;  %v3712_v57 = vshrl.u32 %v3694_v24, %v3710_v61  ;;  %v3715_v47 = vadd.s32 127, %v3714_v6 }
 0x441   : > { %v3800_v29 = vsel %vm3798_vm15, %v3799_v60, %v9451_v63  ;;  %v6688_v37 = vadd.s32 4294967169, %v3848_v13  ;;  %7183 = vsinq.f32 %v3520_v17  ;;  %v3623_v62 = vsel %vm9338_vm12, %v9149_v42, %v3620_v9 }
 0x442   : > { %v3801_v19 = vadd.s32 %v3800_v29, %v3796_v39  ;;  %v9489_v38 = vmul.f32 %v9397_v15, %v9397_v15  ;;  %v3713_v23 = vor.u32 %v3712_v57, %v3711_v48  ;;  %v3716_v11 = vshll.u32 %v3715_v47, 23 }
 0x443   : > { %v3854_v10 = vadd.s32 1, %v6688_v37  ;;  %v3950_v34 = vand.u32 2139095040, %v9468_v4  ;;  %v9493_v24 = vadd.s32 3, %v9464_v59  ;;  %vm3743_vm7 = vcmp.lt.s32.totalorder %v9173_v2, 0 }
 0x444   : > { %v3802_v17 = vadd.s32 536870912, %v3801_v19  ;;  %v3852_v63 = vor.u32 8388608, %v3851_v14  ;;  %v3390_v28 = vmul.f32 %v3362_v0, %v3362_v0  ;;  %7185 = vcosq.f32 %v3623_v62 }
 0x445   : > { %10476 = vst [vmem:[#allocation7_spill] sm:$0xff] %v9493_v24  ;;  %v3717_v1 = vor.u32 4788187, %v3716_v11  ;;  %vm3855_vm0 = vcmp.gt.s32.totalorder %v3854_v10, 0  ;;  %v9498_v15 = vand.u32 8388607, %v10405_v16  ;;  %v9500_v58 = vpop.eup %7181  ;;  %7187 = vsinq.f32 %v3623_v62 }
 0x446   : > { %v3803_v33 = vshrl.u32 %v3802_v17, 30  ;;  %v3856_v9 = vsel %vm3855_vm0, %v3854_v10, 0  ;;  %v3951_v27 = vshrl.u32 %v3950_v34, 23  ;;  %v3396_v39 = vadd.f32 %v3390_v28, %v9177_v32 }
 0x447   : > { %v3718_v60 = vand.u32 2147483647, %v3717_v1  ;;  %v3720_v61 = vcvt.s32.f32 %v3713_v23  ;;  %v3858_v6 = vand.u32 31, %v3856_v9  ;;  %v9504_v13 = vadd.s32 %v9450_v26, %v9459_v30 }
 0x448   : > { %v3804_v48 = vshll.u32 %v3803_v33, 30  ;;  %v9506_v14 = vshll.u32 %v3852_v63, 8  ;;  %v9508_v57 = vmul.f32 -30.0, %v3362_v0  ;;  %v3827_v29 = vsub.s32 4, %v3803_v33 }
 0x449   : > { %v3721_v47 = vmul.f32 %v3720_v61, %v3718_v60  ;;  %v3859_v37 = vsub.s32 32, %v3858_v6  ;;  %v3857_v32 = vshrl.u32 %v3856_v9, 5  ;;  %v6692_v62 = vadd.s32 4294967169, %v3951_v27 }
 0x44a   : > { %v9511_v10 = vsub.s32 %v3801_v19, %v3804_v48  ;;  %v9513_v34 = vmul.f32 100.0, %v3396_v39  ;;  %vm9517_vm12 = vcmp.le.f32.partialorder %v3741_v52, 0.7853982  ;;  %v3861_v30 = vshll.u32 %v10427_v51, %v3858_v6 }
 0x44b   : > { %v3722_v23 = vxor.u32 2147483648, %v3721_v47  ;;  %v3862_v0 = vshrl.u32 %v10429_v41, %v3859_v37  ;;  %v3864_v17 = vshll.u32 %v10429_v41, %v3858_v6  ;;  %v9524_v63 = vpop.eup %7183  ;;  %v3865_v28 = vshrl.u32 %v10430_v45, %v3859_v37 }
 0x44c   : > { %v3807_v19 = vsub.s32 0, %v9511_v10  ;;  %v3867_v1 = vshll.u32 %v10430_v45, %v3858_v6  ;;  %v3868_v9 = vshrl.u32 %v10428_v56, %v3859_v37  ;;  %v3828_v52 = vsel %vm3743_vm7, %v3827_v29, %v3803_v33 }
 0x44d   : > { %v3863_v27 = vor.u32 %v3862_v0, %v3861_v30  ;;  %v3870_v39 = vshll.u32 %v10428_v56, %v3858_v6  ;;  %v3871_v60 = vshrl.u32 %v10465_v49, %v3859_v37  ;;  %v3860_v48 = vshrl.u32 %v10427_v51, %v3859_v37 }
 0x44e   : > { %v6685_v61 = vmin.u32 %v3807_v19, %v9511_v10  ;;  %v3866_v16 = vor.u32 %v3865_v28, %v3864_v17  ;;  %v3869_v20 = vor.u32 %v3868_v9, %v3867_v1  ;;  %v9536_v11 = vpop.eup %7185  ;;  %v3723_v18 = vsel %vm3640_vm3, %v3722_v23, %v3721_v47 }
 0x44f   : > { %v3872_v24 = vor.u32 %v3871_v60, %v3870_v39  ;;  %v3873_v8 = vshll.u32 %v10465_v49, %v3858_v6  ;;  %v3874_v33 = vshrl.u32 %v10466_v50, %v3859_v37  ;;  %vm3876_vm14 = vcmp.lt.s32.totalorder %v3857_v32, 1  ;;  %v9542_v30 = vpop.eup %7187 }
 0x450   : > { %v3809_v29 = vclz %v6685_v61  ;;  %vm3877_vm4 = vcmp.lt.s32.totalorder %v3857_v32, 2  ;;  %vm3878_vm9 = vcmp.lt.s32.totalorder %v3857_v32, 3  ;;  %vm3879_vm2 = vcmp.lt.s32.totalorder %v3857_v32, 4 }
 0x451   : > { %v3875_v0 = vor.u32 %v3874_v33, %v3873_v8  ;;  %v3880_v17 = vsel %vm3876_vm14, %v3860_v48, %v3863_v27  ;;  %v3884_v19 = vsel %vm3876_vm14, %v3863_v27, %v3866_v16  ;;  %v3881_v1 = vsel %vm3879_vm2, %v3869_v20, 2102212464 }
 0x452   : > { %v6686_v28 = vadd.s32 4294967294, %v3809_v29  ;;  %v3885_v9 = vsel %vm3879_vm2, %v3872_v24, 920167782  ;;  %v3888_v40 = vsel %vm3876_vm14, %v3866_v16, %v3869_v20  ;;  %v3882_v47 = vsel %vm3878_vm9, %v3866_v16, %v3881_v1 }
 0x453   : > { %v3886_v6 = vsel %vm3878_vm9, %v3869_v20, %v3885_v9  ;;  %v3889_v23 = vsel %vm3879_vm2, %v3875_v0, 1326507024  ;;  %v3957_v37 = vadd.s32 1, %v6692_v62  ;;  %v9548_v39 = vsel %vm9517_vm12, 0, %v3828_v52 }
 0x454   : > { %vm6687_vm3 = vcmp.lt.s32.totalorder %v6686_v28, 0  ;;  %v3887_v8 = vsel %vm3877_vm4, %v3884_v19, %v3886_v6  ;;  %v3890_v60 = vsel %vm3878_vm9, %v3872_v24, %v3889_v23  ;;  %v3726_v20 = vsel %vm9432_vm11, %v9162_v22, %v3723_v18 }
 0x455   : > { %v3812_v27 = vsel %vm6687_vm3, 0, %v6686_v28  ;;  %v3891_v61 = vsel %vm3877_vm4, %v3888_v40, %v3890_v60  ;;  %v9554_v48 = vmul.u32.u64.low %v9506_v14, %v3887_v8  ;;  %v9555_v33 = vmul.u32.u64.high %v9506_v14, %v3887_v8, %v9554_v48 }
 0x456   : > { %v3813_v16 = vsub.s32 32, %v3812_v27  ;;  %v3817_v62 = vsub.s32 4294967266, %v3812_v27  ;;  %v3883_v52 = vsel %vm3877_vm4, %v3880_v17, %v3882_v47  ;;  %vm3958_vm10 = vcmp.gt.s32.totalorder %v3957_v37, 0 }
 0x457   : > { %v9563_v29 = vmul.u32.u64.low %v9506_v14, %v3891_v61  ;;  %v9564_v0 = vmul.u32.u64.high %v9506_v14, %v3891_v61, %v9563_v29  ;;  %v3408_v40 = vsub.f32 %v9508_v57, %v9513_v34  ;;  %v3814_v24 = vshll.u32 %v9511_v10, %v3812_v27 }
 0x458   : > { %v3815_v19 = vshrl.u32 %v9504_v13, %v3813_v16  ;;  %v3818_v28 = vadd.s32 127, %v3817_v62  ;;  %v3959_v1 = vsel %vm3958_vm10, %v3957_v37, 0  ;;  %7189 = vcosq.f32 %v3726_v20 }
 0x459   : > { %v3902_v18 = vadd.s32 1, %v9555_v33  ;;  %v3961_v31 = vand.u32 31, %v3959_v1  ;;  %v10479_v32 = vor.u32 8388608, %v9498_v15  ;;  %7191 = vsinq.f32 %v3726_v20 }
 0x45a   : > { %v3816_v9 = vor.u32 %v3815_v19, %v3814_v24  ;;  %v3819_v47 = vshll.u32 %v3818_v28, 23  ;;  %v9576_v6 = vadd.s32 3, %v9548_v39  ;;  %v3899_v57 = vmul.u32 %v9506_v14, %v3883_v52 }
 0x45b   : > { %v9573_v17 = vshll.u32 %v10479_v32, 8  ;;  %vm3901_vm11 = vc.u32 %v9564_v0, %v9554_v48  ;;  %v3962_v13 = vsub.s32 32, %v3961_v31  ;;  %v3364_v10 = vadd.f32 %v9179_v54, %v9470_v7 }
 0x45c   : > { %v3820_v34 = vor.u32 4788187, %v3819_v47  ;;  %v3903_v15 = vsel %vm3901_vm11, %v3902_v18, %v9555_v33  ;;  %v3960_v23 = vshrl.u32 %v3959_v1, 5  ;;  %v3964_v37 = vshll.u32 %v10427_v51, %v3961_v31 }
 0x45d   : > { %v3823_v8 = vcvt.s32.f32 %v3816_v9  ;;  %vm3846_vm5 = vcmp.lt.s32.totalorder %v9414_v46, 0  ;;  %v3904_v60 = vadd.s32 %v3903_v15, %v3899_v57  ;;  %v3965_v27 = vshrl.u32 %v10429_v41, %v3962_v13 }
 0x45e   : > { %v3968_v14 = vshrl.u32 %v10430_v45, %v3962_v13  ;;  %v3821_v61 = vand.u32 2147483647, %v3820_v34  ;;  %v3967_v20 = vshll.u32 %v10429_v41, %v3961_v31  ;;  %v3970_v16 = vshll.u32 %v10430_v45, %v3961_v31 }
 0x45f   : > { %v3971_v54 = vshrl.u32 %v10428_v56, %v3962_v13  ;;  %v3905_v7 = vadd.s32 536870912, %v3904_v60  ;;  %v3966_v33 = vor.u32 %v3965_v27, %v3964_v37  ;;  %v3973_v62 = vshll.u32 %v10428_v56, %v3961_v31 }
 0x460   : > { %v3974_v52 = vshrl.u32 %v10465_v49, %v3962_v13  ;;  %v3824_v29 = vmul.f32 %v3823_v8, %v3821_v61  ;;  %v10480_v24 = vand.u32 2147483647, %v9414_v46  ;;  %v3969_v28 = vor.u32 %v3968_v14, %v3967_v20 }
 0x461   : > { %v3972_v1 = vor.u32 %v3971_v54, %v3970_v16  ;;  %v3977_v18 = vshrl.u32 %v10466_v50, %v3962_v13  ;;  %v3906_v32 = vshrl.u32 %v3905_v7, 30  ;;  %v3976_v47 = vshll.u32 %v10465_v49, %v3961_v31 }
 0x462   : > { %vm9595_vm8 = vcmp.le.f32.partialorder %v10480_v24, 0.7853982  ;;  %v3975_v9 = vor.u32 %v3974_v52, %v3973_v62  ;;  %v9601_v57 = vmul.f32 1.442695, %v3408_v40  ;;  %v3825_v34 = vxor.u32 2147483648, %v3824_v29  ;;  %v9604_v37 = vpop.eup %7189 }
 0x463   : > { %v3963_v15 = vshrl.u32 %v10427_v51, %v3962_v13  ;;  %vm3979_vm1 = vcmp.lt.s32.totalorder %v3960_v23, 1  ;;  %vm3982_vm6 = vcmp.lt.s32.totalorder %v3960_v23, 4  ;;  %v3907_v8 = vshll.u32 %v3906_v32, 30  ;;  %v9607_v20 = vpop.eup %7191 }
 0x464   : > { %v3930_v27 = vsub.s32 4, %v3906_v32  ;;  %v3978_v61 = vor.u32 %v3977_v18, %v3976_v47  ;;  %v3984_v14 = vsel %vm3982_vm6, %v3972_v1, 2102212464  ;;  %v3826_v16 = vsel %vm3743_vm7, %v3825_v34, %v3824_v29 }
 0x465   : > { %vm3981_vm13 = vcmp.lt.s32.totalorder %v3960_v23, 3  ;;  %v3987_v40 = vsel %vm3979_vm1, %v3966_v33, %v3969_v28  ;;  %v3988_v31 = vsel %vm3982_vm6, %v3975_v9, 920167782  ;;  %v9613_v13 = vsub.s32 %v3904_v60, %v3907_v8 }
 0x466   : > { %v3983_v54 = vsel %vm3979_vm1, %v3963_v15, %v3966_v33  ;;  %v3985_v7 = vsel %vm3981_vm13, %v3969_v28, %v3984_v14  ;;  %v3391_v62 = vmul.f32 %v3364_v10, %v3364_v10  ;;  %v3931_v52 = vsel %vm3846_vm5, %v3930_v27, %v3906_v32  ;;  %v3257_v27 = vpop.permute.xlu1 %3256 }
 0x467   : > { %vm3980_vm15 = vcmp.lt.s32.totalorder %v3960_v23, 2  ;;  %v3989_v24 = vsel %vm3981_vm13, %v3972_v1, %v3988_v31  ;;  %v3379_v18 = vmul.f32 -30.0, %v3364_v10  ;;  %v3829_v29 = vsel %vm9517_vm12, %v9173_v2, %v3826_v16  ;;  %v3252_v10 = vpop.permute.xlu0 %3251 }
 0x468   : > { %v3910_v47 = vsub.s32 0, %v9613_v13  ;;  %v3990_v60 = vsel %vm3980_vm15, %v3987_v40, %v3989_v24  ;;  %v3991_v33 = vsel %vm3979_vm1, %v3969_v28, %v3972_v1  ;;  %v3986_v34 = vsel %vm3980_vm15, %v3983_v54, %v3985_v7 }
 0x469   : > { %v3992_v15 = vsel %vm3982_vm6, %v3978_v61, 1326507024  ;;  %v9629_v32 = vmul.u32.u64.low %v9573_v17, %v3990_v60  ;;  %v9630_v8 = vmul.u32.u64.high %v9573_v17, %v3990_v60, %v9629_v32  ;;  %v9636_v14 = vsel %vm9595_vm8, 0, %v3931_v52 }
 0x46a   : > { %v6689_v26 = vmin.u32 %v3910_v47, %v9613_v13  ;;  %v3993_v16 = vsel %vm3981_vm13, %v3975_v9, %v3992_v15  ;;  %v3397_v28 = vadd.f32 %v3391_v62, %v9268_v55  ;;  %v3368_v61 = vadd.f32 %v9192_v44, %v3252_v10 }
 0x46b   : > { %v3994_v1 = vsel %vm3980_vm15, %v3991_v33, %v3993_v16  ;;  %v3370_v40 = vadd.f32 %v9197_v21, %v3252_v10  ;;  %v3374_v31 = vadd.f32 %v9209_v36, %v3257_v27  ;;  %7193 = vcosq.f32 %v3829_v29 }
 0x46c   : > { %v3912_v54 = vclz %v6689_v26  ;;  %v9645_v7 = vmul.u32.u64.low %v9573_v17, %v3994_v1  ;;  %v9646_v24 = vmul.u32.u64.high %v9573_v17, %v3994_v1, %v9645_v7  ;;  %v3403_v47 = vmul.f32 100.0, %v3397_v28 }
 0x46d   : > { %v3900_v9 = vadd.s32 %v9554_v48, %v9564_v0  ;;  %v4005_v55 = vadd.s32 1, %v9630_v8  ;;  %v3392_v23 = vmul.f32 %v3368_v61, %v3368_v61  ;;  %7195 = vsinq.f32 %v3829_v29 }
 0x46e   : > { %v6690_v62 = vadd.s32 4294967294, %v3912_v54  ;;  %v3409_v44 = vsub.f32 %v3379_v18, %v3403_v47  ;;  %v3393_v52 = vmul.f32 %v3370_v40, %v3370_v40  ;;  %v9652_v21 = vadd.s32 3, %v9636_v14 }
 0x46f   : > { %v4002_v36 = vmul.u32 %v9573_v17, %v3986_v34  ;;  %v3398_v60 = vadd.f32 %v3392_v23, %v9272_v53  ;;  %v3394_v33 = vmul.f32 %v3374_v31, %v3374_v31  ;;  %vm4004_vm0 = vc.u32 %v9646_v24, %v9629_v32 }
 0x470   : > { %vm6691_vm7 = vcmp.lt.s32.totalorder %v6690_v62, 0  ;;  %v3380_v48 = vmul.f32 -30.0, %v3368_v61  ;;  %v3376_v0 = vadd.f32 %v9211_v3, %v3257_v27  ;;  %v4006_v29 = vsel %vm4004_vm0, %v4005_v55, %v9630_v8 }
 0x471   : > { %v3915_v15 = vsel %vm6691_vm7, 0, %v6690_v62  ;;  %v3404_v18 = vmul.f32 100.0, %v3398_v60  ;;  %v3399_v10 = vadd.f32 %v3393_v52, %v9277_v35  ;;  %v4007_v28 = vadd.s32 %v4006_v29, %v4002_v36 }
 0x472   : > { %v3916_v26 = vsub.s32 32, %v3915_v15  ;;  %v3920_v16 = vsub.s32 4294967266, %v3915_v15  ;;  %v3381_v17 = vmul.f32 -30.0, %v3370_v40  ;;  %vm3949_vm12 = vcmp.lt.s32.totalorder %v9468_v4, 0 }
 0x473   : > { %v3410_v53 = vsub.f32 %v3380_v48, %v3404_v18  ;;  %v3405_v34 = vmul.f32 100.0, %v3399_v10  ;;  %v3382_v1 = vmul.f32 -30.0, %v3374_v31  ;;  %v3400_v54 = vadd.f32 %v3394_v33, %v9409_v25 }
 0x474   : > { %v3917_v61 = vshll.u32 %v9613_v13, %v3915_v15  ;;  %v3918_v3 = vshrl.u32 %v3900_v9, %v3916_v26  ;;  %v3921_v27 = vadd.s32 127, %v3920_v16  ;;  %v4008_v7 = vadd.s32 536870912, %v4007_v28 }
 0x475   : > { %v3416_v8 = vmul.f32 1.442695, %v3409_v44  ;;  %v3411_v47 = vsub.f32 %v3381_v17, %v3405_v34  ;;  %v3406_v55 = vmul.f32 100.0, %v3400_v54  ;;  %v3395_v35 = vmul.f32 %v3376_v0, %v3376_v0  ;;  %v9670_v25 = vpop.eup %7193 }
 0x476   : > { %v3919_v23 = vor.u32 %v3918_v3, %v3917_v61  ;;  %v3922_v62 = vshll.u32 %v3921_v27, 23  ;;  %v10483_v40 = vand.u32 2147483647, %v9468_v4  ;;  %v4009_v31 = vshrl.u32 %v4008_v7, 30 }
 0x477   : > { %v3418_v36 = vmul.f32 1.442695, %v3410_v53  ;;  %7197 = vpow2.f32 %v9601_v57  ;;  %v3420_v13 = vmul.f32 1.442695, %v3411_v47  ;;  %v3412_v9 = vsub.f32 %v3382_v1, %v3406_v55  ;;  %v9674_v60 = vpop.eup %7195 }
 0x478   : > { %vm9666_vm14 = vcmp.le.f32.partialorder %v10483_v40, 0.7853982  ;;  %v3401_v44 = vadd.f32 %v3395_v35, %v9489_v38  ;;  %v3923_v33 = vor.u32 4788187, %v3922_v62  ;;  %v4010_v48 = vshll.u32 %v4009_v31, 30 }
 0x479   : > { %v4033_v15 = vsub.s32 4, %v4009_v31  ;;  %vm3524_vm4 = vweird.f32 %v9146_v12  ;;  %v3525_v29 = vand.u32 3, %v9382_v43  ;;  %v9680_v18 = vadd.s32 %v9629_v32, %v9646_v24 }
 0x47a   : > { %7199 = vpow2.f32 %v3416_v8  ;;  %v9682_v10 = vmul.f32 -30.0, %v3376_v0  ;;  %v9684_v57 = vmul.f32 100.0, %v3401_v44  ;;  %v3924_v26 = vand.u32 2147483647, %v3923_v33 }
 0x47b   : > { %v3926_v38 = vcvt.s32.f32 %v3919_v23  ;;  %v9686_v16 = vsub.s32 %v4007_v28, %v4010_v48  ;;  %7201 = vpow2.f32 %v3418_v36  ;;  %v9688_v17 = vmul.f32 1.442695, %v3412_v9 }
 0x47c   : > { %7203 = vpow2.f32 %v3420_v13  ;;  %v3413_v43 = vsub.f32 %v9682_v10, %v9684_v57  ;;  %v3528_v53 = vxor.u32 2147483648, %v9524_v63  ;;  %v4034_v0 = vsel %vm3949_vm12, %v4033_v15, %v4009_v31 }
 0x47d   : > { %v3927_v32 = vmul.f32 %v3926_v38, %v3924_v26  ;;  %v4013_v24 = vsub.s32 0, %v9686_v16  ;;  %vm3527_vm9 = vcmp.eq.s32.totalorder %v3525_v29, 0  ;;  %vm3526_vm2 = vcmp.lt.s32.totalorder %v3525_v29, 2 }
 0x47e   : > { %v3529_v28 = vsel %vm3527_vm9, %v9500_v58, %v3528_v53  ;;  %vm3530_vm3 = vcmp.eq.s32.totalorder %v3525_v29, 2  ;;  %v3531_v34 = vxor.u32 2147483648, %v9500_v58  ;;  %v3628_v61 = vand.u32 3, %v9386_v5 }
 0x47f   : > { %v3928_v1 = vxor.u32 2147483648, %v3927_v32  ;;  %v6693_v54 = vmin.u32 %v4013_v24, %v9686_v16  ;;  %v3631_v3 = vxor.u32 2147483648, %v9542_v30  ;;  %v9705_v27 = vsel %vm9666_vm14, 0, %v4034_v0 }
 0x480   : > { %v3532_v7 = vsel %vm3530_vm3, %v3531_v34, %v9524_v63  ;;  %vm3627_vm10 = vweird.f32 %v9149_v42  ;;  %v3634_v8 = vxor.u32 2147483648, %v9536_v11  ;;  %vm3629_vm11 = vcmp.lt.s32.totalorder %v3628_v61, 2 }
 0x481   : > { %v3929_v47 = vsel %vm3846_vm5, %v3928_v1, %v3927_v32  ;;  %v4015_v55 = vclz %v6693_v54  ;;  %v3533_v35 = vsel %vm3526_vm2, %v3529_v28, %v3532_v7  ;;  %vm3730_vm1 = vweird.f32 %v9162_v22  ;;  %v9715_v5 = vpop.eup %7197 }
 0x482   : > { %v3932_v23 = vsel %vm9595_vm8, %v9414_v46, %v3929_v47  ;;  %v3534_v62 = vsel %vm3524_vm4, nan, %v3533_v35  ;;  %vm3630_vm6 = vcmp.eq.s32.totalorder %v3628_v61, 0  ;;  %vm3633_vm13 = vcmp.eq.s32.totalorder %v3628_v61, 2 }
 0x483   : > { %7205 = vcosq.f32 %v3932_v23  ;;  %v6694_v40 = vadd.s32 4294967294, %v4015_v55  ;;  %v3632_v31 = vsel %vm3630_vm6, %v9536_v11, %v3631_v3  ;;  %v3635_v36 = vsel %vm3633_vm13, %v3634_v8, %v9542_v30 }
 0x484   : > { %v9728_v13 = vpop.eup %7199  ;;  %7207 = vsinq.f32 %v3932_v23  ;;  %v3636_v19 = vsel %vm3629_vm11, %v3632_v31, %v3635_v36  ;;  %v3731_v9 = vand.u32 3, %v9464_v59  ;;  %v3734_v44 = vxor.u32 2147483648, %v9607_v20  ;;  %v10486_v36 = vld [vmem:[#allocation11_spill] sm:$0xff] }
 0x485   : > { %v9732_v33 = vpop.eup %7201  ;;  %vm6695_vm5 = vcmp.lt.s32.totalorder %v6694_v40, 0  ;;  %v3637_v48 = vsel %vm3627_vm10, nan, %v3636_v19  ;;  %v3737_v15 = vxor.u32 2147483648, %v9604_v37  ;;  %vm3833_vm8 = vweird.f32 %v9173_v2 }
 0x486   : > { %v9738_v29 = vpop.eup %7203  ;;  %v4018_v26 = vsel %vm6695_vm5, 0, %v6694_v40  ;;  %vm3732_vm15 = vcmp.lt.s32.totalorder %v3731_v9, 2  ;;  %vm3733_vm7 = vcmp.eq.s32.totalorder %v3731_v9, 0  ;;  %vm3736_vm0 = vcmp.eq.s32.totalorder %v3731_v9, 2 }
 0x487   : > { %v4019_v38 = vsub.s32 32, %v4018_v26  ;;  %v4020_v59 = vshll.u32 %v9686_v16, %v4018_v26  ;;  %v4023_v32 = vsub.s32 4294967266, %v4018_v26  ;;  %v3735_v24 = vsel %vm3733_vm7, %v9604_v37, %v3734_v44 }
 0x488   : > { %v3738_v0 = vsel %vm3736_vm0, %v3737_v15, %v9607_v20  ;;  %v3834_v28 = vand.u32 3, %v9548_v39  ;;  %v3837_v1 = vxor.u32 2147483648, %v9674_v60  ;;  %v3840_v54 = vxor.u32 2147483648, %v9670_v25 }
 0x489   : > { %v4021_v61 = vshrl.u32 %v9680_v18, %v4019_v38  ;;  %v4024_v7 = vadd.s32 127, %v4023_v32  ;;  %v3739_v47 = vsel %vm3732_vm15, %v3735_v24, %v3738_v0  ;;  %v9750_v55 = vmul.f32 %v9715_v5, %v3534_v62  ;;  %v10487_v32 = vld [vmem:[#allocation9_spill] sm:$0xff] }
 0x48a   : > { %v3740_v16 = vsel %vm3730_vm1, nan, %v3739_v47  ;;  %vm3835_vm9 = vcmp.lt.s32.totalorder %v3834_v28, 2  ;;  %vm3836_vm2 = vcmp.eq.s32.totalorder %v3834_v28, 0  ;;  %vm3839_vm3 = vcmp.eq.s32.totalorder %v3834_v28, 2 }
 0x48b   : > { %v4022_v35 = vor.u32 %v4021_v61, %v4020_v59  ;;  %v4025_v23 = vshll.u32 %v4024_v7, 23  ;;  %v3838_v39 = vsel %vm3836_vm2, %v9670_v25, %v3837_v1  ;;  %v3841_v18 = vsel %vm3839_vm3, %v3840_v54, %v9674_v60 }
 0x48c   : > { %v3842_v40 = vsel %vm3835_vm9, %v3838_v39, %v3841_v18  ;;  %v9761_v62 = vmul.f32 %v9728_v13, %v3637_v48  ;;  %v9764_v31 = vmul.f32 %v9732_v33, %v3740_v16  ;;  %v4156_v19 = vand.u32 3, %v10486_v36  ;;  %v10488_v16 = vld [vmem:[#allocation7_spill] sm:$0xff] }
 0x48d   : > { %v9767_v9 = vpop.eup %7205  ;;  %v4026_v26 = vor.u32 4788187, %v4025_v23  ;;  %v4029_v38 = vcvt.s32.f32 %v4022_v35  ;;  %v3843_v59 = vsel %vm3833_vm8, nan, %v3842_v40  ;;  %v4260_v24 = vand.u32 3, %v10487_v32 }
 0x48e   : > { %v9772_v0 = vpop.eup %7207  ;;  %v9775_v28 = vmul.f32 %v9738_v29, %v3843_v59  ;;  %vm4157_vm11 = vcmp.lt.s32.totalorder %v4156_v19, 2  ;;  %vm4158_vm6 = vcmp.eq.s32.totalorder %v4156_v19, 0  ;;  %vm4161_vm13 = vcmp.eq.s32.totalorder %v4156_v19, 2 }
 0x48f   : > { %v4027_v48 = vand.u32 2147483647, %v4026_v26  ;;  %v4160_v61 = vsel %vm4158_vm6, %v9500_v58, %v3528_v53  ;;  %v4163_v7 = vsel %vm4161_vm13, %v3531_v34, %v9524_v63  ;;  %vm4261_vm5 = vcmp.lt.s32.totalorder %v4260_v24, 2 }
 0x490   : > { %v4164_v47 = vsel %vm4157_vm11, %v4160_v61, %v4163_v7  ;;  %vm4262_vm15 = vcmp.eq.s32.totalorder %v4260_v24, 0  ;;  %vm4265_vm7 = vcmp.eq.s32.totalorder %v4260_v24, 2  ;;  %v4364_v35 = vand.u32 3, %v10488_v16 }
 0x491   : > { %v4030_v23 = vmul.f32 %v4029_v38, %v4027_v48  ;;  %v4165_v39 = vsel %vm3524_vm4, nan, %v4164_v47  ;;  %v4264_v18 = vsel %vm4262_vm15, %v9536_v11, %v3631_v3  ;;  %v4267_v53 = vsel %vm4265_vm7, %v3634_v8, %v9542_v30 }
 0x492   : > { %v4268_v58 = vsel %vm4261_vm5, %v4264_v18, %v4267_v53  ;;  %vm4365_vm0 = vcmp.lt.s32.totalorder %v4364_v35, 2  ;;  %vm4366_vm9 = vcmp.eq.s32.totalorder %v4364_v35, 0  ;;  %vm4369_vm2 = vcmp.eq.s32.totalorder %v4364_v35, 2 }
 0x493   : > { %v4031_v63 = vxor.u32 2147483648, %v4030_v23  ;;  %v4269_v34 = vsel %vm3627_vm10, nan, %v4268_v58  ;;  %v4368_v12 = vsel %vm4366_vm9, %v9604_v37, %v3734_v44  ;;  %v4371_v40 = vsel %vm4369_vm2, %v3737_v15, %v9607_v20 }
 0x494   : > { %v4372_v36 = vsel %vm4365_vm0, %v4368_v12, %v4371_v40  ;;  %v4468_v3 = vand.u32 3, %v9576_v6  ;;  %v4686_v11 = vmul.f32 %v9715_v5, %v4165_v39  ;;  %v4687_v30 = vmul.f32 %v9728_v13, %v4269_v34 }
 0x495   : > { %v4032_v8 = vsel %vm3949_vm12, %v4031_v63, %v4030_v23  ;;  %v4373_v42 = vsel %vm3730_vm1, nan, %v4372_v36  ;;  %v4710_v19 = vmul.f32 %v9761_v62, %v9750_v55  ;;  %v4711_v37 = vmul.f32 %v9775_v28, %v9764_v31 }
 0x496   : > { %v4035_v6 = vsel %vm9666_vm14, %v9468_v4, %v4032_v8  ;;  %v3424_v20 = vmul.f32 1.442695, %v3413_v43  ;;  %vm4470_vm4 = vcmp.eq.s32.totalorder %v4468_v3, 0  ;;  %vm4473_vm10 = vcmp.eq.s32.totalorder %v4468_v3, 2 }
 0x497   : > { %7209 = vcosq.f32 %v4035_v6  ;;  %vm4469_vm12 = vcmp.lt.s32.totalorder %v4468_v3, 2  ;;  %v4472_v22 = vsel %vm4470_vm4, %v9670_v25, %v3837_v1  ;;  %v4475_v5 = vsel %vm4473_vm10, %v3840_v54, %v9674_v60 }
 0x498   : > { %7211 = vsinq.f32 %v4035_v6  ;;  %v4476_v13 = vsel %vm4469_vm12, %v4472_v22, %v4475_v5  ;;  %v4688_v52 = vmul.f32 %v9732_v33, %v4373_v42  ;;  %v4713_v44 = vmul.f32 %v4687_v30, %v4686_v11  ;;  %v6721_v5 = vld [vmem:[%s10368_s3 + $0x68] sm:$0xff] }
 0x499   : > { %v4477_v10 = vsel %vm3833_vm8, nan, %v4476_v13  ;;  %v3937_v57 = vand.u32 3, %v9636_v14  ;;  %v3940_v43 = vxor.u32 2147483648, %v9772_v0  ;;  %v3943_v15 = vxor.u32 2147483648, %v9767_v9  ;;  %v6723_v13 = vld [vmem:[%s10368_s3 + $0x78] sm:$0xff] }
 0x49a   : > { %7213 = vpow2.f32 %v9688_v17  ;;  %v4689_v1 = vmul.f32 %v9738_v29, %v4477_v10  ;;  %v4716_v25 = vsub.f32 %v4710_v19, %v4713_v44  ;;  %v4675_v60 = vadd.s32 3, %v9705_v27  ;;  %v6725_v44 = vld [vmem:[%s10368_s3 + $0x88] sm:$0xff]  ;;  %v6762_v10 = vld [vmem:[%s10368_s3 + $0x90] sm:$0xff] }
 0x49b   : > { %vm3939_vm14 = vcmp.eq.s32.totalorder %v3937_v57, 0  ;;  %vm3942_vm1 = vcmp.eq.s32.totalorder %v3937_v57, 2  ;;  %v4572_v33 = vand.u32 3, %v9652_v21  ;;  %7215 = vpow2.f32 %v3424_v20 }
 0x49c   : > { %v4714_v54 = vmul.f32 %v4689_v1, %v4688_v52  ;;  %v3941_v2 = vsel %vm3939_vm14, %v9767_v9, %v3940_v43  ;;  %v3944_v14 = vsel %vm3942_vm1, %v3943_v15, %v9772_v0  ;;  %vm3938_vm8 = vcmp.lt.s32.totalorder %v3937_v57, 2  ;;  %v4762_v57 = vpop.permute.xlu1 %4761 }
 0x49d   : > { %v4040_v26 = vand.u32 3, %v9705_v27  ;;  %v3945_v17 = vsel %vm3938_vm8, %v3941_v2, %v3944_v14  ;;  %vm4574_vm3 = vcmp.eq.s32.totalorder %v4572_v33, 0  ;;  %vm4577_vm11 = vcmp.eq.s32.totalorder %v4572_v33, 2 }
 0x49e   : > { %v4717_v38 = vsub.f32 %v4711_v37, %v4714_v54  ;;  %vm4573_vm6 = vcmp.lt.s32.totalorder %v4572_v33, 2  ;;  %v4576_v29 = vsel %vm4574_vm3, %v9767_v9, %v3940_v43  ;;  %v4579_v59 = vsel %vm4577_vm11, %v3943_v15, %v9772_v0  ;;  %v4757_v43 = vpop.permute.xlu0 %4756 }
 0x49f   : > { %v4676_v32 = vand.u32 3, %v4675_v60  ;;  %v4580_v24 = vsel %vm4573_vm6, %v4576_v29, %v4579_v59  ;;  %v4722_v48 = vmul.f32 %v4687_v30, %v9750_v55  ;;  %v4725_v61 = vmul.f32 %v4686_v11, %v9761_v62 }
 0x4a0   : > { %v6921_v21 = vpack.c.bf16 %v4717_v38, %v4716_v25  ;;  %vm3936_vm13 = vweird.f32 %v9414_v46  ;;  %vm4039_vm5 = vweird.f32 %v9468_v4  ;;  %vm4041_vm15 = vcmp.lt.s32.totalorder %v4040_v26, 2  ;;  %v6722_v4 = vld [vmem:[%s10368_s3 + $0x70] sm:$0xff]  ;;  %v4772_v54 = vpop.permute.xlu1 %4771 }
 0x4a1   : > { %v7210_v7 = vpop.eup %7209  ;;  %vm4045_vm7 = vcmp.eq.s32.totalorder %v4040_v26, 2  ;;  %v3946_v47 = vsel %vm3936_vm13, nan, %v3945_v17  ;;  %v4728_v16 = vadd.f32 %v4725_v61, %v4722_v48  ;;  %v4723_v0 = vmul.f32 %v4689_v1, %v9764_v31 }
 0x4a2   : > { %v7212_v27 = vpop.eup %7211  ;;  %6922 = vmatprep.subr.bf16.mxu0 %v6921_v21  ;;  %v4046_v9 = vxor.u32 2147483648, %v7210_v7  ;;  %v4581_v23 = vsel %vm3936_vm13, nan, %v4580_v24  ;;  %vm4681_vm0 = vcmp.eq.s32.totalorder %v4676_v32, 2  ;;  %v4726_v55 = vmul.f32 %v4688_v52, %v9775_v28  ;;  %v6724_v52 = vld [vmem:[%s10368_s3 + $0x80] sm:$0xff] }
 0x4a3   : > { %6924 = vmatpush3.bf16.msra.mxu0 %v6921_v21  ;;  %v4043_v35 = vxor.u32 2147483648, %v7212_v27  ;;  %vm4042_vm9 = vcmp.eq.s32.totalorder %v4040_v26, 0  ;;  %vm4678_vm2 = vcmp.eq.s32.totalorder %v4676_v32, 0  ;;  %vm4677_vm4 = vcmp.lt.s32.totalorder %v4676_v32, 2  ;;  %v4767_v26 = vpop.permute.xlu0 %4766 }
 0x4a4   : > { %v7214_v62 = vpop.eup %7213  ;;  %v4047_v46 = vsel %vm4045_vm7, %v4046_v9, %v7212_v27  ;;  %v4683_v39 = vsel %vm4681_vm0, %v4046_v9, %v7212_v27  ;;  %v4729_v58 = vadd.f32 %v4726_v55, %v4723_v0  ;;  %vm10489_vm10 = vcmask 392192  }
 0x4a5   : > { %v4044_v18 = vsel %vm4042_vm9, %v7210_v7, %v4043_v35  ;;  %v4680_v53 = vsel %vm4678_vm2, %v7210_v7, %v4043_v35  ;;  %v4054_v34 = vmul.f32 %v7214_v62, %v3946_v47  ;;  %v4690_v31 = vmul.f32 %v7214_v62, %v4581_v23  ;;  %v7216_v40 = vpop.eup %7215  ;;  %vm10490_vm12 = vmmov %vm10489_vm10 }
 0x4a6   : > { %v4048_v63 = vsel %vm4041_vm15, %v4044_v18, %v4047_v46  ;;  %v4684_v12 = vsel %vm4677_vm4, %v4680_v53, %v4683_v39  ;;  %vm10491_vm14 = vmmov %vm10489_vm10 }
 0x4a7   : > { %v4049_v36 = vsel %vm4039_vm5, nan, %v4048_v63  ;;  %v4685_v28 = vsel %vm4039_vm5, nan, %v4684_v12  ;;  %vm10492_vm1 = vmmov %vm10489_vm10 }
 0x4a8   : > { %v4055_v3 = vmul.f32 %v7216_v40, %v4049_v36  ;;  %v4691_v11 = vmul.f32 %v7216_v40, %v4685_v28  ;;  %vm10493_vm8 = vmmov %vm10492_vm1 }
 0x4a9   : > { %vm10494_vm3 = vmmov %vm10492_vm1 }
 0x4aa   : > { %v4712_v30 = vmul.f32 %v4055_v3, %v4054_v34  ;;  %v4715_v8 = vmul.f32 %v4691_v11, %v4690_v31  ;;  %v4724_v42 = vmul.f32 %v4691_v11, %v4054_v34  ;;  %v4727_v19 = vmul.f32 %v4690_v31, %v4055_v3  ;;  %6873 = vmatprep.mubr.msk.f32.mxu1 %vm10494_vm3, %v6762_v10  ;;  %v4782_v31 = vpop.permute.xlu1 %4781 }
 0x4ac   : > { %v4718_v37 = vsub.f32 %v4712_v30, %v4715_v8  ;;  %v4730_v6 = vadd.f32 %v4727_v19, %v4724_v42 }
 0x4ae   : > { %v6925_v20 = vpack.c.bf16 %v4728_v16, %v4718_v37  ;;  %v6929_v22 = vpack.c.bf16 %v4730_v6, %v4729_v58 }
 0x4b0   : > { %6926 = vmatprep.subr.bf16.mxu0 %v6925_v20 }
 0x4b1   : > { %6928 = vmatpush3.bf16.msra.mxu0 %v6925_v20 }
 0x4b2   : > { %6930 = vmatprep.subr.bf16.mxu0 %v6929_v22 }
 0x4b5   : > { %6932 = vmatpush3.bf16.msra.mxu0 %v6929_v22 }
 0x4b8   : > { %6853 = vmatmul.mubr.msk.f32.vlgmr.msra.gmra.mrb[12].mxu0 %vm10489_vm10, %v6721_v5 }
 0x4b9   : > { %6855 = vmatprep.mubr.msk.f32.mxu0 %vm10490_vm12, %v6722_v4 }
 0x4bc   : > { %6856 = vmatmul.mubr.msk.f32.gmra.mrb[14].mxu0 %vm10491_vm14, %v6723_v13 }
 0x4bd   : > { %6858 = vmatprep.mubr.msk.f32.mxu0 %vm10492_vm1, %v6724_v52 }
 0x4c0   : > { %6859 = vmatmul.mubr.msk.f32.gmra.mrb[16].mxu0 %vm10493_vm8, %v6725_v44 }
 0x58b   : > { %v6854_v15 = vpop.f32.mrb[12].mxu0 }
 0x58c   : > { %v9871_v1 = vadd.f32 %v6854_v15, %v4762_v57  ;;  %v4868_v25 = vpop.f32.mrb[13].mxu0 }
 0x58d   : > { %v4869_v60 = vadd.f32 %v4868_v25, %v4757_v43 }
 0x58e   : > { %v9874_v33 = vmul.f32 30.0, %v9871_v1 }
 0x58f   : > { %v9876_v2 = vmul.f32 30.0, %v4869_v60  ;;  %v6857_v14 = vpop.f32.mrb[14].mxu0  ;;  %v4900_v7 = vmul.f32 %v4869_v60, %v4869_v60 }
 0x590   : > { %v5027_v38 = vand.u32 2147483647, %v9874_v33  ;;  %v5030_v17 = vand.u32 2139095040, %v9874_v33  ;;  %v4884_v29 = vadd.f32 %v6857_v14, %v4772_v54  ;;  %v4878_v59 = vpop.f32.mrb[15].mxu0 }
 0x591   : > { %v4924_v32 = vand.u32 2147483647, %v9876_v2  ;;  %v4927_v21 = vand.u32 2139095040, %v9876_v2  ;;  %v9882_v24 = vadd.f32 %v4878_v59, %v4767_v26 }
 0x592   : > { %v5031_v48 = vshrl.u32 %v5030_v17, 23  ;;  %v5034_v61 = vand.u32 8388607, %v5027_v38  ;;  %v4903_v9 = vmul.f32 %v4884_v29, %v4884_v29  ;;  %v9893_v53 = vmul.f32 -30.0, %v4884_v29 }
 0x593   : > { %v4928_v27 = vshrl.u32 %v4927_v21, 23  ;;  %v4931_v47 = vand.u32 8388607, %v4924_v32  ;;  %v6860_v16 = vpop.f32.mrb[16].mxu0  ;;  %v9889_v35 = vmul.f32 30.0, %v9882_v24 }
 0x594   : > { %v6742_v0 = vadd.s32 4294967169, %v5031_v48  ;;  %v9891_v23 = vpop.f32.mrb[17].mxu0  ;;  %v4906_v62 = vadd.f32 %v4903_v9, %v4900_v7  ;;  %v5035_v46 = vor.u32 8388608, %v5034_v61  ;;  %v9901_v30 = vadd.f32 %v6860_v16, %v4782_v31 }
 0x595   : > { %v6738_v55 = vadd.s32 4294967169, %v4928_v27  ;;  %v4932_v18 = vor.u32 8388608, %v4931_v47  ;;  %v5130_v34 = vand.u32 2147483647, %v9889_v35  ;;  %v5133_v12 = vand.u32 2139095040, %v9889_v35 }
 0x596   : > { %v5037_v39 = vadd.s32 1, %v6742_v0  ;;  %v9895_v63 = vmul.f32 100.0, %v4906_v62  ;;  %v9903_v8 = vshll.u32 %v5035_v46, 8 }
 0x597   : > { %v4934_v58 = vadd.s32 1, %v6738_v55  ;;  %v9905_v42 = vshll.u32 %v4932_v18, 8  ;;  %v5134_v19 = vshrl.u32 %v5133_v12, 23  ;;  %v9909_v37 = vand.u32 8388607, %v5130_v34 }
 0x598   : > { %vm5038_vm11 = vcmp.gt.s32.totalorder %v5037_v39, 0  ;;  %v4912_v36 = vsub.f32 %v9893_v53, %v9895_v63 }
 0x599   : > { %v5039_v40 = vsel %vm5038_vm11, %v5037_v39, 0  ;;  %vm4935_vm6 = vcmp.gt.s32.totalorder %v4934_v58, 0 }
 0x59a   : > { %v5040_v28 = vshrl.u32 %v5039_v40, 5  ;;  %v5041_v3 = vand.u32 31, %v5039_v40  ;;  %v4936_v11 = vsel %vm4935_vm6, %v4934_v58, 0 }
 0x59b   : > { %v9912_v22 = vshrl.u32 %v4936_v11, 5  ;;  %v4938_v5 = vand.u32 31, %v4936_v11 }
 0x59c   : > { %v5042_v6 = vsub.s32 32, %v5041_v3  ;;  %v5044_v20 = vshll.u32 %v10427_v51, %v5041_v3  ;;  %v5047_v4 = vshll.u32 %v10429_v41, %v5041_v3  ;;  %v5050_v13 = vshll.u32 %v10430_v45, %v5041_v3 }
 0x59d   : > { %v5053_v52 = vshll.u32 %v10428_v56, %v5041_v3  ;;  %v5056_v44 = vshll.u32 %v10465_v49, %v5041_v3  ;;  %vm5059_vm13 = vcmp.lt.s32.totalorder %v5040_v28, 1  ;;  %vm5060_vm5 = vcmp.lt.s32.totalorder %v5040_v28, 2 }
 0x59e   : > { %v5045_v10 = vshrl.u32 %v10429_v41, %v5042_v6  ;;  %v5048_v57 = vshrl.u32 %v10430_v45, %v5042_v6  ;;  %v5051_v43 = vshrl.u32 %v10428_v56, %v5042_v6  ;;  %v5043_v15 = vshrl.u32 %v10427_v51, %v5042_v6 }
 0x59f   : > { %v5054_v25 = vshrl.u32 %v10465_v49, %v5042_v6  ;;  %v5057_v60 = vshrl.u32 %v10466_v50, %v5042_v6  ;;  %v4939_v17 = vsub.s32 32, %v4938_v5  ;;  %vm5061_vm15 = vcmp.lt.s32.totalorder %v5040_v28, 3 }
 0x5a0   : > { %v5046_v54 = vor.u32 %v5045_v10, %v5044_v20  ;;  %v5049_v14 = vor.u32 %v5048_v57, %v5047_v4  ;;  %v5052_v26 = vor.u32 %v5051_v43, %v5050_v13  ;;  %vm5062_vm7 = vcmp.lt.s32.totalorder %v5040_v28, 4 }
 0x5a1   : > { %v5055_v29 = vor.u32 %v5054_v25, %v5053_v52  ;;  %v5058_v59 = vor.u32 %v5057_v60, %v5056_v44  ;;  %v4941_v16 = vshll.u32 %v10427_v51, %v4938_v5  ;;  %v4942_v62 = vshrl.u32 %v10429_v41, %v4939_v17 }
 0x5a2   : > { %v5063_v21 = vsel %vm5059_vm13, %v5043_v15, %v5046_v54  ;;  %v5064_v48 = vsel %vm5062_vm7, %v5052_v26, 2102212464  ;;  %v5067_v61 = vsel %vm5059_vm13, %v5046_v54, %v5049_v14  ;;  %v5071_v7 = vsel %vm5059_vm13, %v5049_v14, %v5052_v26 }
 0x5a3   : > { %v5065_v27 = vsel %vm5061_vm15, %v5049_v14, %v5064_v48  ;;  %v5068_v47 = vsel %vm5062_vm7, %v5055_v29, 920167782  ;;  %v5072_v9 = vsel %vm5062_vm7, %v5058_v59, 1326507024  ;;  %v4944_v46 = vshll.u32 %v10429_v41, %v4938_v5 }
 0x5a4   : > { %v5069_v0 = vsel %vm5061_vm15, %v5052_v26, %v5068_v47  ;;  %v5073_v55 = vsel %vm5061_vm15, %v5055_v29, %v5072_v9  ;;  %v5066_v39 = vsel %vm5060_vm5, %v5063_v21, %v5065_v27  ;;  %v4945_v12 = vshrl.u32 %v10430_v45, %v4939_v17 }
 0x5a5   : > { %v5070_v18 = vsel %vm5060_vm5, %v5067_v61, %v5069_v0  ;;  %v5074_v58 = vsel %vm5060_vm5, %v5071_v7, %v5073_v55  ;;  %v4943_v6 = vor.u32 %v4942_v62, %v4941_v16  ;;  %v4947_v4 = vshll.u32 %v10430_v45, %v4938_v5 }
 0x5a6   : > { %v9935_v31 = vmul.u32.u64.low %v9903_v8, %v5074_v58  ;;  %v9936_v40 = vmul.u32.u64.high %v9903_v8, %v5074_v58, %v9935_v31  ;;  %v9939_v3 = vmul.u32.u64.low %v9903_v8, %v5070_v18  ;;  %v9940_v11 = vmul.u32.u64.high %v9903_v8, %v5070_v18, %v9939_v3 }
 0x5a7   : > { %v4946_v20 = vor.u32 %v4945_v12, %v4944_v46  ;;  %v4948_v13 = vshrl.u32 %v10428_v56, %v4939_v17  ;;  %v4950_v52 = vshll.u32 %v10428_v56, %v4938_v5  ;;  %v4951_v28 = vshrl.u32 %v10465_v49, %v4939_v17 }
 0x5a8   : > { %v4954_v44 = vshrl.u32 %v10466_v50, %v4939_v17  ;;  %v6746_v10 = vadd.s32 4294967169, %v5134_v19  ;;  %v5082_v57 = vmul.u32 %v9903_v8, %v5066_v39  ;;  %v4940_v43 = vshrl.u32 %v10427_v51, %v4939_v17 }
 0x5a9   : > { %v4949_v15 = vor.u32 %v4948_v13, %v4947_v4  ;;  %v4953_v25 = vshll.u32 %v10465_v49, %v4938_v5  ;;  %vm5084_vm0 = vc.u32 %v9936_v40, %v9939_v3  ;;  %v5085_v60 = vadd.s32 1, %v9940_v11 }
 0x5aa   : > { %v4952_v54 = vor.u32 %v4951_v28, %v4950_v52  ;;  %vm4956_vm9 = vcmp.lt.s32.totalorder %v9912_v22, 1  ;;  %vm4958_vm2 = vcmp.lt.s32.totalorder %v9912_v22, 3  ;;  %vm4959_vm4 = vcmp.lt.s32.totalorder %v9912_v22, 4 }
 0x5ab   : > { %v4955_v14 = vor.u32 %v4954_v44, %v4953_v25  ;;  %v4964_v19 = vsel %vm4956_vm9, %v4943_v6, %v4946_v20  ;;  %v5086_v8 = vsel %vm5084_vm0, %v5085_v60, %v9940_v11  ;;  %v4961_v26 = vsel %vm4959_vm4, %v4949_v15, 2102212464 }
 0x5ac   : > { %v4965_v17 = vsel %vm4959_vm4, %v4952_v54, 920167782  ;;  %v4968_v29 = vsel %vm4956_vm9, %v4946_v20, %v4949_v15  ;;  %v5087_v59 = vadd.s32 %v5086_v8, %v5082_v57  ;;  %vm4957_vm10 = vcmp.lt.s32.totalorder %v9912_v22, 2 }
 0x5ad   : > { %v4966_v5 = vsel %vm4958_vm2, %v4949_v15, %v4965_v17  ;;  %v4969_v21 = vsel %vm4959_vm4, %v4955_v14, 1326507024  ;;  %v4960_v48 = vsel %vm4956_vm9, %v4940_v43, %v4943_v6  ;;  %v4962_v61 = vsel %vm4958_vm2, %v4946_v20, %v4961_v26 }
 0x5ae   : > { %v4967_v7 = vsel %vm4957_vm10, %v4964_v19, %v4966_v5  ;;  %v4970_v27 = vsel %vm4958_vm2, %v4952_v54, %v4969_v21  ;;  %v5088_v47 = vadd.s32 536870912, %v5087_v59  ;;  %v4902_v22 = vmul.f32 %v9882_v24, %v9882_v24  ;;  %v4777_v24 = vpop.permute.xlu0 %4776 }
 0x5af   : > { %v4971_v9 = vsel %vm4957_vm10, %v4968_v29, %v4970_v27  ;;  %v9958_v16 = vmul.u32.u64.low %v9905_v42, %v4967_v7  ;;  %v9959_v0 = vmul.u32.u64.high %v9905_v42, %v4967_v7, %v9958_v16  ;;  %v5140_v46 = vadd.s32 1, %v6746_v10 }
 0x5b0   : > { %v9963_v55 = vmul.u32.u64.low %v9905_v42, %v4971_v9  ;;  %v9964_v62 = vmul.u32.u64.high %v9905_v42, %v4971_v9, %v9963_v55  ;;  %v9968_v39 = vshrl.u32 %v5088_v47, 30  ;;  %v4963_v18 = vsel %vm4957_vm10, %v4960_v48, %v4962_v61 }
 0x5b1   : > { %v5138_v58 = vor.u32 8388608, %v9909_v37  ;;  %v4905_v12 = vmul.f32 %v9901_v30, %v9901_v30  ;;  %vm5141_vm12 = vcmp.gt.s32.totalorder %v5140_v46, 0  ;;  %v9974_v31 = vmul.f32 -30.0, %v9901_v30 }
 0x5b2   : > { %v5090_v11 = vshll.u32 %v9968_v39, 30  ;;  %v4982_v6 = vadd.s32 1, %v9959_v0  ;;  %v5142_v20 = vsel %vm5141_vm12, %v5140_v46, 0  ;;  %v5083_v13 = vadd.s32 %v9939_v3, %v9936_v40 }
 0x5b3   : > { %v4908_v4 = vadd.f32 %v4905_v12, %v4902_v22  ;;  %v4979_v52 = vmul.u32 %v9905_v42, %v4963_v18  ;;  %vm4981_vm14 = vc.u32 %v9964_v62, %v9958_v16  ;;  %v5144_v37 = vand.u32 31, %v5142_v20 }
 0x5b4   : > { %v9982_v28 = vsub.s32 %v5087_v59, %v5090_v11  ;;  %v4983_v30 = vsel %vm4981_vm14, %v4982_v6, %v9959_v0  ;;  %v9985_v44 = vshll.u32 %v5138_v58, 8  ;;  %v9988_v10 = vadd.f32 %v9891_v23, %v4777_v24 }
 0x5b5   : > { %v4984_v57 = vadd.s32 %v4983_v30, %v4979_v52  ;;  %v5143_v43 = vshrl.u32 %v5142_v20, 5  ;;  %v5145_v15 = vsub.s32 32, %v5144_v37  ;;  %v5147_v40 = vshll.u32 %v10427_v51, %v5144_v37 }
 0x5b6   : > { %v5093_v42 = vsub.s32 0, %v9982_v28  ;;  %v5150_v3 = vshll.u32 %v10429_v41, %v5144_v37  ;;  %v5153_v25 = vshll.u32 %v10430_v45, %v5144_v37  ;;  %v5156_v60 = vshll.u32 %v10428_v56, %v5144_v37 }
 0x5b7   : > { %v4985_v54 = vadd.s32 536870912, %v4984_v57  ;;  %v5148_v14 = vshrl.u32 %v10429_v41, %v5145_v15  ;;  %v5151_v19 = vshrl.u32 %v10430_v45, %v5145_v15  ;;  %v5159_v23 = vshll.u32 %v10465_v49, %v5144_v37 }
 0x5b8   : > { %v6743_v8 = vmin.u32 %v5093_v42, %v9982_v28  ;;  %v5154_v26 = vshrl.u32 %v10428_v56, %v5145_v15  ;;  %v5157_v17 = vshrl.u32 %v10465_v49, %v5145_v15  ;;  %v5160_v29 = vshrl.u32 %v10466_v50, %v5145_v15 }
 0x5b9   : > { %v10002_v59 = vshrl.u32 %v4985_v54, 30  ;;  %v5149_v5 = vor.u32 %v5148_v14, %v5147_v40  ;;  %v5152_v21 = vor.u32 %v5151_v19, %v5150_v3  ;;  %v10004_v48 = vmul.f32 100.0, %v4908_v4 }
 0x5ba   : > { %v5095_v61 = vclz %v6743_v8  ;;  %v5155_v7 = vor.u32 %v5154_v26, %v5153_v25  ;;  %v5158_v27 = vor.u32 %v5157_v17, %v5156_v60  ;;  %v5161_v47 = vor.u32 %v5160_v29, %v5159_v23 }
 0x5bb   : > { %v4987_v9 = vshll.u32 %v10002_v59, 30  ;;  %v5146_v0 = vshrl.u32 %v10427_v51, %v5145_v15  ;;  %vm5162_vm1 = vcmp.lt.s32.totalorder %v5143_v43, 1  ;;  %vm5163_vm8 = vcmp.lt.s32.totalorder %v5143_v43, 2 }
 0x5bc   : > { %v6744_v55 = vadd.s32 4294967294, %v5095_v61  ;;  %vm5164_vm3 = vcmp.lt.s32.totalorder %v5143_v43, 3  ;;  %vm5165_vm11 = vcmp.lt.s32.totalorder %v5143_v43, 4  ;;  %v5170_v22 = vsel %vm5162_vm1, %v5149_v5, %v5152_v21 }
 0x5bd   : > { %v4988_v46 = vsub.s32 %v4984_v57, %v4987_v9  ;;  %v5167_v18 = vsel %vm5165_vm11, %v5155_v7, 2102212464  ;;  %v5171_v58 = vsel %vm5165_vm11, %v5158_v27, 920167782  ;;  %v5174_v12 = vsel %vm5162_vm1, %v5152_v21, %v5155_v7 }
 0x5be   : > { %vm6745_vm6 = vcmp.lt.s32.totalorder %v6744_v55, 0  ;;  %v5166_v11 = vsel %vm5162_vm1, %v5146_v0, %v5149_v5  ;;  %v5172_v6 = vsel %vm5164_vm3, %v5155_v7, %v5171_v58  ;;  %v5175_v20 = vsel %vm5165_vm11, %v5161_v47, 1326507024 }
 0x5bf   : > { %v5098_v4 = vsel %vm6745_vm6, 0, %v6744_v55  ;;  %v4990_v24 = vsub.s32 0, %v4988_v46  ;;  %v5173_v52 = vsel %vm5163_vm8, %v5170_v22, %v5172_v6  ;;  %v5176_v37 = vsel %vm5164_vm3, %v5158_v27, %v5175_v20 }
 0x5c0   : > { %v5099_v30 = vsub.s32 32, %v5098_v4  ;;  %v5103_v15 = vsub.s32 4294967266, %v5098_v4  ;;  %v5168_v40 = vsel %vm5164_vm3, %v5152_v21, %v5167_v18  ;;  %v5177_v57 = vsel %vm5163_vm8, %v5174_v12, %v5176_v37 }
 0x5c1   : > { %v5100_v42 = vshll.u32 %v9982_v28, %v5098_v4  ;;  %v6739_v3 = vmin.u32 %v4990_v24, %v4988_v46  ;;  %v10015_v25 = vmul.u32.u64.low %v9985_v44, %v5177_v57  ;;  %v10016_v60 = vmul.u32.u64.high %v9985_v44, %v5177_v57, %v10015_v25 }
 0x5c2   : > { %v5101_v54 = vshrl.u32 %v5083_v13, %v5099_v30  ;;  %v5104_v14 = vadd.s32 127, %v5103_v15  ;;  %v10019_v19 = vmul.u32.u64.low %v9985_v44, %v5173_v52  ;;  %v10020_v23 = vmul.u32.u64.high %v9985_v44, %v5173_v52, %v10019_v19 }
 0x5c3   : > { %v4992_v8 = vclz %v6739_v3  ;;  %v4914_v26 = vsub.f32 %v9974_v31, %v10004_v48  ;;  %v4904_v17 = vmul.f32 %v9988_v10, %v9988_v10  ;;  %v4901_v28 = vmul.f32 %v9871_v1, %v9871_v1 }
 0x5c4   : > { %v5102_v29 = vor.u32 %v5101_v54, %v5100_v42  ;;  %v5105_v5 = vshll.u32 %v5104_v14, 23  ;;  %v5169_v13 = vsel %vm5163_vm8, %v5166_v11, %v5168_v40  ;;  %vm5187_vm13 = vc.u32 %v10016_v60, %v10019_v19 }
 0x5c5   : > { %v6740_v21 = vadd.s32 4294967294, %v4992_v8  ;;  %v4980_v7 = vadd.s32 %v9958_v16, %v9964_v62  ;;  %v5188_v27 = vadd.s32 1, %v10020_v23  ;;  %v4907_v47 = vadd.f32 %v4904_v17, %v4901_v28 }
 0x5c6   : > { %v5106_v61 = vor.u32 4788187, %v5105_v5  ;;  %v5109_v9 = vcvt.s32.f32 %v5102_v29  ;;  %v5185_v0 = vmul.u32 %v9985_v44, %v5169_v13  ;;  %v4898_v1 = vmul.f32 -30.0, %v9988_v10 }
 0x5c7   : > { %vm6741_vm5 = vcmp.lt.s32.totalorder %v6740_v21, 0  ;;  %v5189_v22 = vsel %vm5187_vm13, %v5188_v27, %v10020_v23  ;;  %v4910_v18 = vmul.f32 100.0, %v4907_v47  ;;  %v5113_v6 = vsub.s32 4, %v9968_v39 }
 0x5c8   : > { %v5107_v55 = vand.u32 2147483647, %v5106_v61  ;;  %v4995_v43 = vsel %vm6741_vm5, 0, %v6740_v21  ;;  %v5190_v11 = vadd.s32 %v5189_v22, %v5185_v0  ;;  %vm5029_vm15 = vcmp.lt.s32.totalorder %v9874_v33, 0 }
 0x5c9   : > { %v4996_v58 = vsub.s32 32, %v4995_v43  ;;  %v5000_v12 = vsub.s32 4294967266, %v4995_v43  ;;  %v4913_v62 = vsub.f32 %v4898_v1, %v4910_v18  ;;  %v4997_v20 = vshll.u32 %v4988_v46, %v4995_v43 }
 0x5ca   : > { %v5110_v16 = vmul.f32 %v5109_v9, %v5107_v55  ;;  %v5191_v52 = vadd.s32 536870912, %v5190_v11  ;;  %v5114_v15 = vsel %vm5029_vm15, %v5113_v6, %v9968_v39  ;;  %vm5028_vm7 = vcmp.le.f32.partialorder %v5027_v38, 0.7853982 }
 0x5cb   : > { %v4998_v4 = vshrl.u32 %v4980_v7, %v4996_v58  ;;  %v5001_v24 = vadd.s32 127, %v5000_v12  ;;  %v5116_v3 = vsel %vm5028_vm7, 0, %v5114_v15  ;;  %v4917_v23 = vmul.f32 1.442695, %v4913_v62 }
 0x5cc   : > { %v5111_v44 = vxor.u32 2147483648, %v5110_v16  ;;  %v10040_v30 = vshrl.u32 %v5191_v52, 30  ;;  %v5010_v39 = vsub.s32 4, %v10002_v59  ;;  %v4915_v38 = vmul.f32 1.442695, %v4912_v36 }
 0x5cd   : > { %v4999_v10 = vor.u32 %v4998_v4, %v4997_v20  ;;  %v5002_v37 = vshll.u32 %v5001_v24, 23  ;;  %v5436_v28 = vadd.s32 3, %v5116_v3  ;;  %vm4926_vm0 = vcmp.lt.s32.totalorder %v9876_v2, 0 }
 0x5ce   : > { %v5112_v40 = vsel %vm5029_vm15, %v5111_v44, %v5110_v16  ;;  %v5193_v46 = vshll.u32 %v10040_v30, 30  ;;  %v5120_v13 = vand.u32 3, %v5116_v3  ;;  %vm4925_vm9 = vcmp.le.f32.partialorder %v4924_v32, 0.7853982 }
 0x5cf   : > { %v5115_v57 = vsel %vm5028_vm7, %v9874_v33, %v5112_v40  ;;  %v5003_v42 = vor.u32 4788187, %v5002_v37  ;;  %v5006_v54 = vcvt.s32.f32 %v4999_v10  ;;  %v5011_v7 = vsel %vm4926_vm0, %v5010_v39, %v10002_v59 }
 0x5d0   : > { %7217 = vcosq.f32 %v5115_v57  ;;  %v5194_v14 = vsub.s32 %v5190_v11, %v5193_v46  ;;  %v5437_v47 = vand.u32 3, %v5436_v28  ;;  %vm5119_vm2 = vweird.f32 %v9874_v33 }
 0x5d1   : > { %7219 = vsinq.f32 %v5115_v57  ;;  %v5004_v25 = vand.u32 2147483647, %v5003_v42  ;;  %v5186_v36 = vadd.s32 %v10019_v19, %v10016_v60  ;;  %v5013_v9 = vsel %vm4925_vm9, 0, %v5011_v7 }
 0x5d2   : > { %v5196_v17 = vsub.s32 0, %v5194_v14  ;;  %7221 = vpow2.f32 %v4917_v23  ;;  %vm5121_vm4 = vcmp.lt.s32.totalorder %v5120_v13, 2  ;;  %vm5122_vm12 = vcmp.eq.s32.totalorder %v5120_v13, 0 }
 0x5d3   : > { %v5007_v8 = vmul.f32 %v5006_v54, %v5004_v25  ;;  %7223 = vpow2.f32 %v4915_v38  ;;  %vm5125_vm14 = vcmp.eq.s32.totalorder %v5120_v13, 2  ;;  %vm5438_vm1 = vcmp.lt.s32.totalorder %v5437_v47, 2 }
 0x5d4   : > { %v6747_v5 = vmin.u32 %v5196_v17, %v5194_v14  ;;  %vm5439_vm8 = vcmp.eq.s32.totalorder %v5437_v47, 0  ;;  %vm5442_vm3 = vcmp.eq.s32.totalorder %v5437_v47, 2  ;;  %v5017_v20 = vand.u32 3, %v5013_v9 }
 0x5d5   : > { %v5008_v29 = vxor.u32 2147483648, %v5007_v8  ;;  %vm5016_vm5 = vweird.f32 %v9876_v2  ;;  %vm5132_vm15 = vcmp.lt.s32.totalorder %v9889_v35, 0  ;;  %vm5131_vm7 = vcmp.le.f32.partialorder %v5130_v34, 0.7853982 }
 0x5d6   : > { %v5198_v61 = vclz %v6747_v5  ;;  %vm5022_vm11 = vcmp.eq.s32.totalorder %v5017_v20, 2  ;;  %vm5019_vm6 = vcmp.eq.s32.totalorder %v5017_v20, 0  ;;  %vm5018_vm13 = vcmp.lt.s32.totalorder %v5017_v20, 2  ;;  %v6765_v20 = vld [vmem:[%s10368_s3 + $0xa8] sm:$0xff] }
 0x5d7   : > { %v5009_v21 = vsel %vm4926_vm0, %v5008_v29, %v5007_v8  ;;  %v5216_v8 = vsub.s32 4, %v10040_v30 }
 0x5d8   : > { %v5012_v27 = vsel %vm4925_vm9, %v9876_v2, %v5009_v21  ;;  %v6748_v53 = vadd.s32 4294967294, %v5198_v61  ;;  %v5332_v61 = vadd.s32 3, %v5013_v9  ;;  %v6763_v2 = vld [vmem:[%s10368_s3 + $0x98] sm:$0xff] }
 0x5d9   : > { %7225 = vcosq.f32 %v5012_v27  ;;  %v5217_v5 = vsel %vm5132_vm15, %v5216_v8, %v10040_v30 }
 0x5da   : > { %v7218_v63 = vpop.eup %7217  ;;  %7227 = vsinq.f32 %v5012_v27  ;;  %vm6749_vm10 = vcmp.lt.s32.totalorder %v6748_v53, 0  ;;  %v5219_v7 = vsel %vm5131_vm7, 0, %v5217_v5  ;;  %v4919_v27 = vmul.f32 1.442695, %v4914_v26 }
 0x5db   : > { %v7220_v32 = vpop.eup %7219  ;;  %v5126_v59 = vxor.u32 2147483648, %v7218_v63  ;;  %v5201_v0 = vsel %vm6749_vm10, 0, %v6748_v53  ;;  %v5333_v47 = vand.u32 3, %v5332_v61  ;;  %v5540_v53 = vadd.s32 3, %v5219_v7 }
 0x5dc   : > { %v5123_v1 = vxor.u32 2147483648, %v7220_v32  ;;  %v5202_v55 = vsub.s32 32, %v5201_v0  ;;  %v5206_v43 = vsub.s32 4294967266, %v5201_v0  ;;  %v5203_v18 = vshll.u32 %v5194_v14, %v5201_v0  ;;  %v7222_v62 = vpop.eup %7221 }
 0x5dd   : > { %v5127_v22 = vsel %vm5125_vm14, %v5126_v59, %v7220_v32  ;;  %v5444_v11 = vsel %vm5442_vm3, %v5126_v59, %v7220_v32  ;;  %v10066_v15 = vpop.eup %7223  ;;  %vm5335_vm0 = vcmp.eq.s32.totalorder %v5333_v47, 0  ;;  %vm5338_vm9 = vcmp.eq.s32.totalorder %v5333_v47, 2 }
 0x5de   : > { %v5124_v58 = vsel %vm5122_vm12, %v7218_v63, %v5123_v1  ;;  %v5441_v12 = vsel %vm5439_vm8, %v7218_v63, %v5123_v1  ;;  %v5204_v60 = vshrl.u32 %v5186_v36, %v5202_v55  ;;  %v5207_v19 = vadd.s32 127, %v5206_v43 }
 0x5df   : > { %v5128_v6 = vsel %vm5121_vm4, %v5124_v58, %v5127_v22  ;;  %v5445_v16 = vsel %vm5438_vm1, %v5441_v12, %v5444_v11  ;;  %v5223_v34 = vand.u32 3, %v5219_v7  ;;  %v5541_v36 = vand.u32 3, %v5540_v53 }
 0x5e0   : > { %v5129_v4 = vsel %vm5119_vm2, nan, %v5128_v6  ;;  %v5446_v24 = vsel %vm5119_vm2, nan, %v5445_v16  ;;  %v5205_v52 = vor.u32 %v5204_v60, %v5203_v18  ;;  %v5208_v44 = vshll.u32 %v5207_v19, 23 }
 0x5e1   : > { %v5234_v10 = vmul.f32 %v7222_v62, %v5129_v4  ;;  %v10064_v37 = vmul.f32 %v7222_v62, %v5446_v24  ;;  %vm5334_vm2 = vcmp.lt.s32.totalorder %v5333_v47, 2  ;;  %vm5224_vm4 = vcmp.lt.s32.totalorder %v5223_v34, 2  ;;  %v6766_v4 = vld [vmem:[%s10368_s3 + $0xb0] sm:$0xff]  ;;  %v6767_v24 = vld [vmem:[%s10368_s3 + $0xb8] sm:$0xff] }
 0x5e2   : > { %v5209_v57 = vor.u32 4788187, %v5208_v44  ;;  %v5212_v25 = vcvt.s32.f32 %v5205_v52  ;;  %vm5228_vm10 = vcmp.eq.s32.totalorder %v5223_v34, 2  ;;  %vm5546_vm12 = vcmp.eq.s32.totalorder %v5541_v36, 2  ;;  %v5585_v44 = vpop.permute.xlu1 %5584 }
 0x5e3   : > { %v7226_v40 = vpop.eup %7225  ;;  %vm5225_vm14 = vcmp.eq.s32.totalorder %v5223_v34, 0  ;;  %vm5543_vm1 = vcmp.eq.s32.totalorder %v5541_v36, 0  ;;  %vm5542_vm8 = vcmp.lt.s32.totalorder %v5541_v36, 2  ;;  %vm5222_vm3 = vweird.f32 %v9889_v35 }
 0x5e4   : > { %v7228_v42 = vpop.eup %7227  ;;  %v5023_v46 = vxor.u32 2147483648, %v7226_v40  ;;  %v5210_v3 = vand.u32 2147483647, %v5209_v57  ;;  %v7326_v52 = vmov 0.0|0.0  }
 0x5e5   : > { %v5020_v54 = vxor.u32 2147483648, %v7228_v42  ;;  %6945 = vmatprep.subr.bf16.mxu0 %v7326_v52 }
 0x5e6   : > { %v5024_v14 = vsel %vm5022_vm11, %v5023_v46, %v7228_v42  ;;  %v5213_v23 = vmul.f32 %v5212_v25, %v5210_v3  ;;  %v5340_v63 = vsel %vm5338_vm9, %v5023_v46, %v7228_v42  ;;  %vm10495_vm11 = vcmask 392192   ;;  %v5595_v3 = vpop.permute.xlu1 %5594 }
 0x5e7   : > { %v5021_v33 = vsel %vm5019_vm6, %v7226_v40, %v5020_v54  ;;  %v5337_v30 = vsel %vm5335_vm0, %v7226_v40, %v5020_v54  ;;  %vm10496_vm6 = vmmov %vm10495_vm11 }
 0x5e8   : > { %v5025_v17 = vsel %vm5018_vm13, %v5021_v33, %v5024_v14  ;;  %v5214_v39 = vxor.u32 2147483648, %v5213_v23  ;;  %v5341_v0 = vsel %vm5334_vm2, %v5337_v30, %v5340_v63  ;;  %vm10497_vm13 = vmmov %vm10496_vm6 }
 0x5e9   : > { %v5026_v38 = vsel %vm5016_vm5, nan, %v5025_v17  ;;  %v5342_v55 = vsel %vm5016_vm5, nan, %v5341_v0  ;;  %vm10498_vm5 = vmmov %vm10496_vm6 }
 0x5ea   : > { %v5233_v28 = vmul.f32 %v10066_v15, %v5026_v38  ;;  %v5215_v29 = vsel %vm5132_vm15, %v5214_v39, %v5213_v23  ;;  %v5551_v19 = vmul.f32 %v10066_v15, %v5342_v55  ;;  %vm10499_vm15 = vmmov %vm10498_vm5 }
 0x5eb   : > { %v5218_v13 = vsel %vm5131_vm7, %v9889_v35, %v5215_v29  ;;  %v6764_v35 = vld [vmem:[%s10368_s3 + $0xa0] sm:$0xff]  ;;  %vm7327_vm7 = vmmov 0  }
 0x5ec   : > { %v6933_v21 = vpack.c.bf16 %v5234_v10, %v5233_v28  ;;  %7229 = vcosq.f32 %v5218_v13  ;;  %v10500_v10 = vmov 0.0  }
 0x5ed   : > { %7231 = vsinq.f32 %v5218_v13  ;;  %6894 = vmatprep.mubr.msk.f32.mxu0 %vm7327_vm7, %v10500_v10 }
 0x5ee   : > { %6934 = vmatprep.subr.bf16.mxu1 %v6933_v21  ;;  %7233 = vpow2.f32 %v4919_v27 }
 0x5ef   : > { %6936 = vmatpush3.bf16.msra.mxu1 %v6933_v21 }
 0x5f6   : > { %v7230_v32 = vpop.eup %7229 }
 0x5f7   : > { %v7232_v9 = vpop.eup %7231  ;;  %v5229_v59 = vxor.u32 2147483648, %v7230_v32 }
 0x5f8   : > { %v5226_v1 = vxor.u32 2147483648, %v7232_v9  ;;  %v7234_v58 = vpop.eup %7233 }
 0x5f9   : > { %v5230_v31 = vsel %vm5228_vm10, %v5229_v59, %v7232_v9  ;;  %v5548_v48 = vsel %vm5546_vm12, %v5229_v59, %v7232_v9 }
 0x5fa   : > { %v5227_v26 = vsel %vm5225_vm14, %v7230_v32, %v5226_v1  ;;  %v5545_v43 = vsel %vm5543_vm1, %v7230_v32, %v5226_v1 }
 0x5fb   : > { %v5231_v22 = vsel %vm5224_vm4, %v5227_v26, %v5230_v31  ;;  %v5549_v18 = vsel %vm5542_vm8, %v5545_v43, %v5548_v48  ;;  %v5605_v48 = vpop.permute.xlu1 %5604 }
 0x5fc   : > { %v5232_v12 = vsel %vm5222_vm3, nan, %v5231_v22  ;;  %v5550_v11 = vsel %vm5222_vm3, nan, %v5549_v18 }
 0x5fd   : > { %v5235_v60 = vmul.f32 %v7234_v58, %v5232_v12  ;;  %v5553_v6 = vmul.f32 %v7234_v58, %v5550_v11 }
 0x5ff   : > { %v6937_v16 = vpack.c.bf16 %v5551_v19, %v5235_v60  ;;  %v6941_v62 = vpack.c.bf16 %v5553_v6, %v10064_v37  ;;  %v5580_v37 = vpop.permute.xlu0 %5579 }
 0x601   : > { %6938 = vmatprep.subr.bf16.mxu1 %v6937_v16 }
 0x602   : > { %6940 = vmatpush3.bf16.msra.mxu1 %v6937_v16 }
 0x603   : > { %6942 = vmatprep.subr.bf16.mxu1 %v6941_v62  ;;  %v5590_v14 = vpop.permute.xlu0 %5589 }
 0x606   : > { %6944 = vmatpush3.bf16.msra.mxu1 %v6941_v62 }
 0x609   : > { %6874 = vmatmul.mubr.msk.f32.vlgmr.msra.gmra.mrb[12].mxu1 %vm10495_vm11, %v6763_v2 }
 0x60a   : > { %6876 = vmatprep.mubr.msk.f32.mxu1 %vm10496_vm6, %v6764_v35 }
 0x60d   : > { %6877 = vmatmul.mubr.msk.f32.gmra.mrb[14].mxu1 %vm10497_vm13, %v6765_v20 }
 0x60e   : > { %6879 = vmatprep.mubr.msk.f32.mxu1 %vm10498_vm5, %v6766_v4 }
 0x611   : > { %6880 = vmatmul.mubr.msk.f32.gmra.mrb[16].mxu1 %vm10499_vm15, %v6767_v24 }
 0x6dc   : > { %v6875_v15 = vpop.f32.mrb[12].mxu1 }
 0x6dd   : > { %v10108_v40 = vadd.f32 %v6875_v15, %v5585_v44  ;;  %v5691_v57 = vpop.f32.mrb[13].mxu1 }
 0x6de   : > { %v5692_v42 = vadd.f32 %v5691_v57, %v5580_v37 }
 0x6df   : > { %v10111_v46 = vmul.f32 30.0, %v10108_v40 }
 0x6e0   : > { %v10113_v25 = vmul.f32 30.0, %v5692_v42  ;;  %v6878_v54 = vpop.f32.mrb[14].mxu1  ;;  %v5723_v13 = vmul.f32 %v5692_v42, %v5692_v42 }
 0x6e1   : > { %v5850_v23 = vand.u32 2147483647, %v10111_v46  ;;  %v5853_v33 = vand.u32 2139095040, %v10111_v46  ;;  %v5707_v8 = vadd.f32 %v6878_v54, %v5595_v3  ;;  %v5701_v17 = vpop.f32.mrb[15].mxu1 }
 0x6e2   : > { %v5747_v39 = vand.u32 2147483647, %v10113_v25  ;;  %v5750_v38 = vand.u32 2139095040, %v10113_v25  ;;  %v10119_v28 = vadd.f32 %v5701_v17, %v5590_v14 }
 0x6e3   : > { %v5854_v29 = vshrl.u32 %v5853_v33, 23  ;;  %v5857_v5 = vand.u32 8388607, %v5850_v23  ;;  %v5726_v7 = vmul.f32 %v5707_v8, %v5707_v8  ;;  %v10130_v9 = vmul.f32 -30.0, %v5707_v8 }
 0x6e4   : > { %v5751_v21 = vshrl.u32 %v5750_v38, 23  ;;  %v5754_v61 = vand.u32 8388607, %v5747_v39  ;;  %v6881_v27 = vpop.f32.mrb[16].mxu1  ;;  %v10126_v53 = vmul.f32 30.0, %v10119_v28 }
 0x6e5   : > { %v6784_v47 = vadd.s32 4294967169, %v5854_v29  ;;  %v10128_v34 = vpop.f32.mrb[17].mxu1  ;;  %v5729_v63 = vadd.f32 %v5726_v7, %v5723_v13  ;;  %v5858_v36 = vor.u32 8388608, %v5857_v5  ;;  %v10137_v58 = vadd.f32 %v6881_v27, %v5605_v48 }
 0x6e6   : > { %v6780_v30 = vadd.s32 4294967169, %v5751_v21  ;;  %v5755_v59 = vor.u32 8388608, %v5754_v61  ;;  %v5956_v31 = vand.u32 2139095040, %v10126_v53  ;;  %v5953_v60 = vand.u32 2147483647, %v10126_v53 }
 0x6e7   : > { %v5860_v32 = vadd.s32 1, %v6784_v47  ;;  %v10132_v1 = vmul.f32 100.0, %v5729_v63  ;;  %v10139_v12 = vshll.u32 %v5858_v36, 8 }
 0x6e8   : > { %v5757_v0 = vadd.s32 1, %v6780_v30  ;;  %v10141_v11 = vshll.u32 %v5755_v59, 8  ;;  %v5957_v19 = vshrl.u32 %v5956_v31, 23 }
 0x6e9   : > { %vm5861_vm0 = vcmp.gt.s32.totalorder %v5860_v32, 0  ;;  %v5735_v55 = vsub.f32 %v10130_v9, %v10132_v1 }
 0x6ea   : > { %v5862_v26 = vsel %vm5861_vm0, %v5860_v32, 0  ;;  %vm5758_vm9 = vcmp.gt.s32.totalorder %v5757_v0, 0 }
 0x6eb   : > { %v5863_v43 = vshrl.u32 %v5862_v26, 5  ;;  %v5864_v22 = vand.u32 31, %v5862_v26  ;;  %v5759_v18 = vsel %vm5758_vm9, %v5757_v0, 0 }
 0x6ec   : > { %v10145_v62 = vshrl.u32 %v5759_v18, 5  ;;  %v5761_v2 = vand.u32 31, %v5759_v18 }
 0x6ed   : > { %v5865_v6 = vsub.s32 32, %v5864_v22  ;;  %v5867_v16 = vshll.u32 %v10427_v51, %v5864_v22  ;;  %v5870_v35 = vshll.u32 %v10429_v41, %v5864_v22  ;;  %v5873_v20 = vshll.u32 %v10430_v45, %v5864_v22 }
 0x6ee   : > { %v5876_v4 = vshll.u32 %v10428_v56, %v5864_v22  ;;  %v5879_v24 = vshll.u32 %v10465_v49, %v5864_v22  ;;  %vm5882_vm2 = vcmp.lt.s32.totalorder %v5863_v43, 1  ;;  %vm5883_vm4 = vcmp.lt.s32.totalorder %v5863_v43, 2 }
 0x6ef   : > { %v5868_v44 = vshrl.u32 %v10429_v41, %v5865_v6  ;;  %v5871_v10 = vshrl.u32 %v10430_v45, %v5865_v6  ;;  %v5874_v37 = vshrl.u32 %v10428_v56, %v5865_v6  ;;  %v5866_v15 = vshrl.u32 %v10427_v51, %v5865_v6 }
 0x6f0   : > { %v5877_v57 = vshrl.u32 %v10465_v49, %v5865_v6  ;;  %v5880_v42 = vshrl.u32 %v10466_v50, %v5865_v6  ;;  %v5762_v33 = vsub.s32 32, %v5761_v2  ;;  %vm5884_vm10 = vcmp.lt.s32.totalorder %v5863_v43, 3 }
 0x6f1   : > { %v5869_v3 = vor.u32 %v5868_v44, %v5867_v16  ;;  %v5872_v54 = vor.u32 %v5871_v10, %v5870_v35  ;;  %v5875_v14 = vor.u32 %v5874_v37, %v5873_v20  ;;  %vm5885_vm12 = vcmp.lt.s32.totalorder %v5863_v43, 4 }
 0x6f2   : > { %v5878_v8 = vor.u32 %v5877_v57, %v5876_v4  ;;  %v5881_v17 = vor.u32 %v5880_v42, %v5879_v24  ;;  %v5764_v27 = vshll.u32 %v10427_v51, %v5761_v2  ;;  %v5765_v63 = vshrl.u32 %v10429_v41, %v5762_v33 }
 0x6f3   : > { %v5886_v38 = vsel %vm5882_vm2, %v5866_v15, %v5869_v3  ;;  %v5887_v29 = vsel %vm5885_vm12, %v5875_v14, 2102212464  ;;  %v5890_v5 = vsel %vm5882_vm2, %v5869_v3, %v5872_v54  ;;  %v5894_v13 = vsel %vm5882_vm2, %v5872_v54, %v5875_v14 }
 0x6f4   : > { %v5888_v21 = vsel %vm5884_vm10, %v5872_v54, %v5887_v29  ;;  %v5891_v61 = vsel %vm5885_vm12, %v5878_v8, 920167782  ;;  %v5895_v7 = vsel %vm5885_vm12, %v5881_v17, 1326507024  ;;  %v5767_v36 = vshll.u32 %v10429_v41, %v5761_v2 }
 0x6f5   : > { %v5892_v47 = vsel %vm5884_vm10, %v5875_v14, %v5891_v61  ;;  %v5896_v30 = vsel %vm5884_vm10, %v5878_v8, %v5895_v7  ;;  %v5889_v32 = vsel %vm5883_vm4, %v5886_v38, %v5888_v21  ;;  %v5768_v31 = vshrl.u32 %v10430_v45, %v5762_v33 }
 0x6f6   : > { %v5893_v59 = vsel %vm5883_vm4, %v5890_v5, %v5892_v47  ;;  %v5897_v0 = vsel %vm5883_vm4, %v5894_v13, %v5896_v30  ;;  %v5766_v6 = vor.u32 %v5765_v63, %v5764_v27  ;;  %v5770_v35 = vshll.u32 %v10430_v45, %v5761_v2 }
 0x6f7   : > { %v10168_v48 = vmul.u32.u64.low %v10139_v12, %v5897_v0  ;;  %v10169_v26 = vmul.u32.u64.high %v10139_v12, %v5897_v0, %v10168_v48  ;;  %v10172_v22 = vmul.u32.u64.low %v10139_v12, %v5893_v59  ;;  %v10173_v18 = vmul.u32.u64.high %v10139_v12, %v5893_v59, %v10172_v22 }
 0x6f8   : > { %v5769_v16 = vor.u32 %v5768_v31, %v5767_v36  ;;  %v5771_v20 = vshrl.u32 %v10428_v56, %v5762_v33  ;;  %v5773_v4 = vshll.u32 %v10428_v56, %v5761_v2  ;;  %v5774_v43 = vshrl.u32 %v10465_v49, %v5762_v33 }
 0x6f9   : > { %v5777_v24 = vshrl.u32 %v10466_v50, %v5762_v33  ;;  %v6788_v44 = vadd.s32 4294967169, %v5957_v19  ;;  %v5905_v10 = vmul.u32 %v10139_v12, %v5889_v32  ;;  %v5763_v37 = vshrl.u32 %v10427_v51, %v5762_v33 }
 0x6fa   : > { %v5772_v15 = vor.u32 %v5771_v20, %v5770_v35  ;;  %v5776_v57 = vshll.u32 %v10465_v49, %v5761_v2  ;;  %vm5907_vm14 = vc.u32 %v10169_v26, %v10172_v22  ;;  %v5908_v42 = vadd.s32 1, %v10173_v18 }
 0x6fb   : > { %v5775_v3 = vor.u32 %v5774_v43, %v5773_v4  ;;  %vm5779_vm1 = vcmp.lt.s32.totalorder %v10145_v62, 1  ;;  %vm5781_vm8 = vcmp.lt.s32.totalorder %v10145_v62, 3  ;;  %vm5782_vm3 = vcmp.lt.s32.totalorder %v10145_v62, 4 }
 0x6fc   : > { %v5778_v54 = vor.u32 %v5777_v24, %v5776_v57  ;;  %v5787_v19 = vsel %vm5779_vm1, %v5766_v6, %v5769_v16  ;;  %v5909_v12 = vsel %vm5907_vm14, %v5908_v42, %v10173_v18  ;;  %v5784_v14 = vsel %vm5782_vm3, %v5772_v15, 2102212464 }
 0x6fd   : > { %v5788_v33 = vsel %vm5782_vm3, %v5775_v3, 920167782  ;;  %v5791_v8 = vsel %vm5779_vm1, %v5769_v16, %v5772_v15  ;;  %v5910_v17 = vadd.s32 %v5909_v12, %v5905_v10  ;;  %vm5780_vm11 = vcmp.lt.s32.totalorder %v10145_v62, 2 }
 0x6fe   : > { %v5789_v2 = vsel %vm5781_vm8, %v5772_v15, %v5788_v33  ;;  %v5792_v38 = vsel %vm5782_vm3, %v5778_v54, 1326507024  ;;  %v5783_v29 = vsel %vm5779_vm1, %v5763_v37, %v5766_v6  ;;  %v5785_v5 = vsel %vm5781_vm8, %v5769_v16, %v5784_v14 }
 0x6ff   : > { %v5790_v13 = vsel %vm5780_vm11, %v5787_v19, %v5789_v2  ;;  %v5793_v21 = vsel %vm5781_vm8, %v5775_v3, %v5792_v38  ;;  %v5911_v61 = vadd.s32 536870912, %v5910_v17  ;;  %v5963_v36 = vadd.s32 1, %v6788_v44 }
 0x700   : > { %v5794_v7 = vsel %vm5780_vm11, %v5791_v8, %v5793_v21  ;;  %v10191_v27 = vmul.u32.u64.low %v10141_v11, %v5790_v13  ;;  %v10192_v47 = vmul.u32.u64.high %v10141_v11, %v5790_v13, %v10191_v27  ;;  %v5786_v62 = vsel %vm5780_vm11, %v5783_v29, %v5785_v5 }
 0x701   : > { %v10196_v30 = vmul.u32.u64.low %v10141_v11, %v5794_v7  ;;  %v10197_v63 = vmul.u32.u64.high %v10141_v11, %v5794_v7, %v10196_v30  ;;  %v10199_v32 = vshrl.u32 %v5911_v61, 30  ;;  %v5728_v59 = vmul.f32 %v10137_v58, %v10137_v58  ;;  %v5600_v7 = vpop.permute.xlu0 %5599 }
 0x702   : > { %v5960_v0 = vand.u32 8388607, %v5953_v60  ;;  %vm5964_vm6 = vcmp.gt.s32.totalorder %v5963_v36, 0  ;;  %v5805_v48 = vadd.s32 1, %v10192_v47  ;;  %v5725_v18 = vmul.f32 %v10119_v28, %v10119_v28 }
 0x703   : > { %v5913_v31 = vshll.u32 %v10199_v32, 30  ;;  %v5965_v6 = vsel %vm5964_vm6, %v5963_v36, 0  ;;  %v5802_v16 = vmul.u32 %v10141_v11, %v5786_v62  ;;  %vm5804_vm13 = vc.u32 %v10197_v63, %v10191_v27 }
 0x704   : > { %v5967_v35 = vand.u32 31, %v5965_v6  ;;  %v5806_v4 = vsel %vm5804_vm13, %v5805_v48, %v10192_v47  ;;  %v10216_v43 = vmul.f32 -30.0, %v10137_v58  ;;  %v5731_v24 = vadd.f32 %v5728_v59, %v5725_v18 }
 0x705   : > { %v10212_v20 = vsub.s32 %v5910_v17, %v5913_v31  ;;  %v5906_v44 = vadd.s32 %v10172_v22, %v10169_v26  ;;  %v5807_v10 = vadd.s32 %v5806_v4, %v5802_v16  ;;  %v5961_v37 = vor.u32 8388608, %v5960_v0 }
 0x706   : > { %v5968_v28 = vsub.s32 32, %v5967_v35  ;;  %v5966_v11 = vshrl.u32 %v5965_v6, 5  ;;  %v5970_v57 = vshll.u32 %v10427_v51, %v5967_v35  ;;  %v5973_v42 = vshll.u32 %v10429_v41, %v5967_v35 }
 0x707   : > { %v5916_v15 = vsub.s32 0, %v10212_v20  ;;  %v5808_v3 = vadd.s32 536870912, %v5807_v10  ;;  %v5976_v58 = vshll.u32 %v10430_v45, %v5967_v35  ;;  %v5979_v22 = vshll.u32 %v10428_v56, %v5967_v35 }
 0x708   : > { %v5971_v54 = vshrl.u32 %v10429_v41, %v5968_v28  ;;  %v5974_v19 = vshrl.u32 %v10430_v45, %v5968_v28  ;;  %v5977_v26 = vshrl.u32 %v10428_v56, %v5968_v28  ;;  %v5980_v14 = vshrl.u32 %v10465_v49, %v5968_v28 }
 0x709   : > { %v6785_v12 = vmin.u32 %v5916_v15, %v10212_v20  ;;  %v10229_v33 = vshrl.u32 %v5808_v3, 30  ;;  %v5983_v2 = vshrl.u32 %v10466_v50, %v5968_v28  ;;  %v5982_v5 = vshll.u32 %v10465_v49, %v5967_v35 }
 0x70a   : > { %v5972_v8 = vor.u32 %v5971_v54, %v5970_v57  ;;  %v5975_v17 = vor.u32 %v5974_v19, %v5973_v42  ;;  %v5978_v41 = vor.u32 %v5977_v26, %v5976_v58  ;;  %v5981_v29 = vor.u32 %v5980_v14, %v5979_v22 }
 0x70b   : > { %v5918_v38 = vclz %v6785_v12  ;;  %v5810_v45 = vshll.u32 %v10229_v33, 30  ;;  %v5969_v13 = vshrl.u32 %v10427_v51, %v5968_v28  ;;  %vm5985_vm5 = vcmp.lt.s32.totalorder %v5966_v11, 1 }
 0x70c   : > { %v6001_v21 = vshll.u32 %v5961_v37, 8  ;;  %v5984_v61 = vor.u32 %v5983_v2, %v5982_v5  ;;  %vm5987_vm15 = vcmp.lt.s32.totalorder %v5966_v11, 3  ;;  %vm5988_vm7 = vcmp.lt.s32.totalorder %v5966_v11, 4 }
 0x70d   : > { %v6786_v56 = vadd.s32 4294967294, %v5918_v38  ;;  %v5811_v47 = vsub.s32 %v5807_v10, %v5810_v45  ;;  %v5989_v30 = vsel %vm5985_vm5, %v5969_v13, %v5972_v8  ;;  %v5990_v50 = vsel %vm5988_vm7, %v5978_v41, 2102212464 }
 0x70e   : > { %v5993_v36 = vsel %vm5985_vm5, %v5972_v8, %v5975_v17  ;;  %v5991_v49 = vsel %vm5987_vm15, %v5975_v17, %v5990_v50  ;;  %v5994_v62 = vsel %vm5988_vm7, %v5981_v29, 920167782  ;;  %v5712_v51 = vadd.f32 %v10128_v34, %v5600_v7 }
 0x70f   : > { %vm6787_vm0 = vcmp.lt.s32.totalorder %v6786_v56, 0  ;;  %v5813_v0 = vsub.s32 0, %v5811_v47  ;;  %vm5986_vm9 = vcmp.lt.s32.totalorder %v5966_v11, 2  ;;  %v5995_v31 = vsel %vm5987_vm15, %v5978_v41, %v5994_v62 }
 0x710   : > { %v5921_v59 = vsel %vm6787_vm0, 0, %v6786_v56  ;;  %v5992_v6 = vsel %vm5986_vm9, %v5989_v30, %v5991_v49  ;;  %v5996_v16 = vsel %vm5986_vm9, %v5993_v36, %v5995_v31  ;;  %v5997_v10 = vsel %vm5985_vm5, %v5975_v17, %v5978_v41 }
 0x711   : > { %v5922_v48 = vsub.s32 32, %v5921_v59  ;;  %v5926_v18 = vsub.s32 4294967266, %v5921_v59  ;;  %v5923_v35 = vshll.u32 %v10212_v20, %v5921_v59  ;;  %v6781_v4 = vmin.u32 %v5813_v0, %v5811_v47 }
 0x712   : > { %v5998_v37 = vsel %vm5988_vm7, %v5984_v61, 1326507024  ;;  %v10246_v57 = vmul.f32 100.0, %v5731_v24  ;;  %v10248_v54 = vmul.u32.u64.low %v6001_v21, %v5996_v16  ;;  %v10249_v19 = vmul.u32.u64.high %v6001_v21, %v5996_v16, %v10248_v54 }
 0x713   : > { %v5924_v28 = vshrl.u32 %v5906_v44, %v5922_v48  ;;  %v5927_v15 = vadd.s32 127, %v5926_v18  ;;  %v5999_v34 = vsel %vm5987_vm15, %v5981_v29, %v5998_v37  ;;  %v5815_v42 = vclz %v6781_v4 }
 0x714   : > { %v6000_v3 = vsel %vm5986_vm9, %v5997_v10, %v5999_v34  ;;  %v5724_v22 = vmul.f32 %v10108_v40, %v10108_v40  ;;  %v5737_v11 = vsub.f32 %v10216_v43, %v10246_v57  ;;  %v5727_v24 = vmul.f32 %v5712_v51, %v5712_v51 }
 0x715   : > { %v5925_v58 = vor.u32 %v5924_v28, %v5923_v35  ;;  %v5928_v12 = vshll.u32 %v5927_v15, 23  ;;  %v10252_v20 = vmul.u32.u64.low %v6001_v21, %v6000_v3  ;;  %v10253_v26 = vmul.u32.u64.high %v6001_v21, %v6000_v3, %v10252_v20 }
 0x716   : > { %v6782_v44 = vadd.s32 4294967294, %v5815_v42  ;;  %v5936_v8 = vsub.s32 4, %v10199_v32  ;;  %v6008_v17 = vmul.u32 %v6001_v21, %v5992_v6  ;;  %v6011_v2 = vadd.s32 1, %v10249_v19 }
 0x717   : > { %v5929_v14 = vor.u32 4788187, %v5928_v12  ;;  %v5730_v38 = vadd.f32 %v5727_v24, %v5724_v22  ;;  %v5932_v29 = vcvt.s32.f32 %v5925_v58  ;;  %vm6010_vm4 = vc.u32 %v10253_v26, %v10248_v54 }
 0x718   : > { %vm6783_vm2 = vcmp.lt.s32.totalorder %v6782_v44, 0  ;;  %v5803_v40 = vadd.s32 %v10191_v27, %v10197_v63  ;;  %v6012_v56 = vsel %vm6010_vm4, %v6011_v2, %v10249_v19  ;;  %v5721_v30 = vmul.f32 -30.0, %v5712_v51 }
 0x719   : > { %v5930_v41 = vand.u32 2147483647, %v5929_v14  ;;  %v5818_v5 = vsel %vm6783_vm2, 0, %v6782_v44  ;;  %v6013_v7 = vadd.s32 %v6012_v56, %v6008_v17  ;;  %v5733_v21 = vmul.f32 100.0, %v5730_v38 }
 0x71a   : > { %v5819_v45 = vsub.s32 32, %v5818_v5  ;;  %v5823_v13 = vsub.s32 4294967266, %v5818_v5  ;;  %v5820_v50 = vshll.u32 %v5811_v47, %v5818_v5  ;;  %vm5852_vm10 = vcmp.lt.s32.totalorder %v10111_v46, 0 }
 0x71b   : > { %v5933_v61 = vmul.f32 %v5932_v29, %v5930_v41  ;;  %v6014_v59 = vadd.s32 536870912, %v6013_v7  ;;  %v5736_v0 = vsub.f32 %v5721_v30, %v5733_v21  ;;  %vm5851_vm12 = vcmp.le.f32.partialorder %v5850_v23, 0.7853982 }
 0x71c   : > { %v5821_v36 = vshrl.u32 %v5803_v40, %v5819_v45  ;;  %v5824_v49 = vadd.s32 127, %v5823_v13  ;;  %v5937_v63 = vsel %vm5852_vm10, %v5936_v8, %v10199_v32  ;;  %v5738_v23 = vmul.f32 1.442695, %v5735_v55 }
 0x71d   : > { %v5934_v62 = vxor.u32 2147483648, %v5933_v61  ;;  %v10270_v18 = vshrl.u32 %v6014_v59, 30  ;;  %v5939_v16 = vsel %vm5851_vm12, 0, %v5937_v63  ;;  %v5740_v37 = vmul.f32 1.442695, %v5736_v0 }
 0x71e   : > { %v5822_v31 = vor.u32 %v5821_v36, %v5820_v50  ;;  %v5825_v48 = vshll.u32 %v5824_v49, 23  ;;  %v5833_v32 = vsub.s32 4, %v10229_v33  ;;  %v6259_v34 = vadd.s32 3, %v5939_v16 }
 0x71f   : > { %v5935_v27 = vsel %vm5852_vm10, %v5934_v62, %v5933_v61  ;;  %v6016_v6 = vshll.u32 %v10270_v18, 30  ;;  %vm5749_vm14 = vcmp.lt.s32.totalorder %v10113_v25, 0  ;;  %vm5748_vm1 = vcmp.le.f32.partialorder %v5747_v39, 0.7853982 }
 0x720   : > { %v5938_v51 = vsel %vm5851_vm12, %v10111_v46, %v5935_v27  ;;  %v5826_v47 = vor.u32 4788187, %v5825_v48  ;;  %v5829_v4 = vcvt.s32.f32 %v5822_v31  ;;  %v5943_v58 = vand.u32 3, %v5939_v16 }
 0x721   : > { %7235 = vcosq.f32 %v5938_v51  ;;  %v6017_v10 = vsub.s32 %v6013_v7, %v6016_v6  ;;  %v5834_v12 = vsel %vm5749_vm14, %v5833_v32, %v10229_v33  ;;  %v6260_v55 = vand.u32 3, %v6259_v34 }
 0x722   : > { %7237 = vsinq.f32 %v5938_v51  ;;  %v5827_v35 = vand.u32 2147483647, %v5826_v47  ;;  %vm5942_vm8 = vweird.f32 %v10111_v46  ;;  %v5836_v24 = vsel %vm5748_vm1, 0, %v5834_v12 }
 0x723   : > { %v6019_v15 = vsub.s32 0, %v6017_v10  ;;  %7239 = vpow2.f32 %v5740_v37  ;;  %v6009_v39 = vadd.s32 %v10248_v54, %v10253_v26  ;;  %vm5944_vm3 = vcmp.lt.s32.totalorder %v5943_v58, 2 }
 0x724   : > { %v5830_v28 = vmul.f32 %v5829_v4, %v5827_v35  ;;  %7241 = vpow2.f32 %v5738_v23  ;;  %vm5948_vm6 = vcmp.eq.s32.totalorder %v5943_v58, 2  ;;  %vm6265_vm13 = vcmp.eq.s32.totalorder %v6260_v55, 2 }
 0x725   : > { %v6789_v3 = vmin.u32 %v6019_v15, %v6017_v10  ;;  %vm5945_vm5 = vcmp.eq.s32.totalorder %v5943_v58, 0  ;;  %vm6262_vm15 = vcmp.eq.s32.totalorder %v6260_v55, 0  ;;  %vm6261_vm7 = vcmp.lt.s32.totalorder %v6260_v55, 2 }
 0x726   : > { %v5831_v42 = vxor.u32 2147483648, %v5830_v28  ;;  %v5840_v30 = vand.u32 3, %v5836_v24  ;;  %v6039_v46 = vsub.s32 4, %v10270_v18  ;;  %vm5839_vm4 = vweird.f32 %v10113_v25 }
 0x727   : > { %v6021_v1 = vclz %v6789_v3  ;;  %vm5955_vm10 = vcmp.lt.s32.totalorder %v10126_v53, 0  ;;  %vm5954_vm12 = vcmp.le.f32.partialorder %v5953_v60, 0.7853982  ;;  %v6155_v34 = vadd.s32 3, %v5836_v24 }
 0x728   : > { %v5832_v19 = vsel %vm5749_vm14, %v5831_v42, %v5830_v28  ;;  %vm5845_vm0 = vcmp.eq.s32.totalorder %v5840_v30, 2  ;;  %vm5842_vm9 = vcmp.eq.s32.totalorder %v5840_v30, 0  ;;  %vm5841_vm2 = vcmp.lt.s32.totalorder %v5840_v30, 2 }
 0x729   : > { %v5835_v9 = vsel %vm5748_vm1, %v10113_v25, %v5832_v19  ;;  %v6790_v22 = vadd.s32 4294967294, %v6021_v1  ;;  %v6040_v23 = vsel %vm5955_vm10, %v6039_v46, %v10270_v18  ;;  %v5742_v3 = vmul.f32 1.442695, %v5737_v11  ;;  %v6380_v25 = vld [vmem:[%s10370_s5] sm:$0xf] }
 0x72a   : > { %7243 = vcosq.f32 %v5835_v9  ;;  %v6042_v42 = vsel %vm5954_vm12, 0, %v6040_v23  ;;  %v6156_v19 = vand.u32 3, %v6155_v34 }
 0x72b   : > { %v7236_v20 = vpop.eup %7235  ;;  %7245 = vsinq.f32 %v5835_v9  ;;  %vm6791_vm11 = vcmp.lt.s32.totalorder %v6790_v22, 0  ;;  %v6363_v58 = vadd.s32 3, %v6042_v42  ;;  %v6046_v60 = vand.u32 3, %v6042_v42 }
 0x72c   : > { %v7238_v44 = vpop.eup %7237  ;;  %v5949_v14 = vxor.u32 2147483648, %v7236_v20  ;;  %v6024_v33 = vsel %vm6791_vm11, 0, %v6790_v22  ;;  %vm6158_vm14 = vcmp.eq.s32.totalorder %v6156_v19, 0  ;;  %vm6161_vm1 = vcmp.eq.s32.totalorder %v6156_v19, 2 }
 0x72d   : > { %v5946_v8 = vxor.u32 2147483648, %v7238_v44  ;;  %v6025_v38 = vsub.s32 32, %v6024_v33  ;;  %v6029_v41 = vsub.s32 4294967266, %v6024_v33  ;;  %v6026_v5 = vshll.u32 %v6017_v10, %v6024_v33  ;;  %v7240_v13 = vpop.eup %7239 }
 0x72e   : > { %v5950_v17 = vsel %vm5948_vm6, %v5949_v14, %v7238_v44  ;;  %v6267_v2 = vsel %vm6265_vm13, %v5949_v14, %v7238_v44  ;;  %v10288_v7 = vpop.eup %7241  ;;  %v6364_v9 = vand.u32 3, %v6363_v58  ;;  %vm6051_vm11 = vcmp.eq.s32.totalorder %v6046_v60, 2 }
 0x72f   : > { %v5947_v29 = vsel %vm5945_vm5, %v7236_v20, %v5946_v8  ;;  %v6264_v45 = vsel %vm6262_vm15, %v7236_v20, %v5946_v8  ;;  %v6027_v54 = vshrl.u32 %v6009_v39, %v6025_v38  ;;  %v6030_v26 = vadd.s32 127, %v6029_v41 }
 0x730   : > { %v5951_v40 = vsel %vm5944_vm3, %v5947_v29, %v5950_v17  ;;  %v6268_v61 = vsel %vm6261_vm7, %v6264_v45, %v6267_v2  ;;  %vm6047_vm3 = vcmp.lt.s32.totalorder %v6046_v60, 2  ;;  %vm6369_vm6 = vcmp.eq.s32.totalorder %v6364_v9, 2 }
 0x731   : > { %v5952_v56 = vsel %vm5942_vm8, nan, %v5951_v40  ;;  %v6269_v50 = vsel %vm5942_vm8, nan, %v6268_v61  ;;  %v6028_v36 = vor.u32 %v6027_v54, %v6026_v5  ;;  %v6031_v49 = vshll.u32 %v6030_v26, 23 }
 0x732   : > { %v6057_v21 = vmul.f32 %v7240_v13, %v5952_v56  ;;  %v10292_v62 = vmul.f32 %v7240_v13, %v6269_v50  ;;  %vm6157_vm8 = vcmp.lt.s32.totalorder %v6156_v19, 2  ;;  %vm6048_vm13 = vcmp.eq.s32.totalorder %v6046_v60, 0 }
 0x733   : > { %v6032_v31 = vor.u32 4788187, %v6031_v49  ;;  %v6035_v51 = vcvt.s32.f32 %v6028_v36  ;;  %vm6366_vm5 = vcmp.eq.s32.totalorder %v6364_v9, 0  ;;  %vm6365_vm15 = vcmp.lt.s32.totalorder %v6364_v9, 2 }
 0x734   : > { %v7244_v59 = vpop.eup %7243  ;;  %vm6045_vm7 = vweird.f32 %v10126_v53 }
 0x735   : > { %v7246_v0 = vpop.eup %7245  ;;  %v5846_v48 = vxor.u32 2147483648, %v7244_v59  ;;  %v6033_v63 = vand.u32 2147483647, %v6032_v31 }
 0x736   : > { %v5843_v27 = vxor.u32 2147483648, %v7246_v0 }
 0x737   : > { %v5847_v47 = vsel %vm5845_vm0, %v5846_v48, %v7246_v0  ;;  %v6036_v16 = vmul.f32 %v6035_v51, %v6033_v63  ;;  %v6163_v12 = vsel %vm6161_vm1, %v5846_v48, %v7246_v0  ;;  %vm10501_vm0 = vcmask 392192  }
 0x738   : > { %v5844_v6 = vsel %vm5842_vm9, %v7244_v59, %v5843_v27  ;;  %v6160_v18 = vsel %vm6158_vm14, %v7244_v59, %v5843_v27 }
 0x739   : > { %v5848_v35 = vsel %vm5841_vm2, %v5844_v6, %v5847_v47  ;;  %v6037_v10 = vxor.u32 2147483648, %v6036_v16  ;;  %v6164_v22 = vsel %vm6157_vm8, %v6160_v18, %v6163_v12 }
 0x73a   : > { %v5849_v4 = vsel %vm5839_vm4, nan, %v5848_v35  ;;  %v6165_v24 = vsel %vm5839_vm4, nan, %v6164_v22 }
 0x73b   : > { %v6056_v37 = vmul.f32 %v10288_v7, %v5849_v4  ;;  %v6038_v28 = vsel %vm5955_vm10, %v6037_v10, %v6036_v16  ;;  %v6374_v41 = vmul.f32 %v10288_v7, %v6165_v24 }
 0x73c   : > { %v6041_v15 = vsel %vm5954_vm12, %v10126_v53, %v6038_v28  ;;  %v6391_v53 = vpop.permute.xlu0 %6390 }
 0x73d   : > { %v6946_v32 = vpack.c.bf16 %v6057_v21, %v6056_v37  ;;  %7247 = vcosq.f32 %v6041_v15 }
 0x73e   : > { %7249 = vsinq.f32 %v6041_v15 }
 0x73f   : > { %6947 = vmatpush3.bf16.msra.mxu0 %v6946_v32  ;;  %7251 = vpow2.f32 %v5742_v3 }
 0x740   : > { %6948 = vmatprep.subr.bf16.mxu0 %v7326_v52 }
 0x747   : > { %v7248_v1 = vpop.eup %7247 }
 0x748   : > { %v7250_v55 = vpop.eup %7249  ;;  %v6052_v20 = vxor.u32 2147483648, %v7248_v1 }
 0x749   : > { %v6049_v44 = vxor.u32 2147483648, %v7250_v55  ;;  %v7252_v33 = vpop.eup %7251 }
 0x74a   : > { %v6053_v43 = vsel %vm6051_vm11, %v6052_v20, %v7250_v55  ;;  %v6371_v57 = vsel %vm6369_vm6, %v6052_v20, %v7250_v55 }
 0x74b   : > { %v6050_v11 = vsel %vm6048_vm13, %v7248_v1, %v6049_v44  ;;  %v6368_v39 = vsel %vm6366_vm5, %v7248_v1, %v6049_v44 }
 0x74c   : > { %v6054_v14 = vsel %vm6047_vm3, %v6050_v11, %v6053_v43  ;;  %v6372_v8 = vsel %vm6365_vm15, %v6368_v39, %v6371_v57 }
 0x74d   : > { %v6055_v17 = vsel %vm6045_vm7, nan, %v6054_v14  ;;  %v6373_v2 = vsel %vm6045_vm7, nan, %v6372_v8 }
 0x74e   : > { %v6058_v38 = vmul.f32 %v7252_v33, %v6055_v17  ;;  %v6376_v29 = vmul.f32 %v7252_v33, %v6373_v2 }
 0x750   : > { %v6949_v5 = vpack.c.bf16 %v6374_v41, %v6058_v38  ;;  %v6952_v40 = vpack.c.bf16 %v6376_v29, %v10292_v62 }
 0x752   : > { %6950 = vmatpush3.bf16.msra.mxu0 %v6949_v5 }
 0x753   : > { %6951 = vmatprep.subr.bf16.mxu0 %v7326_v52 }
 0x756   : > { %6953 = vmatpush3.bf16.msra.mxu0 %v6952_v40 }
 0x759   : > { %6895 = vmatmul.mubr.msk.f32.vlgmr.msra.gmra.mrb[18].mxu0 %vm10501_vm0, %v6380_v25 }
 0x82c   : > { %v6462_v45 = vpop.f32.mrb[18].mxu0 }
 0x82d   : > { %v6463_v13 = vadd.f32 %v6462_v45, %v6391_v53  ;;  %v6896_v54 = vpop.f32.mrb[19].mxu0 }
 0x82f   : > { %6466 = vst [vmem:[%s269_s19] sm:$0xf] %v6463_v13 }
 0x830   : > { %7266 = shalt.err (!%p7263_p3)
}
 0x831   : > { %s7267_s14 = scalar_lea.hbm %s10323_s23, 64  ;;  %s7271_s17 = scalar_lea.hbm %s10372_s7, 128 }
 0x832   : > { %p7268_p4 = scmp.ne.s32.totalorder %s10323_s23, %s7267_s14  ;;  %p7272_p9 = scmp.lt.u32.totalorder %s10323_s23, %s10372_s7 }
 0x833   : > { %p7273_p10 = scmp.lt.u32.totalorder %s7271_s17, %s7267_s14  ;;  %p7275_p12 = scmp.lt.u32.totalorder %s7267_s14, %s10323_s23 }
 0x834   : > { %p7269_p7 = pnand %p7268_p4, %p7407_p5 }
 0x835   : > { %p7274_p11 = por %p7273_p10, %p7272_p9 }
 0x836   : > { %p7270_p8 = pneg %p7269_p7 }
 0x837   : > { %p7276_p13 = por %p7275_p12, %p7274_p11 }
 0x839   : > { %p7277_p0 = pnand %p7276_p13, %p7270_p8 }
 0x83b   : > { %7280 = shalt.err (!%p7277_p0)
}
 0x83c   : > { %7050 = dma.vmem_to_hbm [thread:$0]  (%p7407_p5), %s10325_s20, 64, %s10323_s23, %s6468_s29  }
 0x83d PF: > { %p7056_p1 = scmp.ge.s32.totalorder %s7315_s27, 2  ;;  %s6493_s21 = sand.u32 1, %s7303_s24  }
 0x83e   : > { %s6494_s22 = scalar_lea.sflag [#allocation5], %s6493_s21 }
 0x83f   : > { %p7053_p2 = pnand %p7056_p1, %p7411_p6 }
 0x841   : > { %7298 = dma.done.wait (!%p7053_p2), %s6494_s22, 64  }
 0x842   : > { %7300 = vsyncadd (!%p7053_p2), %s6494_s22, 4294967232  ;;  %p17_p3 = scmp.ge.s32.totalorder %s7394_s30, 4   ;;  %s10502_s24 = smov %s7307_s25 }
 0x843   : > { %s10503_s25 = smov %s7311_s26  ;;  %s10504_s26 = smov %s7405_s10 }
 0x844   : > { %s10505_s27 = smov %s7394_s30  ;;  %19 = sbr.rel (!%p17_p3) target bundleno = 3 (0x3), region = 91 }
 0x84b   :  { %6499 = vsyncpa [#allocation5], 1 }
 0x84c   :  { %6501 = vsyncpa [#allocation5 + $0x1], 1 }

</bundles_post_ra>
